<compile_context>
chip_gen: v7x
topology: tpu7x:2x2x1
jax: 0.10.0
libtpu: 0.0.40
codegen_flags: <defaults>
</compile_context>

<pallas_src>
import jax
import jax.numpy as jnp
from jax.experimental import pallas as pl
from jax.experimental.pallas import tpu as pltpu

BN_EPS = 1e-5


# --------------------------------------------------------------------------------------
# helpers
# --------------------------------------------------------------------------------------
def _round_up(x, m):
    return ((x + m - 1) // m) * m


def _pick_rows(rows, max_rows):
    """Row tile (multiple of 8, <= max_rows) and padded row count it divides."""
    tp = min(max_rows, _round_up(rows, 8))
    return tp, _round_up(rows, tp)


def _lane_pack(c):
    """Pack factor k so k*c fills the 128-lane vreg (1 if c does not divide 128)."""
    return 128 // c if (c <= 128 and 128 % c == 0) else 1


def _bn_affine(ch_sum, ch_sumsq, count, gamma, beta, eps=BN_EPS):
    """Fold batch-stat BatchNorm into per-channel scale/shift (tiny (1,C) jnp glue)."""
    mean = ch_sum / count
    var = jnp.maximum(ch_sumsq / count - mean * mean, 0.0)   # clamp against cancellation
    scale = gamma * jax.lax.rsqrt(var + eps)
    shift = beta - mean * scale
    return scale, shift


# --------------------------------------------------------------------------------------
# Kernel 1: per-channel sum / sum-of-squares (lane-dense, fully parallel partials)
# --------------------------------------------------------------------------------------
def _stats_kernel(x_ref, st_ref):
    x = x_ref[...]
    st_ref[0:1, :] = jnp.sum(x, axis=0, keepdims=True)
    st_ref[1:2, :] = jnp.sum(x * x, axis=0, keepdims=True)


def _channel_sums(x_nhwc, max_rows=4096):
    c = x_nhwc.shape[-1]
    p = x_nhwc.size // c
    k = _lane_pack(c)
    while k > 1 and p % k:
        k //= 2
    rows, width = p // k, k * c
    x2d = x_nhwc.reshape(rows, width)                    # free row-major reshape
    tp, rows_p = _pick_rows(rows, max_rows)
    if rows_p != rows:                                   # zero rows do not perturb sums
        x2d = jnp.concatenate(
            [x2d, jnp.zeros((rows_p - rows, width), x2d.dtype)], axis=0)
    grid = rows_p // tp

    parts = pl.pallas_call(
        _stats_kernel,
        grid=(grid,),
        in_specs=[pl.BlockSpec((tp, width), lambda i: (i, 0))],
        out_specs=pl.BlockSpec((None, 2, width), lambda i: (i, 0, 0)),
        out_shape=jax.ShapeDtypeStruct((grid, 2, width), jnp.float32),
        compiler_params=pltpu.CompilerParams(dimension_semantics=("parallel",)),
    )(x2d)

    # Fold the k packed pixel groups (and grid partials) back to per-channel totals.
    s = parts[:, 0, :].reshape(grid * k, c).sum(axis=0, keepdims=True)
    sq = parts[:, 1, :].reshape(grid * k, c).sum(axis=0, keepdims=True)
    return s, sq, p


# --------------------------------------------------------------------------------------
# Kernel 2: per-image fused BN+ReLU -> conv3x3 (im2col matmuls) for both branches,
#           2x2 max-pool fused into the encoder conv, branch sum + per-image BN3 stats.
# --------------------------------------------------------------------------------------
def _encdec_kernel(x1_ref, x2_ref, w_e_ref, w_d_ref, bias_ref,
                   sc1_ref, sh1_ref, sc2_ref, sh2_ref,
                   s_ref, st_ref, pad1_ref, pad2_ref):
    h1, w1, c1 = x1_ref.shape
    h2, w2, c2 = x2_ref.shape

    # Zero-padded halos are rebuilt every step (no cross-step scratch state), so the
    # batch grid axis can be "parallel" / megacore-sharded on v7x.
    pad1_ref[...] = jnp.zeros_like(pad1_ref)
    pad1_ref[1:h1 + 1, 1:w1 + 1, :] = jnp.maximum(
        x1_ref[...] * sc1_ref[...] + sh1_ref[...], 0.0)
    pad2_ref[...] = jnp.zeros_like(pad2_ref)
    pad2_ref[1:h2 + 1, 1:w2 + 1, :] = jnp.maximum(
        x2_ref[...] * sc2_ref[...] + sh2_ref[...], 0.0)

    # Encoder: conv3x3 fused with the 2x2 max-pool.  Each pooling phase (py, px)
    # gathers its 9 taps with stride-2 window reads, concatenates them into a single
    # (h2*w2, 9*c1) im2col slab and runs ONE MXU matmul; the pool is an elementwise
    # max of the 4 phases (the full-res conv output is never materialised).
    pooled = None
    for py in range(2):
        for px in range(2):
            taps = [pad1_ref[pl.ds(py + dy, h2, 2), pl.ds(px + dx, w2, 2), :]
                    for dy in range(3) for dx in range(3)]
            im2col = jnp.concatenate(taps, axis=-1).reshape(h2 * w2, 9 * c1)
            ph = jnp.dot(im2col, w_e_ref[...], preferred_element_type=jnp.float32)
            pooled = ph if pooled is None else jnp.maximum(pooled, ph)

    # Decoder: conv3x3 as a single im2col matmul (K = 9*c2).
    taps = [pad2_ref[dy:dy + h2, dx:dx + w2, :]
            for dy in range(3) for dx in range(3)]
    im2col = jnp.concatenate(taps, axis=-1).reshape(h2 * w2, 9 * c2)
    dec = jnp.dot(im2col, w_d_ref[...], preferred_element_type=jnp.float32)

    s2d = pooled + dec + bias_ref[...]                  # (h2*w2, c_out); bias = b_e + b_d
    s_ref[...] = s2d

    # Per-image partial sums for BatchNorm #3 (reduced across the batch outside).
    st_ref[0:1, :] = jnp.sum(s2d, axis=0, keepdims=True)
    st_ref[1:2, :] = jnp.sum(s2d * s2d, axis=0, keepdims=True)


def _encdec_sum(x1, x2, w_enc2d, w_dec2d, bias, sc1, sh1, sc2, sh2):
    n, h1, w1, c1 = x1.shape
    _, h2, w2, c2 = x2.shape
    c_out = w_enc2d.shape[-1]

    def const(arr):
        nd = arr.ndim
        return pl.BlockSpec(arr.shape, lambda i, _nd=nd: (0,) * _nd)

    return pl.pallas_call(
        _encdec_kernel,
        grid=(n,),
        in_specs=[
            pl.BlockSpec((None, h1, w1, c1), lambda i: (i, 0, 0, 0)),
            pl.BlockSpec((None, h2, w2, c2), lambda i: (i, 0, 0, 0)),
            const(w_enc2d), const(w_dec2d), const(bias),
            const(sc1), const(sh1), const(sc2), const(sh2),
        ],
        out_specs=(
            pl.BlockSpec((None, h2 * w2, c_out), lambda i: (i, 0, 0)),
            pl.BlockSpec((None, 2, c_out), lambda i: (i, 0, 0)),
        ),
        out_shape=(
            jax.ShapeDtypeStruct((n, h2 * w2, c_out), jnp.float32),
            jax.ShapeDtypeStruct((n, 2, c_out), jnp.float32),
        ),
        scratch_shapes=[
            pltpu.VMEM((h1 + 2, w1 + 2, c1), jnp.float32),   # encoder halo
            pltpu.VMEM((h2 + 2, w2 + 2, c2), jnp.float32),   # decoder halo
        ],
        compiler_params=pltpu.CompilerParams(dimension_semantics=("parallel",)),
    )(x1, x2, w_enc2d, w_dec2d, bias, sc1, sh1, sc2, sh2)


# --------------------------------------------------------------------------------------
# Kernel 3: BN + ReLU + 1x1 conv + gate, fully lane-dense (k pixels packed per row).
# --------------------------------------------------------------------------------------
def _gate_kernel(s_ref, x2_ref, sc_ref, sh_ref, wseg_ref, brow_ref, o_ref):
    t = jnp.maximum(s_ref[...] * sc_ref[...] + sh_ref[...], 0.0)   # (tp, k*c_out)
    a = jnp.dot(t, wseg_ref[...], preferred_element_type=jnp.float32) + brow_ref[...]
    o_ref[...] = a * x2_ref[...]                                   # (tp, k*c2), unmasked


def _attn_gate(s_flat, x2, sc3, sh3, w_attn, b_attn, max_rows=2048):
    n, h2, w2, c2 = x2.shape
    c_out = s_flat.shape[-1]
    p = n * h2 * w2

    k = _lane_pack(c2)
    while k > 1 and p % k:
        k //= 2
    rows = p // k
    sp = s_flat.reshape(rows, k * c_out)                 # free row-major reshapes
    xp = x2.reshape(rows, k * c2)

    tp, rows_p = _pick_rows(rows, max_rows)
    if rows_p != rows:
        sp = jnp.concatenate([sp, jnp.zeros((rows_p - rows, k * c_out), sp.dtype)], 0)
        xp = jnp.concatenate([xp, jnp.zeros((rows_p - rows, k * c2), xp.dtype)], 0)
    grid = rows_p // tp

    # Block-diagonal weight: wseg[g*c_out + c, g*c2 + d] = w_attn[c].  One MXU matmul
    # performs the per-pixel 1x1-conv reduction AND the broadcast onto the c2 gate
    # lanes -> no (P, 1) logits, no in-kernel relayouts, all loads/stores 128-lane dense.
    eye = jnp.eye(k, dtype=jnp.float32)
    wseg = (eye[:, None, :, None] * w_attn[0][None, :, None, None]
            * jnp.ones((1, 1, 1, c2), jnp.float32)).reshape(k * c_out, k * c2)
    brow = jnp.full((1, k * c2), b_attn[0, 0], jnp.float32)
    sc_t = jnp.tile(sc3, (1, k))
    sh_t = jnp.tile(sh3, (1, k))

    def const(arr):
        return pl.BlockSpec(arr.shape, lambda i: (0, 0))

    out = pl.pallas_call(
        _gate_kernel,
        grid=(grid,),
        in_specs=[
            pl.BlockSpec((tp, k * c_out), lambda i: (i, 0)),
            pl.BlockSpec((tp, k * c2), lambda i: (i, 0)),
            const(sc_t), const(sh_t), const(wseg), const(brow),
        ],
        out_specs=pl.BlockSpec((tp, k * c2), lambda i: (i, 0)),
        out_shape=jax.ShapeDtypeStruct((rows_p, k * c2), jnp.float32),
        compiler_params=pltpu.CompilerParams(dimension_semantics=("parallel",)),
    )(sp, xp, sc_t, sh_t, wseg, brow)
    return out[:rows].reshape(n, h2, w2, c2)


# --------------------------------------------------------------------------------------
# Full forward (NHWC)
# --------------------------------------------------------------------------------------
def attention_block(x1, x2, params):
    """x1: (N, 2H, 2W, C_enc), x2: (N, H, W, C_dec)  ->  (N, H, W, C_dec)."""
    (w_enc, b_enc, w_dec, b_dec,
     g1, be1, g2, be2, g3, be3, w_attn, b_attn) = params

    n, h1, w1, c1 = x1.shape
    n2, h2, w2, c2 = x2.shape
    assert n == n2 and h1 == 2 * h2 and w1 == 2 * w2, "encoder must be 2x decoder size"
    assert w1 % 8 == 0 and w2 % 8 == 0, "W dims must be multiples of 8 (TPU sublanes)"

    # Pass 1: batch statistics for the two input BatchNorms (lane-dense, parallel).
    s1, ss1, cnt1 = _channel_sums(x1)
    s2, ss2, cnt2 = _channel_sums(x2)
    sc1, sh1 = _bn_affine(s1, ss1, cnt1, g1, be1)
    sc2, sh2 = _bn_affine(s2, ss2, cnt2, g2, be2)

    # Pass 2: fused BN+ReLU -> conv3x3 (+2x2 maxpool on encoder) -> branch sum,
    #         with per-image partial stats of the sum for BatchNorm #3.
    c_out = w_enc.shape[-1]
    w_enc2d = w_enc.reshape(9 * c1, c_out)               # (dy, dx, cin) row-major
    w_dec2d = w_dec.reshape(9 * c2, c_out)
    bias = b_enc + b_dec
    s, st = _encdec_sum(x1, x2, w_enc2d, w_dec2d, bias, sc1, sh1, sc2, sh2)
    ssum = jnp.sum(st[:, 0, :], axis=0, keepdims=True)
    ssq = jnp.sum(st[:, 1, :], axis=0, keepdims=True)
    sc3, sh3 = _bn_affine(ssum, ssq, n * h2 * w2, g3, be3)

    # Pass 3: BN+ReLU -> 1x1 conv -> gate with x2, lane-dense.
    return _attn_gate(s.reshape(n * h2 * w2, c_out), x2, sc3, sh3, w_attn, b_attn)


# --------------------------------------------------------------------------------------
# Parameters / pure-JAX reference
# --------------------------------------------------------------------------------------
def init_params(key, c_enc, c_dec, c_out):
    ks = jax.random.split(key, 12)
    w_enc = 0.1 * jax.random.normal(ks[0], (3, 3, c_enc, c_out), jnp.float32)   # HWIO
    b_enc = 0.1 * jax.random.normal(ks[1], (1, c_out), jnp.float32)
    w_dec = 0.1 * jax.random.normal(ks[2], (3, 3, c_dec, c_out), jnp.float32)
    b_dec = 0.1 * jax.random.normal(ks[3], (1, c_out), jnp.float32)
    g1 = 1.0 + 0.1 * jax.random.normal(ks[4], (1, c_enc), jnp.float32)
    be1 = 0.1 * jax.random.normal(ks[5], (1, c_enc), jnp.float32)
    g2 = 1.0 + 0.1 * jax.random.normal(ks[6], (1, c_dec), jnp.float32)
    be2 = 0.1 * jax.random.normal(ks[7], (1, c_dec), jnp.float32)
    g3 = 1.0 + 0.1 * jax.random.normal(ks[8], (1, c_out), jnp.float32)
    be3 = 0.1 * jax.random.normal(ks[9], (1, c_out), jnp.float32)
    w_attn = 0.1 * jax.random.normal(ks[10], (1, c_out), jnp.float32)
    b_attn = 0.1 * jax.random.normal(ks[11], (1, 1), jnp.float32)
    return (w_enc, b_enc, w_dec, b_dec, g1, be1, g2, be2, g3, be3, w_attn, b_attn)


def reference_forward(x1, x2, params):
    (w_enc, b_enc, w_dec, b_dec,
     g1, be1, g2, be2, g3, be3, w_attn, b_attn) = params

    def bn_relu(x, gamma, beta):
        mean = jnp.mean(x, axis=(0, 1, 2), keepdims=True)
        var = jnp.mean((x - mean) ** 2, axis=(0, 1, 2), keepdims=True)
        y = (x - mean) / jnp.sqrt(var + BN_EPS)
        y = y * gamma.reshape(1, 1, 1, -1) + beta.reshape(1, 1, 1, -1)
        return jnp.maximum(y, 0.0)

    def conv3x3(x, w, b):
        y = jax.lax.conv_general_dilated(
            x, w, window_strides=(1, 1), padding="SAME",
            dimension_numbers=("NHWC", "HWIO", "NHWC"))
        return y + b.reshape(1, 1, 1, -1)

    c1 = conv3x3(bn_relu(x1, g1, be1), w_enc, b_enc)
    pooled = jax.lax.reduce_window(c1, -jnp.inf, jax.lax.max,
                                   (1, 2, 2, 1), (1, 2, 2, 1), "VALID")
    c2 = conv3x3(bn_relu(x2, g2, be2), w_dec, b_dec)
    s = pooled + c2
    t = bn_relu(s, g3, be3)
    a = jnp.einsum("nhwc,c->nhw", t, w_attn[0]) + b_attn[0, 0]
    return a[..., None] * x2


# --------------------------------------------------------------------------------------
if __name__ == "__main__":
    N, C_ENC, C_DEC, C_OUT = 2, 8, 16, 32
    H2 = W2 = 8
    H1, W1 = 2 * H2, 2 * W2

    key = jax.random.PRNGKey(0)
    kx1, kx2, kp = jax.random.split(key, 3)
    x1 = jax.random.normal(kx1, (N, H1, W1, C_ENC), jnp.float32)
    x2 = jax.random.normal(kx2, (N, H2, W2, C_DEC), jnp.float32)
    params = init_params(kp, C_ENC, C_DEC, C_OUT)

    out = jax.block_until_ready(jax.jit(attention_block)(x1, x2, params))
    ref = jax.block_until_ready(reference_forward(x1, x2, params))

    assert out.shape == (N, H2, W2, C_DEC), out.shape
    max_err = float(jnp.max(jnp.abs(out - ref)))
    assert jnp.allclose(out, ref, atol=5e-4, rtol=5e-4), max_err
    print("KERNEL_OK")
</pallas_src>

<mosaic_0001>
module attributes {stable_mosaic.version = 11 : i64} {
  func.func @_stats_kernel(%arg0: i32, %arg1: memref<16x128xf32, #tpu.memory_space<vmem>>, %arg2: memref<1x2x128xf32, #tpu.memory_space<vmem>>) attributes {dimension_semantics = [#tpu.dimension_semantics<parallel>], iteration_bounds = array<i64: 1>, scalar_prefetch = 0 : i64, scratch_operands = 0 : i64, tpu.core_type = #tpu.core_type<tc>, window_params = [{transform_indices = @transform_0, window_bounds = array<i64: 16, 128>}, {transform_indices = @transform_1, window_bounds = array<i64: 1, 2, 128>}]} {
    %c0 = arith.constant 0 : index
    %c0_0 = arith.constant 0 : index
    %0 = vector.load %arg1[%c0, %c0_0] : memref<16x128xf32, #tpu.memory_space<vmem>>, vector<16x128xf32>
    %cst = arith.constant dense<0.000000e+00> : vector<128xf32>
    %1 = vector.multi_reduction <add>, %0, %cst [0] : vector<16x128xf32> to vector<128xf32>
    %2 = vector.shape_cast %1 : vector<128xf32> to vector<1x128xf32>
    %c0_1 = arith.constant 0 : index
    %c0_2 = arith.constant 0 : index
    %c0_3 = arith.constant 0 : index
    %3 = vector.load %arg2[%c0_1, %c0_2, %c0_3] : memref<1x2x128xf32, #tpu.memory_space<vmem>>, vector<1x1x128xf32>
    %4 = vector.shape_cast %3 : vector<1x1x128xf32> to vector<1x128xf32>
    %5 = vector.shape_cast %2 : vector<1x128xf32> to vector<1x1x128xf32>
    tpu.vector_store %arg2[%c0_1, %c0_2, %c0_3], %5 {strides = array<i32>} : memref<1x2x128xf32, #tpu.memory_space<vmem>>, vector<1x1x128xf32>,
    %6 = arith.mulf %0, %0 : vector<16x128xf32>
    %cst_4 = arith.constant dense<0.000000e+00> : vector<128xf32>
    %7 = vector.multi_reduction <add>, %6, %cst_4 [0] : vector<16x128xf32> to vector<128xf32>
    %8 = vector.shape_cast %7 : vector<128xf32> to vector<1x128xf32>
    %c0_5 = arith.constant 0 : index
    %c1 = arith.constant 1 : index
    %c0_6 = arith.constant 0 : index
    %9 = vector.load %arg2[%c0_5, %c1, %c0_6] : memref<1x2x128xf32, #tpu.memory_space<vmem>>, vector<1x1x128xf32>
    %10 = vector.shape_cast %9 : vector<1x1x128xf32> to vector<1x128xf32>
    %11 = vector.shape_cast %8 : vector<1x128xf32> to vector<1x1x128xf32>
    tpu.vector_store %arg2[%c0_5, %c1, %c0_6], %11 {strides = array<i32>} : memref<1x2x128xf32, #tpu.memory_space<vmem>>, vector<1x1x128xf32>,
    return
  }
  func.func @transform_0(%arg0: i32) -> (i32, i32) {
    %c0_i32 = arith.constant 0 : i32
    %c0_i32_0 = arith.constant 0 : i32
    return %arg0, %c0_i32 : i32, i32
  }
  func.func @transform_1(%arg0: i32) -> (i32, i32, i32) {
    %c0_i32 = arith.constant 0 : i32
    %c0_i32_0 = arith.constant 0 : i32
    %c0_i32_1 = arith.constant 0 : i32
    return %arg0, %c0_i32, %c0_i32_0 : i32, i32, i32
  }
}

module attributes {stable_mosaic.version = 11 : i64} {
  func.func @_stats_kernel(%arg0: i32, %arg1: memref<32x128xf32, #tpu.memory_space<vmem>>, %arg2: memref<1x2x128xf32, #tpu.memory_space<vmem>>) attributes {dimension_semantics = [#tpu.dimension_semantics<parallel>], iteration_bounds = array<i64: 1>, scalar_prefetch = 0 : i64, scratch_operands = 0 : i64, tpu.core_type = #tpu.core_type<tc>, window_params = [{transform_indices = @transform_0, window_bounds = array<i64: 32, 128>}, {transform_indices = @transform_1, window_bounds = array<i64: 1, 2, 128>}]} {
    %c0 = arith.constant 0 : index
    %c0_0 = arith.constant 0 : index
    %0 = vector.load %arg1[%c0, %c0_0] : memref<32x128xf32, #tpu.memory_space<vmem>>, vector<32x128xf32>
    %cst = arith.constant dense<0.000000e+00> : vector<128xf32>
    %1 = vector.multi_reduction <add>, %0, %cst [0] : vector<32x128xf32> to vector<128xf32>
    %2 = vector.shape_cast %1 : vector<128xf32> to vector<1x128xf32>
    %c0_1 = arith.constant 0 : index
    %c0_2 = arith.constant 0 : index
    %c0_3 = arith.constant 0 : index
    %3 = vector.load %arg2[%c0_1, %c0_2, %c0_3] : memref<1x2x128xf32, #tpu.memory_space<vmem>>, vector<1x1x128xf32>
    %4 = vector.shape_cast %3 : vector<1x1x128xf32> to vector<1x128xf32>
    %5 = vector.shape_cast %2 : vector<1x128xf32> to vector<1x1x128xf32>
    tpu.vector_store %arg2[%c0_1, %c0_2, %c0_3], %5 {strides = array<i32>} : memref<1x2x128xf32, #tpu.memory_space<vmem>>, vector<1x1x128xf32>,
    %6 = arith.mulf %0, %0 : vector<32x128xf32>
    %cst_4 = arith.constant dense<0.000000e+00> : vector<128xf32>
    %7 = vector.multi_reduction <add>, %6, %cst_4 [0] : vector<32x128xf32> to vector<128xf32>
    %8 = vector.shape_cast %7 : vector<128xf32> to vector<1x128xf32>
    %c0_5 = arith.constant 0 : index
    %c1 = arith.constant 1 : index
    %c0_6 = arith.constant 0 : index
    %9 = vector.load %arg2[%c0_5, %c1, %c0_6] : memref<1x2x128xf32, #tpu.memory_space<vmem>>, vector<1x1x128xf32>
    %10 = vector.shape_cast %9 : vector<1x1x128xf32> to vector<1x128xf32>
    %11 = vector.shape_cast %8 : vector<1x128xf32> to vector<1x1x128xf32>
    tpu.vector_store %arg2[%c0_5, %c1, %c0_6], %11 {strides = array<i32>} : memref<1x2x128xf32, #tpu.memory_space<vmem>>, vector<1x1x128xf32>,
    return
  }
  func.func @transform_0(%arg0: i32) -> (i32, i32) {
    %c0_i32 = arith.constant 0 : i32
    %c0_i32_0 = arith.constant 0 : i32
    return %arg0, %c0_i32 : i32, i32
  }
  func.func @transform_1(%arg0: i32) -> (i32, i32, i32) {
    %c0_i32 = arith.constant 0 : i32
    %c0_i32_0 = arith.constant 0 : i32
    %c0_i32_1 = arith.constant 0 : i32
    return %arg0, %c0_i32, %c0_i32_0 : i32, i32, i32
  }
}

module attributes {stable_mosaic.version = 11 : i64} {
  func.func @_encdec_kernel(%arg0: i32, %arg1: memref<1x16x16x8xf32, #tpu.memory_space<vmem>>, %arg2: memref<1x8x8x16xf32, #tpu.memory_space<vmem>>, %arg3: memref<72x32xf32, #tpu.memory_space<vmem>>, %arg4: memref<144x32xf32, #tpu.memory_space<vmem>>, %arg5: memref<1x32xf32, #tpu.memory_space<vmem>>, %arg6: memref<1x8xf32, #tpu.memory_space<vmem>>, %arg7: memref<1x8xf32, #tpu.memory_space<vmem>>, %arg8: memref<1x16xf32, #tpu.memory_space<vmem>>, %arg9: memref<1x16xf32, #tpu.memory_space<vmem>>, %arg10: memref<1x64x32xf32, #tpu.memory_space<vmem>>, %arg11: memref<1x2x32xf32, #tpu.memory_space<vmem>>, %arg12: memref<18x18x8xf32, #tpu.memory_space<vmem>>, %arg13: memref<10x10x16xf32, #tpu.memory_space<vmem>>) attributes {dimension_semantics = [#tpu.dimension_semantics<parallel>], iteration_bounds = array<i64: 2>, scalar_prefetch = 0 : i64, scratch_operands = 2 : i64, tpu.core_type = #tpu.core_type<tc>, window_params = [{transform_indices = @transform_0, window_bounds = array<i64: 1, 16, 16, 8>}, {transform_indices = @transform_1, window_bounds = array<i64: 1, 8, 8, 16>}, {pipeline_mode = #tpu.pipeline_mode<synchronous>, transform_indices = @transform_2, window_bounds = array<i64: 72, 32>}, {pipeline_mode = #tpu.pipeline_mode<synchronous>, transform_indices = @transform_3, window_bounds = array<i64: 144, 32>}, {pipeline_mode = #tpu.pipeline_mode<synchronous>, transform_indices = @transform_4, window_bounds = array<i64: 1, 32>}, {pipeline_mode = #tpu.pipeline_mode<synchronous>, transform_indices = @transform_5, window_bounds = array<i64: 1, 8>}, {pipeline_mode = #tpu.pipeline_mode<synchronous>, transform_indices = @transform_6, window_bounds = array<i64: 1, 8>}, {pipeline_mode = #tpu.pipeline_mode<synchronous>, transform_indices = @transform_7, window_bounds = array<i64: 1, 16>}, {pipeline_mode = #tpu.pipeline_mode<synchronous>, transform_indices = @transform_8, window_bounds = array<i64: 1, 16>}, {transform_indices = @transform_9, window_bounds = array<i64: 1, 64, 32>}, {transform_indices = @transform_10, window_bounds = array<i64: 1, 2, 32>}]} {
    %cst = arith.constant 0.000000e+00 : f32
    %0 = vector.broadcast %cst : f32 to vector<18x18x8xf32>
    %c0 = arith.constant 0 : index
    %c0_0 = arith.constant 0 : index
    %c0_1 = arith.constant 0 : index
    %1 = vector.load %arg12[%c0, %c0_0, %c0_1] : memref<18x18x8xf32, #tpu.memory_space<vmem>>, vector<18x18x8xf32>
    tpu.vector_store %arg12[%c0, %c0_0, %c0_1], %0 {strides = array<i32>} : memref<18x18x8xf32, #tpu.memory_space<vmem>>, vector<18x18x8xf32>,
    %c0_2 = arith.constant 0 : index
    %c0_3 = arith.constant 0 : index
    %c0_4 = arith.constant 0 : index
    %c0_5 = arith.constant 0 : index
    %2 = vector.load %arg1[%c0_2, %c0_3, %c0_4, %c0_5] : memref<1x16x16x8xf32, #tpu.memory_space<vmem>>, vector<1x16x16x8xf32>
    %3 = vector.shape_cast %2 : vector<1x16x16x8xf32> to vector<16x16x8xf32>
    %c0_6 = arith.constant 0 : index
    %c0_7 = arith.constant 0 : index
    %4 = vector.load %arg6[%c0_6, %c0_7] : memref<1x8xf32, #tpu.memory_space<vmem>>, vector<1x8xf32>
    %5 = vector.shape_cast %4 : vector<1x8xf32> to vector<1x1x8xf32>
    %6 = vector.broadcast %5 : vector<1x1x8xf32> to vector<16x16x8xf32>
    %7 = arith.mulf %3, %6 : vector<16x16x8xf32>
    %c0_8 = arith.constant 0 : index
    %c0_9 = arith.constant 0 : index
    %8 = vector.load %arg7[%c0_8, %c0_9] : memref<1x8xf32, #tpu.memory_space<vmem>>, vector<1x8xf32>
    %9 = vector.shape_cast %8 : vector<1x8xf32> to vector<1x1x8xf32>
    %10 = vector.broadcast %9 : vector<1x1x8xf32> to vector<16x16x8xf32>
    %11 = arith.addf %7, %10 : vector<16x16x8xf32>
    %cst_10 = arith.constant 0.000000e+00 : f32
    %12 = vector.broadcast %cst_10 : f32 to vector<16x16x8xf32>
    %13 = arith.maximumf %11, %12 : vector<16x16x8xf32>
    %c1 = arith.constant 1 : index
    %c1_11 = arith.constant 1 : index
    %c0_12 = arith.constant 0 : index
    %14 = vector.load %arg12[%c1, %c1_11, %c0_12] : memref<18x18x8xf32, #tpu.memory_space<vmem>>, vector<16x16x8xf32>
    tpu.vector_store %arg12[%c1, %c1_11, %c0_12], %13 {strides = array<i32>} : memref<18x18x8xf32, #tpu.memory_space<vmem>>, vector<16x16x8xf32>,
    %cst_13 = arith.constant 0.000000e+00 : f32
    %15 = vector.broadcast %cst_13 : f32 to vector<10x10x16xf32>
    %c0_14 = arith.constant 0 : index
    %c0_15 = arith.constant 0 : index
    %c0_16 = arith.constant 0 : index
    %16 = vector.load %arg13[%c0_14, %c0_15, %c0_16] : memref<10x10x16xf32, #tpu.memory_space<vmem>>, vector<10x10x16xf32>
    tpu.vector_store %arg13[%c0_14, %c0_15, %c0_16], %15 {strides = array<i32>} : memref<10x10x16xf32, #tpu.memory_space<vmem>>, vector<10x10x16xf32>,
    %c0_17 = arith.constant 0 : index
    %c0_18 = arith.constant 0 : index
    %c0_19 = arith.constant 0 : index
    %c0_20 = arith.constant 0 : index
    %17 = vector.load %arg2[%c0_17, %c0_18, %c0_19, %c0_20] : memref<1x8x8x16xf32, #tpu.memory_space<vmem>>, vector<1x8x8x16xf32>
    %18 = vector.shape_cast %17 : vector<1x8x8x16xf32> to vector<8x8x16xf32>
    %c0_21 = arith.constant 0 : index
    %c0_22 = arith.constant 0 : index
    %19 = vector.load %arg8[%c0_21, %c0_22] : memref<1x16xf32, #tpu.memory_space<vmem>>, vector<1x16xf32>
    %20 = vector.shape_cast %19 : vector<1x16xf32> to vector<1x1x16xf32>
    %21 = vector.broadcast %20 : vector<1x1x16xf32> to vector<8x8x16xf32>
    %22 = arith.mulf %18, %21 : vector<8x8x16xf32>
    %c0_23 = arith.constant 0 : index
    %c0_24 = arith.constant 0 : index
    %23 = vector.load %arg9[%c0_23, %c0_24] : memref<1x16xf32, #tpu.memory_space<vmem>>, vector<1x16xf32>
    %24 = vector.shape_cast %23 : vector<1x16xf32> to vector<1x1x16xf32>
    %25 = vector.broadcast %24 : vector<1x1x16xf32> to vector<8x8x16xf32>
    %26 = arith.addf %22, %25 : vector<8x8x16xf32>
    %cst_25 = arith.constant 0.000000e+00 : f32
    %27 = vector.broadcast %cst_25 : f32 to vector<8x8x16xf32>
    %28 = arith.maximumf %26, %27 : vector<8x8x16xf32>
    %c1_26 = arith.constant 1 : index
    %c1_27 = arith.constant 1 : index
    %c0_28 = arith.constant 0 : index
    %29 = vector.load %arg13[%c1_26, %c1_27, %c0_28] : memref<10x10x16xf32, #tpu.memory_space<vmem>>, vector<8x8x16xf32>
    tpu.vector_store %arg13[%c1_26, %c1_27, %c0_28], %28 {strides = array<i32>} : memref<10x10x16xf32, #tpu.memory_space<vmem>>, vector<8x8x16xf32>,
    %c0_29 = arith.constant 0 : index
    %c0_30 = arith.constant 0 : index
    %c0_31 = arith.constant 0 : index
    %30 = tpu.strided_load %arg12[%c0_29, %c0_30, %c0_31] {strides = array<i32: 2, 2, 1>} : memref<18x18x8xf32, #tpu.memory_space<vmem>>, vector<8x8x8xf32>
    %c0_32 = arith.constant 0 : index
    %c1_33 = arith.constant 1 : index
    %c0_34 = arith.constant 0 : index
    %31 = tpu.strided_load %arg12[%c0_32, %c1_33, %c0_34] {strides = array<i32: 2, 2, 1>} : memref<18x18x8xf32, #tpu.memory_space<vmem>>, vector<8x8x8xf32>
    %c0_35 = arith.constant 0 : index
    %c2 = arith.constant 2 : index
    %c0_36 = arith.constant 0 : index
    %32 = tpu.strided_load %arg12[%c0_35, %c2, %c0_36] {strides = array<i32: 2, 2, 1>} : memref<18x18x8xf32, #tpu.memory_space<vmem>>, vector<8x8x8xf32>
    %c1_37 = arith.constant 1 : index
    %c0_38 = arith.constant 0 : index
    %c0_39 = arith.constant 0 : index
    %33 = tpu.strided_load %arg12[%c1_37, %c0_38, %c0_39] {strides = array<i32: 2, 2, 1>} : memref<18x18x8xf32, #tpu.memory_space<vmem>>, vector<8x8x8xf32>
    %c1_40 = arith.constant 1 : index
    %c1_41 = arith.constant 1 : index
    %c0_42 = arith.constant 0 : index
    %34 = tpu.strided_load %arg12[%c1_40, %c1_41, %c0_42] {strides = array<i32: 2, 2, 1>} : memref<18x18x8xf32, #tpu.memory_space<vmem>>, vector<8x8x8xf32>
    %c1_43 = arith.constant 1 : index
    %c2_44 = arith.constant 2 : index
    %c0_45 = arith.constant 0 : index
    %35 = tpu.strided_load %arg12[%c1_43, %c2_44, %c0_45] {strides = array<i32: 2, 2, 1>} : memref<18x18x8xf32, #tpu.memory_space<vmem>>, vector<8x8x8xf32>
    %c2_46 = arith.constant 2 : index
    %c0_47 = arith.constant 0 : index
    %c0_48 = arith.constant 0 : index
    %36 = tpu.strided_load %arg12[%c2_46, %c0_47, %c0_48] {strides = array<i32: 2, 2, 1>} : memref<18x18x8xf32, #tpu.memory_space<vmem>>, vector<8x8x8xf32>
    %c2_49 = arith.constant 2 : index
    %c1_50 = arith.constant 1 : index
    %c0_51 = arith.constant 0 : index
    %37 = tpu.strided_load %arg12[%c2_49, %c1_50, %c0_51] {strides = array<i32: 2, 2, 1>} : memref<18x18x8xf32, #tpu.memory_space<vmem>>, vector<8x8x8xf32>
    %c2_52 = arith.constant 2 : index
    %c2_53 = arith.constant 2 : index
    %c0_54 = arith.constant 0 : index
    %38 = tpu.strided_load %arg12[%c2_52, %c2_53, %c0_54] {strides = array<i32: 2, 2, 1>} : memref<18x18x8xf32, #tpu.memory_space<vmem>>, vector<8x8x8xf32>
    %39 = tpu.concatenate %30, %31, %32, %33, %34, %35, %36, %37, %38 in 2 : vector<8x8x8xf32>, vector<8x8x8xf32>, vector<8x8x8xf32>, vector<8x8x8xf32>, vector<8x8x8xf32>, vector<8x8x8xf32>, vector<8x8x8xf32>, vector<8x8x8xf32>, vector<8x8x8xf32> -> vector<8x8x72xf32>
    %40 = vector.shape_cast %39 : vector<8x8x72xf32> to vector<64x72xf32>
    %c0_55 = arith.constant 0 : index
    %c0_56 = arith.constant 0 : index
    %41 = vector.load %arg3[%c0_55, %c0_56] : memref<72x32xf32, #tpu.memory_space<vmem>>, vector<72x32xf32>
    %cst_57 = arith.constant dense<0.000000e+00> : vector<64x32xf32>
    %42 = tpu.matmul %40, %41, %cst_57 {dimension_numbers = #tpu.dot_dimension_numbers<[1], [0], [0], [1], [0, 0, 1, 1], [], []>} : vector<64x72xf32>, vector<72x32xf32>, vector<64x32xf32> -> vector<64x32xf32>
    %c0_58 = arith.constant 0 : index
    %c1_59 = arith.constant 1 : index
    %c0_60 = arith.constant 0 : index
    %43 = tpu.strided_load %arg12[%c0_58, %c1_59, %c0_60] {strides = array<i32: 2, 2, 1>} : memref<18x18x8xf32, #tpu.memory_space<vmem>>, vector<8x8x8xf32>
    %c0_61 = arith.constant 0 : index
    %c2_62 = arith.constant 2 : index
    %c0_63 = arith.constant 0 : index
    %44 = tpu.strided_load %arg12[%c0_61, %c2_62, %c0_63] {strides = array<i32: 2, 2, 1>} : memref<18x18x8xf32, #tpu.memory_space<vmem>>, vector<8x8x8xf32>
    %c0_64 = arith.constant 0 : index
    %c3 = arith.constant 3 : index
    %c0_65 = arith.constant 0 : index
    %45 = tpu.strided_load %arg12[%c0_64, %c3, %c0_65] {strides = array<i32: 2, 2, 1>} : memref<18x18x8xf32, #tpu.memory_space<vmem>>, vector<8x8x8xf32>
    %c1_66 = arith.constant 1 : index
    %c1_67 = arith.constant 1 : index
    %c0_68 = arith.constant 0 : index
    %46 = tpu.strided_load %arg12[%c1_66, %c1_67, %c0_68] {strides = array<i32: 2, 2, 1>} : memref<18x18x8xf32, #tpu.memory_space<vmem>>, vector<8x8x8xf32>
    %c1_69 = arith.constant 1 : index
    %c2_70 = arith.constant 2 : index
    %c0_71 = arith.constant 0 : index
    %47 = tpu.strided_load %arg12[%c1_69, %c2_70, %c0_71] {strides = array<i32: 2, 2, 1>} : memref<18x18x8xf32, #tpu.memory_space<vmem>>, vector<8x8x8xf32>
    %c1_72 = arith.constant 1 : index
    %c3_73 = arith.constant 3 : index
    %c0_74 = arith.constant 0 : index
    %48 = tpu.strided_load %arg12[%c1_72, %c3_73, %c0_74] {strides = array<i32: 2, 2, 1>} : memref<18x18x8xf32, #tpu.memory_space<vmem>>, vector<8x8x8xf32>
    %c2_75 = arith.constant 2 : index
    %c1_76 = arith.constant 1 : index
    %c0_77 = arith.constant 0 : index
    %49 = tpu.strided_load %arg12[%c2_75, %c1_76, %c0_77] {strides = array<i32: 2, 2, 1>} : memref<18x18x8xf32, #tpu.memory_space<vmem>>, vector<8x8x8xf32>
    %c2_78 = arith.constant 2 : index
    %c2_79 = arith.constant 2 : index
    %c0_80 = arith.constant 0 : index
    %50 = tpu.strided_load %arg12[%c2_78, %c2_79, %c0_80] {strides = array<i32: 2, 2, 1>} : memref<18x18x8xf32, #tpu.memory_space<vmem>>, vector<8x8x8xf32>
    %c2_81 = arith.constant 2 : index
    %c3_82 = arith.constant 3 : index
    %c0_83 = arith.constant 0 : index
    %51 = tpu.strided_load %arg12[%c2_81, %c3_82, %c0_83] {strides = array<i32: 2, 2, 1>} : memref<18x18x8xf32, #tpu.memory_space<vmem>>, vector<8x8x8xf32>
    %52 = tpu.concatenate %43, %44, %45, %46, %47, %48, %49, %50, %51 in 2 : vector<8x8x8xf32>, vector<8x8x8xf32>, vector<8x8x8xf32>, vector<8x8x8xf32>, vector<8x8x8xf32>, vector<8x8x8xf32>, vector<8x8x8xf32>, vector<8x8x8xf32>, vector<8x8x8xf32> -> vector<8x8x72xf32>
    %53 = vector.shape_cast %52 : vector<8x8x72xf32> to vector<64x72xf32>
    %c0_84 = arith.constant 0 : index
    %c0_85 = arith.constant 0 : index
    %54 = vector.load %arg3[%c0_84, %c0_85] : memref<72x32xf32, #tpu.memory_space<vmem>>, vector<72x32xf32>
    %cst_86 = arith.constant dense<0.000000e+00> : vector<64x32xf32>
    %55 = tpu.matmul %53, %54, %cst_86 {dimension_numbers = #tpu.dot_dimension_numbers<[1], [0], [0], [1], [0, 0, 1, 1], [], []>} : vector<64x72xf32>, vector<72x32xf32>, vector<64x32xf32> -> vector<64x32xf32>
    %56 = arith.maximumf %42, %55 : vector<64x32xf32>
    %c1_87 = arith.constant 1 : index
    %c0_88 = arith.constant 0 : index
    %c0_89 = arith.constant 0 : index
    %57 = tpu.strided_load %arg12[%c1_87, %c0_88, %c0_89] {strides = array<i32: 2, 2, 1>} : memref<18x18x8xf32, #tpu.memory_space<vmem>>, vector<8x8x8xf32>
    %c1_90 = arith.constant 1 : index
    %c1_91 = arith.constant 1 : index
    %c0_92 = arith.constant 0 : index
    %58 = tpu.strided_load %arg12[%c1_90, %c1_91, %c0_92] {strides = array<i32: 2, 2, 1>} : memref<18x18x8xf32, #tpu.memory_space<vmem>>, vector<8x8x8xf32>
    %c1_93 = arith.constant 1 : index
    %c2_94 = arith.constant 2 : index
    %c0_95 = arith.constant 0 : index
    %59 = tpu.strided_load %arg12[%c1_93, %c2_94, %c0_95] {strides = array<i32: 2, 2, 1>} : memref<18x18x8xf32, #tpu.memory_space<vmem>>, vector<8x8x8xf32>
    %c2_96 = arith.constant 2 : index
    %c0_97 = arith.constant 0 : index
    %c0_98 = arith.constant 0 : index
    %60 = tpu.strided_load %arg12[%c2_96, %c0_97, %c0_98] {strides = array<i32: 2, 2, 1>} : memref<18x18x8xf32, #tpu.memory_space<vmem>>, vector<8x8x8xf32>
    %c2_99 = arith.constant 2 : index
    %c1_100 = arith.constant 1 : index
    %c0_101 = arith.constant 0 : index
    %61 = tpu.strided_load %arg12[%c2_99, %c1_100, %c0_101] {strides = array<i32: 2, 2, 1>} : memref<18x18x8xf32, #tpu.memory_space<vmem>>, vector<8x8x8xf32>
    %c2_102 = arith.constant 2 : index
    %c2_103 = arith.constant 2 : index
    %c0_104 = arith.constant 0 : index
    %62 = tpu.strided_load %arg12[%c2_102, %c2_103, %c0_104] {strides = array<i32: 2, 2, 1>} : memref<18x18x8xf32, #tpu.memory_space<vmem>>, vector<8x8x8xf32>
    %c3_105 = arith.constant 3 : index
    %c0_106 = arith.constant 0 : index
    %c0_107 = arith.constant 0 : index
    %63 = tpu.strided_load %arg12[%c3_105, %c0_106, %c0_107] {strides = array<i32: 2, 2, 1>} : memref<18x18x8xf32, #tpu.memory_space<vmem>>, vector<8x8x8xf32>
    %c3_108 = arith.constant 3 : index
    %c1_109 = arith.constant 1 : index
    %c0_110 = arith.constant 0 : index
    %64 = tpu.strided_load %arg12[%c3_108, %c1_109, %c0_110] {strides = array<i32: 2, 2, 1>} : memref<18x18x8xf32, #tpu.memory_space<vmem>>, vector<8x8x8xf32>
    %c3_111 = arith.constant 3 : index
    %c2_112 = arith.constant 2 : index
    %c0_113 = arith.constant 0 : index
    %65 = tpu.strided_load %arg12[%c3_111, %c2_112, %c0_113] {strides = array<i32: 2, 2, 1>} : memref<18x18x8xf32, #tpu.memory_space<vmem>>, vector<8x8x8xf32>
    %66 = tpu.concatenate %57, %58, %59, %60, %61, %62, %63, %64, %65 in 2 : vector<8x8x8xf32>, vector<8x8x8xf32>, vector<8x8x8xf32>, vector<8x8x8xf32>, vector<8x8x8xf32>, vector<8x8x8xf32>, vector<8x8x8xf32>, vector<8x8x8xf32>, vector<8x8x8xf32> -> vector<8x8x72xf32>
    %67 = vector.shape_cast %66 : vector<8x8x72xf32> to vector<64x72xf32>
    %c0_114 = arith.constant 0 : index
    %c0_115 = arith.constant 0 : index
    %68 = vector.load %arg3[%c0_114, %c0_115] : memref<72x32xf32, #tpu.memory_space<vmem>>, vector<72x32xf32>
    %cst_116 = arith.constant dense<0.000000e+00> : vector<64x32xf32>
    %69 = tpu.matmul %67, %68, %cst_116 {dimension_numbers = #tpu.dot_dimension_numbers<[1], [0], [0], [1], [0, 0, 1, 1], [], []>} : vector<64x72xf32>, vector<72x32xf32>, vector<64x32xf32> -> vector<64x32xf32>
    %70 = arith.maximumf %56, %69 : vector<64x32xf32>
    %c1_117 = arith.constant 1 : index
    %c1_118 = arith.constant 1 : index
    %c0_119 = arith.constant 0 : index
    %71 = tpu.strided_load %arg12[%c1_117, %c1_118, %c0_119] {strides = array<i32: 2, 2, 1>} : memref<18x18x8xf32, #tpu.memory_space<vmem>>, vector<8x8x8xf32>
    %c1_120 = arith.constant 1 : index
    %c2_121 = arith.constant 2 : index
    %c0_122 = arith.constant 0 : index
    %72 = tpu.strided_load %arg12[%c1_120, %c2_121, %c0_122] {strides = array<i32: 2, 2, 1>} : memref<18x18x8xf32, #tpu.memory_space<vmem>>, vector<8x8x8xf32>
    %c1_123 = arith.constant 1 : index
    %c3_124 = arith.constant 3 : index
    %c0_125 = arith.constant 0 : index
    %73 = tpu.strided_load %arg12[%c1_123, %c3_124, %c0_125] {strides = array<i32: 2, 2, 1>} : memref<18x18x8xf32, #tpu.memory_space<vmem>>, vector<8x8x8xf32>
    %c2_126 = arith.constant 2 : index
    %c1_127 = arith.constant 1 : index
    %c0_128 = arith.constant 0 : index
    %74 = tpu.strided_load %arg12[%c2_126, %c1_127, %c0_128] {strides = array<i32: 2, 2, 1>} : memref<18x18x8xf32, #tpu.memory_space<vmem>>, vector<8x8x8xf32>
    %c2_129 = arith.constant 2 : index
    %c2_130 = arith.constant 2 : index
    %c0_131 = arith.constant 0 : index
    %75 = tpu.strided_load %arg12[%c2_129, %c2_130, %c0_131] {strides = array<i32: 2, 2, 1>} : memref<18x18x8xf32, #tpu.memory_space<vmem>>, vector<8x8x8xf32>
    %c2_132 = arith.constant 2 : index
    %c3_133 = arith.constant 3 : index
    %c0_134 = arith.constant 0 : index
    %76 = tpu.strided_load %arg12[%c2_132, %c3_133, %c0_134] {strides = array<i32: 2, 2, 1>} : memref<18x18x8xf32, #tpu.memory_space<vmem>>, vector<8x8x8xf32>
    %c3_135 = arith.constant 3 : index
    %c1_136 = arith.constant 1 : index
    %c0_137 = arith.constant 0 : index
    %77 = tpu.strided_load %arg12[%c3_135, %c1_136, %c0_137] {strides = array<i32: 2, 2, 1>} : memref<18x18x8xf32, #tpu.memory_space<vmem>>, vector<8x8x8xf32>
    %c3_138 = arith.constant 3 : index
    %c2_139 = arith.constant 2 : index
    %c0_140 = arith.constant 0 : index
    %78 = tpu.strided_load %arg12[%c3_138, %c2_139, %c0_140] {strides = array<i32: 2, 2, 1>} : memref<18x18x8xf32, #tpu.memory_space<vmem>>, vector<8x8x8xf32>
    %c3_141 = arith.constant 3 : index
    %c3_142 = arith.constant 3 : index
    %c0_143 = arith.constant 0 : index
    %79 = tpu.strided_load %arg12[%c3_141, %c3_142, %c0_143] {strides = array<i32: 2, 2, 1>} : memref<18x18x8xf32, #tpu.memory_space<vmem>>, vector<8x8x8xf32>
    %80 = tpu.concatenate %71, %72, %73, %74, %75, %76, %77, %78, %79 in 2 : vector<8x8x8xf32>, vector<8x8x8xf32>, vector<8x8x8xf32>, vector<8x8x8xf32>, vector<8x8x8xf32>, vector<8x8x8xf32>, vector<8x8x8xf32>, vector<8x8x8xf32>, vector<8x8x8xf32> -> vector<8x8x72xf32>
    %81 = vector.shape_cast %80 : vector<8x8x72xf32> to vector<64x72xf32>
    %c0_144 = arith.constant 0 : index
    %c0_145 = arith.constant 0 : index
    %82 = vector.load %arg3[%c0_144, %c0_145] : memref<72x32xf32, #tpu.memory_space<vmem>>, vector<72x32xf32>
    %cst_146 = arith.constant dense<0.000000e+00> : vector<64x32xf32>
    %83 = tpu.matmul %81, %82, %cst_146 {dimension_numbers = #tpu.dot_dimension_numbers<[1], [0], [0], [1], [0, 0, 1, 1], [], []>} : vector<64x72xf32>, vector<72x32xf32>, vector<64x32xf32> -> vector<64x32xf32>
    %84 = arith.maximumf %70, %83 : vector<64x32xf32>
    %c0_147 = arith.constant 0 : index
    %c0_148 = arith.constant 0 : index
    %c0_149 = arith.constant 0 : index
    %85 = vector.load %arg13[%c0_147, %c0_148, %c0_149] : memref<10x10x16xf32, #tpu.memory_space<vmem>>, vector<8x8x16xf32>
    %c0_150 = arith.constant 0 : index
    %c1_151 = arith.constant 1 : index
    %c0_152 = arith.constant 0 : index
    %86 = vector.load %arg13[%c0_150, %c1_151, %c0_152] : memref<10x10x16xf32, #tpu.memory_space<vmem>>, vector<8x8x16xf32>
    %c0_153 = arith.constant 0 : index
    %c2_154 = arith.constant 2 : index
    %c0_155 = arith.constant 0 : index
    %87 = vector.load %arg13[%c0_153, %c2_154, %c0_155] : memref<10x10x16xf32, #tpu.memory_space<vmem>>, vector<8x8x16xf32>
    %c1_156 = arith.constant 1 : index
    %c0_157 = arith.constant 0 : index
    %c0_158 = arith.constant 0 : index
    %88 = vector.load %arg13[%c1_156, %c0_157, %c0_158] : memref<10x10x16xf32, #tpu.memory_space<vmem>>, vector<8x8x16xf32>
    %c1_159 = arith.constant 1 : index
    %c1_160 = arith.constant 1 : index
    %c0_161 = arith.constant 0 : index
    %89 = vector.load %arg13[%c1_159, %c1_160, %c0_161] : memref<10x10x16xf32, #tpu.memory_space<vmem>>, vector<8x8x16xf32>
    %c1_162 = arith.constant 1 : index
    %c2_163 = arith.constant 2 : index
    %c0_164 = arith.constant 0 : index
    %90 = vector.load %arg13[%c1_162, %c2_163, %c0_164] : memref<10x10x16xf32, #tpu.memory_space<vmem>>, vector<8x8x16xf32>
    %c2_165 = arith.constant 2 : index
    %c0_166 = arith.constant 0 : index
    %c0_167 = arith.constant 0 : index
    %91 = vector.load %arg13[%c2_165, %c0_166, %c0_167] : memref<10x10x16xf32, #tpu.memory_space<vmem>>, vector<8x8x16xf32>
    %c2_168 = arith.constant 2 : index
    %c1_169 = arith.constant 1 : index
    %c0_170 = arith.constant 0 : index
    %92 = vector.load %arg13[%c2_168, %c1_169, %c0_170] : memref<10x10x16xf32, #tpu.memory_space<vmem>>, vector<8x8x16xf32>
    %c2_171 = arith.constant 2 : index
    %c2_172 = arith.constant 2 : index
    %c0_173 = arith.constant 0 : index
    %93 = vector.load %arg13[%c2_171, %c2_172, %c0_173] : memref<10x10x16xf32, #tpu.memory_space<vmem>>, vector<8x8x16xf32>
    %94 = tpu.concatenate %85, %86, %87, %88, %89, %90, %91, %92, %93 in 2 : vector<8x8x16xf32>, vector<8x8x16xf32>, vector<8x8x16xf32>, vector<8x8x16xf32>, vector<8x8x16xf32>, vector<8x8x16xf32>, vector<8x8x16xf32>, vector<8x8x16xf32>, vector<8x8x16xf32> -> vector<8x8x144xf32>
    %95 = vector.shape_cast %94 : vector<8x8x144xf32> to vector<64x144xf32>
    %c0_174 = arith.constant 0 : index
    %c0_175 = arith.constant 0 : index
    %96 = vector.load %arg4[%c0_174, %c0_175] : memref<144x32xf32, #tpu.memory_space<vmem>>, vector<144x32xf32>
    %cst_176 = arith.constant dense<0.000000e+00> : vector<64x32xf32>
    %97 = tpu.matmul %95, %96, %cst_176 {dimension_numbers = #tpu.dot_dimension_numbers<[1], [0], [0], [1], [0, 0, 1, 1], [], []>} : vector<64x144xf32>, vector<144x32xf32>, vector<64x32xf32> -> vector<64x32xf32>
    %98 = arith.addf %84, %97 : vector<64x32xf32>
    %c0_177 = arith.constant 0 : index
    %c0_178 = arith.constant 0 : index
    %99 = vector.load %arg5[%c0_177, %c0_178] : memref<1x32xf32, #tpu.memory_space<vmem>>, vector<1x32xf32>
    %100 = vector.broadcast %99 : vector<1x32xf32> to vector<64x32xf32>
    %101 = arith.addf %98, %100 : vector<64x32xf32>
    %c0_179 = arith.constant 0 : index
    %c0_180 = arith.constant 0 : index
    %c0_181 = arith.constant 0 : index
    %102 = vector.load %arg10[%c0_179, %c0_180, %c0_181] : memref<1x64x32xf32, #tpu.memory_space<vmem>>, vector<1x64x32xf32>
    %103 = vector.shape_cast %102 : vector<1x64x32xf32> to vector<64x32xf32>
    %104 = vector.shape_cast %101 : vector<64x32xf32> to vector<1x64x32xf32>
    tpu.vector_store %arg10[%c0_179, %c0_180, %c0_181], %104 {strides = array<i32>} : memref<1x64x32xf32, #tpu.memory_space<vmem>>, vector<1x64x32xf32>,
    %cst_182 = arith.constant dense<0.000000e+00> : vector<32xf32>
    %105 = vector.multi_reduction <add>, %101, %cst_182 [0] : vector<64x32xf32> to vector<32xf32>
    %106 = vector.shape_cast %105 : vector<32xf32> to vector<1x32xf32>
    %c0_183 = arith.constant 0 : index
    %c0_184 = arith.constant 0 : index
    %c0_185 = arith.constant 0 : index
    %107 = vector.load %arg11[%c0_183, %c0_184, %c0_185] : memref<1x2x32xf32, #tpu.memory_space<vmem>>, vector<1x1x32xf32>
    %108 = vector.shape_cast %107 : vector<1x1x32xf32> to vector<1x32xf32>
    %109 = vector.shape_cast %106 : vector<1x32xf32> to vector<1x1x32xf32>
    tpu.vector_store %arg11[%c0_183, %c0_184, %c0_185], %109 {strides = array<i32>} : memref<1x2x32xf32, #tpu.memory_space<vmem>>, vector<1x1x32xf32>,
    %110 = arith.mulf %101, %101 : vector<64x32xf32>
    %cst_186 = arith.constant dense<0.000000e+00> : vector<32xf32>
    %111 = vector.multi_reduction <add>, %110, %cst_186 [0] : vector<64x32xf32> to vector<32xf32>
    %112 = vector.shape_cast %111 : vector<32xf32> to vector<1x32xf32>
    %c0_187 = arith.constant 0 : index
    %c1_188 = arith.constant 1 : index
    %c0_189 = arith.constant 0 : index
    %113 = vector.load %arg11[%c0_187, %c1_188, %c0_189] : memref<1x2x32xf32, #tpu.memory_space<vmem>>, vector<1x1x32xf32>
    %114 = vector.shape_cast %113 : vector<1x1x32xf32> to vector<1x32xf32>
    %115 = vector.shape_cast %112 : vector<1x32xf32> to vector<1x1x32xf32>
    tpu.vector_store %arg11[%c0_187, %c1_188, %c0_189], %115 {strides = array<i32>} : memref<1x2x32xf32, #tpu.memory_space<vmem>>, vector<1x1x32xf32>,
    return
  }
  func.func @transform_0(%arg0: i32) -> (i32, i32, i32, i32) {
    %c0_i32 = arith.constant 0 : i32
    %c0_i32_0 = arith.constant 0 : i32
    %c0_i32_1 = arith.constant 0 : i32
    %c0_i32_2 = arith.constant 0 : i32
    return %arg0, %c0_i32, %c0_i32_0, %c0_i32_1 : i32, i32, i32, i32
  }
  func.func @transform_1(%arg0: i32) -> (i32, i32, i32, i32) {
    %c0_i32 = arith.constant 0 : i32
    %c0_i32_0 = arith.constant 0 : i32
    %c0_i32_1 = arith.constant 0 : i32
    %c0_i32_2 = arith.constant 0 : i32
    return %arg0, %c0_i32, %c0_i32_0, %c0_i32_1 : i32, i32, i32, i32
  }
  func.func @transform_2(%arg0: i32) -> (i32, i32) {
    %c0_i32 = arith.constant 0 : i32
    %c0_i32_0 = arith.constant 0 : i32
    %c0_i32_1 = arith.constant 0 : i32
    return %c0_i32, %c0_i32_0 : i32, i32
  }
  func.func @transform_3(%arg0: i32) -> (i32, i32) {
    %c0_i32 = arith.constant 0 : i32
    %c0_i32_0 = arith.constant 0 : i32
    %c0_i32_1 = arith.constant 0 : i32
    return %c0_i32, %c0_i32_0 : i32, i32
  }
  func.func @transform_4(%arg0: i32) -> (i32, i32) {
    %c0_i32 = arith.constant 0 : i32
    %c0_i32_0 = arith.constant 0 : i32
    %c0_i32_1 = arith.constant 0 : i32
    return %c0_i32, %c0_i32_0 : i32, i32
  }
  func.func @transform_5(%arg0: i32) -> (i32, i32) {
    %c0_i32 = arith.constant 0 : i32
    %c0_i32_0 = arith.constant 0 : i32
    %c0_i32_1 = arith.constant 0 : i32
    return %c0_i32, %c0_i32_0 : i32, i32
  }
  func.func @transform_6(%arg0: i32) -> (i32, i32) {
    %c0_i32 = arith.constant 0 : i32
    %c0_i32_0 = arith.constant 0 : i32
    %c0_i32_1 = arith.constant 0 : i32
    return %c0_i32, %c0_i32_0 : i32, i32
  }
  func.func @transform_7(%arg0: i32) -> (i32, i32) {
    %c0_i32 = arith.constant 0 : i32
    %c0_i32_0 = arith.constant 0 : i32
    %c0_i32_1 = arith.constant 0 : i32
    return %c0_i32, %c0_i32_0 : i32, i32
  }
  func.func @transform_8(%arg0: i32) -> (i32, i32) {
    %c0_i32 = arith.constant 0 : i32
    %c0_i32_0 = arith.constant 0 : i32
    %c0_i32_1 = arith.constant 0 : i32
    return %c0_i32, %c0_i32_0 : i32, i32
  }
  func.func @transform_9(%arg0: i32) -> (i32, i32, i32) {
    %c0_i32 = arith.constant 0 : i32
    %c0_i32_0 = arith.constant 0 : i32
    %c0_i32_1 = arith.constant 0 : i32
    return %arg0, %c0_i32, %c0_i32_0 : i32, i32, i32
  }
  func.func @transform_10(%arg0: i32) -> (i32, i32, i32) {
    %c0_i32 = arith.constant 0 : i32
    %c0_i32_0 = arith.constant 0 : i32
    %c0_i32_1 = arith.constant 0 : i32
    return %arg0, %c0_i32, %c0_i32_0 : i32, i32, i32
  }
}

module attributes {stable_mosaic.version = 11 : i64} {
  func.func @_gate_kernel(%arg0: i32, %arg1: memref<16x256xf32, #tpu.memory_space<vmem>>, %arg2: memref<16x128xf32, #tpu.memory_space<vmem>>, %arg3: memref<1x256xf32, #tpu.memory_space<vmem>>, %arg4: memref<1x256xf32, #tpu.memory_space<vmem>>, %arg5: memref<256x128xf32, #tpu.memory_space<vmem>>, %arg6: memref<1x128xf32, #tpu.memory_space<vmem>>, %arg7: memref<16x128xf32, #tpu.memory_space<vmem>>) attributes {dimension_semantics = [#tpu.dimension_semantics<parallel>], iteration_bounds = array<i64: 1>, scalar_prefetch = 0 : i64, scratch_operands = 0 : i64, tpu.core_type = #tpu.core_type<tc>, window_params = [{transform_indices = @transform_0, window_bounds = array<i64: 16, 256>}, {transform_indices = @transform_1, window_bounds = array<i64: 16, 128>}, {pipeline_mode = #tpu.pipeline_mode<synchronous>, transform_indices = @transform_2, window_bounds = array<i64: 1, 256>}, {pipeline_mode = #tpu.pipeline_mode<synchronous>, transform_indices = @transform_3, window_bounds = array<i64: 1, 256>}, {pipeline_mode = #tpu.pipeline_mode<synchronous>, transform_indices = @transform_4, window_bounds = array<i64: 256, 128>}, {pipeline_mode = #tpu.pipeline_mode<synchronous>, transform_indices = @transform_5, window_bounds = array<i64: 1, 128>}, {transform_indices = @transform_6, window_bounds = array<i64: 16, 128>}]} {
    %c0 = arith.constant 0 : index
    %c0_0 = arith.constant 0 : index
    %0 = vector.load %arg1[%c0, %c0_0] : memref<16x256xf32, #tpu.memory_space<vmem>>, vector<16x256xf32>
    %c0_1 = arith.constant 0 : index
    %c0_2 = arith.constant 0 : index
    %1 = vector.load %arg3[%c0_1, %c0_2] : memref<1x256xf32, #tpu.memory_space<vmem>>, vector<1x256xf32>
    %2 = vector.broadcast %1 : vector<1x256xf32> to vector<16x256xf32>
    %3 = arith.mulf %0, %2 : vector<16x256xf32>
    %c0_3 = arith.constant 0 : index
    %c0_4 = arith.constant 0 : index
    %4 = vector.load %arg4[%c0_3, %c0_4] : memref<1x256xf32, #tpu.memory_space<vmem>>, vector<1x256xf32>
    %5 = vector.broadcast %4 : vector<1x256xf32> to vector<16x256xf32>
    %6 = arith.addf %3, %5 : vector<16x256xf32>
    %cst = arith.constant 0.000000e+00 : f32
    %7 = vector.broadcast %cst : f32 to vector<16x256xf32>
    %8 = arith.maximumf %6, %7 : vector<16x256xf32>
    %c0_5 = arith.constant 0 : index
    %c0_6 = arith.constant 0 : index
    %9 = vector.load %arg5[%c0_5, %c0_6] : memref<256x128xf32, #tpu.memory_space<vmem>>, vector<256x128xf32>
    %cst_7 = arith.constant dense<0.000000e+00> : vector<16x128xf32>
    %10 = tpu.matmul %8, %9, %cst_7 {dimension_numbers = #tpu.dot_dimension_numbers<[1], [0], [0], [1], [0, 0, 1, 1], [], []>} : vector<16x256xf32>, vector<256x128xf32>, vector<16x128xf32> -> vector<16x128xf32>
    %c0_8 = arith.constant 0 : index
    %c0_9 = arith.constant 0 : index
    %11 = vector.load %arg6[%c0_8, %c0_9] : memref<1x128xf32, #tpu.memory_space<vmem>>, vector<1x128xf32>
    %12 = vector.broadcast %11 : vector<1x128xf32> to vector<16x128xf32>
    %13 = arith.addf %10, %12 : vector<16x128xf32>
    %c0_10 = arith.constant 0 : index
    %c0_11 = arith.constant 0 : index
    %14 = vector.load %arg2[%c0_10, %c0_11] : memref<16x128xf32, #tpu.memory_space<vmem>>, vector<16x128xf32>
    %15 = arith.mulf %13, %14 : vector<16x128xf32>
    %c0_12 = arith.constant 0 : index
    %c0_13 = arith.constant 0 : index
    %16 = vector.load %arg7[%c0_12, %c0_13] : memref<16x128xf32, #tpu.memory_space<vmem>>, vector<16x128xf32>
    tpu.vector_store %arg7[%c0_12, %c0_13], %15 {strides = array<i32>} : memref<16x128xf32, #tpu.memory_space<vmem>>, vector<16x128xf32>,
    return
  }
  func.func @transform_0(%arg0: i32) -> (i32, i32) {
    %c0_i32 = arith.constant 0 : i32
    %c0_i32_0 = arith.constant 0 : i32
    return %arg0, %c0_i32 : i32, i32
  }
  func.func @transform_1(%arg0: i32) -> (i32, i32) {
    %c0_i32 = arith.constant 0 : i32
    %c0_i32_0 = arith.constant 0 : i32
    return %arg0, %c0_i32 : i32, i32
  }
  func.func @transform_2(%arg0: i32) -> (i32, i32) {
    %c0_i32 = arith.constant 0 : i32
    %c0_i32_0 = arith.constant 0 : i32
    %c0_i32_1 = arith.constant 0 : i32
    return %c0_i32, %c0_i32_0 : i32, i32
  }
  func.func @transform_3(%arg0: i32) -> (i32, i32) {
    %c0_i32 = arith.constant 0 : i32
    %c0_i32_0 = arith.constant 0 : i32
    %c0_i32_1 = arith.constant 0 : i32
    return %c0_i32, %c0_i32_0 : i32, i32
  }
  func.func @transform_4(%arg0: i32) -> (i32, i32) {
    %c0_i32 = arith.constant 0 : i32
    %c0_i32_0 = arith.constant 0 : i32
    %c0_i32_1 = arith.constant 0 : i32
    return %c0_i32, %c0_i32_0 : i32, i32
  }
  func.func @transform_5(%arg0: i32) -> (i32, i32) {
    %c0_i32 = arith.constant 0 : i32
    %c0_i32_0 = arith.constant 0 : i32
    %c0_i32_1 = arith.constant 0 : i32
    return %c0_i32, %c0_i32_0 : i32, i32
  }
  func.func @transform_6(%arg0: i32) -> (i32, i32) {
    %c0_i32 = arith.constant 0 : i32
    %c0_i32_0 = arith.constant 0 : i32
    return %arg0, %c0_i32 : i32, i32
  }
}

</mosaic_0001>

<bundles_post_ra>
// kernel: squeeze.8
= control target key start
LH: loop header
LB: loop body
LE: loop exit
PB: predicated region body
PF: predicated region fallthrough
CT: control target
= control target key end

     0   :  { %s130_s8 = smov 104   ;;  %s131_s9 = smov 112   ;;  %vm7_vm0 = vcmask 64512   ;;  %s221_s0 = inlined_call_operand.vmem [shape: f32[128], index: 0, kind: input, shape index: {}]   ;;  %s222_s1 = inlined_call_operand.vmem [shape: f32[16,8], index: 1, kind: output, shape index: {}]  }
   0x1   :  { %v4_v0 = vld [vmem:[%s221_s0] sm:$0x1]  ;;  %s129_s0 = smov 120   ;;  %s132_s10 = smov 96  }
   0x2   :  { %5 = vst [vmem:[#allocation0] sm:$0x1] %v4_v0  ;;  %s133_s11 = smov 88   ;;  %s134_s12 = smov 80  }
   0x3   :  { %s135_s13 = smov 72   ;;  %s136_s14 = smov 64  }
   0x4   :  { %s137_s17 = smov 56   ;;  %s138_s18 = smov 48  }
   0x5   :  { %s139_s19 = smov 40   ;;  %s140_s20 = smov 32  }
   0x6   :  { %s141_s21 = smov 24   ;;  %s142_s22 = smov 16  }
   0x7   :  { %s143_s23 = smov 8  }
   0x9   :  { %v9_v1 = vld [vmem:[#allocation0] sm:$0x1]  }
   0xa   :  { %v21_v2 = vld [vmem:[#allocation0] sm:$0x1]   ;;  %10 = vrot.lane.b32.xlu0 %v9_v1, %s129_s0 }
   0xb   :  { %22 = vrot.lane.b32.xlu1 %v21_v2, %s130_s8  ;;  %v15_v3 = vld [vmem:[#allocation0] sm:$0x1]  }
   0xc   :  { %v27_v4 = vld [vmem:[#allocation0] sm:$0x1]  }
   0xd   :  { %v33_v5 = vld [vmem:[#allocation0] sm:$0x1]  }
   0xe   :  { %16 = vrot.lane.b32.xlu0 %v15_v3, %s131_s9  ;;  %v39_v6 = vld [vmem:[#allocation0] sm:$0x1]  }
   0xf   :  { %28 = vrot.lane.b32.xlu1 %v27_v4, %s132_s10  ;;  %v45_v7 = vld [vmem:[#allocation0] sm:$0x1]  }
  0x10   :  { %v51_v8 = vld [vmem:[#allocation0] sm:$0x1]  }
  0x11   :  { %v57_v9 = vld [vmem:[#allocation0] sm:$0x1]  }
  0x12   :  { %34 = vrot.lane.b32.xlu0 %v33_v5, %s133_s11  ;;  %v63_v10 = vld [vmem:[#allocation0] sm:$0x1]  }
  0x13   :  { %40 = vrot.lane.b32.xlu1 %v39_v6, %s134_s12  ;;  %v6_v11 = vld [vmem:[#allocation0] sm:$0x1]  }
  0x14   :  { %8 = vst.msk [vmem:[%s222_s1] sm:$0x1] %vm7_vm0, %v6_v11   ;;  %v69_v12 = vld [vmem:[#allocation0] sm:$0x1]  }
  0x15   :  { %v75_v13 = vld [vmem:[#allocation0] sm:$0x1]  }
  0x16   :  { %46 = vrot.lane.b32.xlu0 %v45_v7, %s135_s13  ;;  %v81_v14 = vld [vmem:[#allocation0] sm:$0x1]  }
  0x17   :  { %52 = vrot.lane.b32.xlu1 %v51_v8, %s136_s14  ;;  %v87_v15 = vld [vmem:[#allocation0] sm:$0x1]  }
  0x18   :  { %v93_v16 = vld [vmem:[#allocation0] sm:$0x1]  }
  0x1a   :  { %58 = vrot.lane.b32.xlu0 %v57_v9, %s137_s17 }
  0x1b   :  { %64 = vrot.lane.b32.xlu1 %v63_v10, %s138_s18 }
  0x1e   :  { %70 = vrot.lane.b32.xlu0 %v69_v12, %s139_s19 }
  0x1f   :  { %76 = vrot.lane.b32.xlu1 %v75_v13, %s140_s20 }
  0x22   :  { %82 = vrot.lane.b32.xlu0 %v81_v14, %s141_s21 }
  0x23   :  { %88 = vrot.lane.b32.xlu1 %v87_v15, %s142_s22 }
  0x26   :  { %94 = vrot.lane.b32.xlu0 %v93_v16, %s143_s23 }
  0x7c   :  { %v11_v17 = vpop.permute.xlu0 %10  }
  0x7d   :  { %v23_v18 = vpop.permute.xlu1 %22   ;;  %99 = vst.msk [vmem:[%s222_s1 + $0x1] sm:$0x1] %vm7_vm0, %v11_v17  }
  0x7e   :  { %101 = vst.msk [vmem:[%s222_s1 + $0x3] sm:$0x1] %vm7_vm0, %v23_v18  }
  0x80   :  { %v17_v19 = vpop.permute.xlu0 %16  }
  0x81   :  { %v29_v20 = vpop.permute.xlu1 %28   ;;  %100 = vst.msk [vmem:[%s222_s1 + $0x2] sm:$0x1] %vm7_vm0, %v17_v19  }
  0x82   :  { %102 = vst.msk [vmem:[%s222_s1 + $0x4] sm:$0x1] %vm7_vm0, %v29_v20  }
  0x84   :  { %v35_v21 = vpop.permute.xlu0 %34  }
  0x85   :  { %v41_v22 = vpop.permute.xlu1 %40   ;;  %103 = vst.msk [vmem:[%s222_s1 + $0x5] sm:$0x1] %vm7_vm0, %v35_v21  }
  0x86   :  { %104 = vst.msk [vmem:[%s222_s1 + $0x6] sm:$0x1] %vm7_vm0, %v41_v22  }
  0x88   :  { %v47_v23 = vpop.permute.xlu0 %46  }
  0x89   :  { %v53_v24 = vpop.permute.xlu1 %52   ;;  %105 = vst.msk [vmem:[%s222_s1 + $0x7] sm:$0x1] %vm7_vm0, %v47_v23  }
  0x8a   :  { %106 = vst.msk [vmem:[%s222_s1 + $0x8] sm:$0x1] %vm7_vm0, %v53_v24  }
  0x8c   :  { %v59_v25 = vpop.permute.xlu0 %58  }
  0x8d   :  { %v65_v26 = vpop.permute.xlu1 %64   ;;  %107 = vst.msk [vmem:[%s222_s1 + $0x9] sm:$0x1] %vm7_vm0, %v59_v25  }
  0x8e   :  { %108 = vst.msk [vmem:[%s222_s1 + $0xa] sm:$0x1] %vm7_vm0, %v65_v26  }
  0x90   :  { %v71_v27 = vpop.permute.xlu0 %70  }
  0x91   :  { %v77_v28 = vpop.permute.xlu1 %76   ;;  %109 = vst.msk [vmem:[%s222_s1 + $0xb] sm:$0x1] %vm7_vm0, %v71_v27  }
  0x92   :  { %110 = vst.msk [vmem:[%s222_s1 + $0xc] sm:$0x1] %vm7_vm0, %v77_v28  }
  0x94   :  { %v83_v29 = vpop.permute.xlu0 %82  }
  0x95   :  { %v89_v30 = vpop.permute.xlu1 %88   ;;  %111 = vst.msk [vmem:[%s222_s1 + $0xd] sm:$0x1] %vm7_vm0, %v83_v29  }
  0x96   :  { %112 = vst.msk [vmem:[%s222_s1 + $0xe] sm:$0x1] %vm7_vm0, %v89_v30  }
  0x98   :  { %v95_v31 = vpop.permute.xlu0 %94  }
  0x99   :  { %113 = vst.msk [vmem:[%s222_s1 + $0xf] sm:$0x1] %vm7_vm0, %v95_v31  }

// kernel: squeeze.10
= control target key start
LH: loop header
LB: loop body
LE: loop exit
PB: predicated region body
PF: predicated region fallthrough
CT: control target
= control target key end

     0   :  { %s66_s8 = smov 80   ;;  %vm7_vm0 = vcmask 130048   ;;  %s67_s11 = smov 96   ;;  %s117_s0 = inlined_call_operand.vmem [shape: f32[128], index: 0, kind: input, shape index: {}]   ;;  %s118_s1 = inlined_call_operand.vmem [shape: f32[8,16], index: 1, kind: output, shape index: {}]  }
   0x1   :  { %v4_v0 = vld [vmem:[%s117_s0] sm:$0x1]  ;;  %s65_s0 = smov 112   ;;  %s68_s12 = smov 64  }
   0x2   :  { %5 = vst [vmem:[#allocation0] sm:$0x1] %v4_v0  ;;  %s69_s13 = smov 48   ;;  %s70_s14 = smov 32  }
   0x3   :  { %s71_s15 = smov 16  }
   0x9   :  { %v9_v1 = vld [vmem:[#allocation0] sm:$0x1]  }
   0xa   :  { %v21_v2 = vld [vmem:[#allocation0] sm:$0x1]   ;;  %10 = vrot.lane.b32.xlu0 %v9_v1, %s65_s0 }
   0xb   :  { %22 = vrot.lane.b32.xlu1 %v21_v2, %s66_s8  ;;  %v15_v3 = vld [vmem:[#allocation0] sm:$0x1]  }
   0xc   :  { %v27_v4 = vld [vmem:[#allocation0] sm:$0x1]  }
   0xd   :  { %v6_v5 = vld [vmem:[#allocation0] sm:$0x1]  }
   0xe   :  { %8 = vst.msk [vmem:[%s118_s1] sm:$0x1] %vm7_vm0, %v6_v5   ;;  %16 = vrot.lane.b32.xlu0 %v15_v3, %s67_s11  ;;  %v33_v6 = vld [vmem:[#allocation0] sm:$0x1]  }
   0xf   :  { %28 = vrot.lane.b32.xlu1 %v27_v4, %s68_s12  ;;  %v39_v7 = vld [vmem:[#allocation0] sm:$0x1]  }
  0x10   :  { %v45_v8 = vld [vmem:[#allocation0] sm:$0x1]  }
  0x12   :  { %34 = vrot.lane.b32.xlu0 %v33_v6, %s69_s13 }
  0x13   :  { %40 = vrot.lane.b32.xlu1 %v39_v7, %s70_s14 }
  0x16   :  { %46 = vrot.lane.b32.xlu0 %v45_v8, %s71_s15 }
  0x7c   :  { %v11_v9 = vpop.permute.xlu0 %10  }
  0x7d   :  { %v23_v10 = vpop.permute.xlu1 %22   ;;  %51 = vst.msk [vmem:[%s118_s1 + $0x1] sm:$0x1] %vm7_vm0, %v11_v9  }
  0x7e   :  { %53 = vst.msk [vmem:[%s118_s1 + $0x3] sm:$0x1] %vm7_vm0, %v23_v10  }
  0x80   :  { %v17_v11 = vpop.permute.xlu0 %16  }
  0x81   :  { %v29_v12 = vpop.permute.xlu1 %28   ;;  %52 = vst.msk [vmem:[%s118_s1 + $0x2] sm:$0x1] %vm7_vm0, %v17_v11  }
  0x82   :  { %54 = vst.msk [vmem:[%s118_s1 + $0x4] sm:$0x1] %vm7_vm0, %v29_v12  }
  0x84   :  { %v35_v13 = vpop.permute.xlu0 %34  }
  0x85   :  { %v41_v14 = vpop.permute.xlu1 %40   ;;  %55 = vst.msk [vmem:[%s118_s1 + $0x5] sm:$0x1] %vm7_vm0, %v35_v13  }
  0x86   :  { %56 = vst.msk [vmem:[%s118_s1 + $0x6] sm:$0x1] %vm7_vm0, %v41_v14  }
  0x88   :  { %v47_v15 = vpop.permute.xlu0 %46  }
  0x89   :  { %57 = vst.msk [vmem:[%s118_s1 + $0x7] sm:$0x1] %vm7_vm0, %v47_v15  }

// kernel: attention_block.5
= control target key start
LH: loop header
LB: loop body
LE: loop exit
PB: predicated region body
PF: predicated region fallthrough
CT: control target
= control target key end

     0   :  { %s54_s0 = inlined_call_operand.vmem [shape: f32[16,128], index: 0, kind: input, shape index: {}]   ;;  %s55_s1 = inlined_call_operand.vmem [shape: f32[1,2,128], index: 1, kind: output, shape index: {}]  }
   0x1   :  { %v8_v0 = vld [vmem:[%s54_s0] sm:$0xff]  ;;  %v9_v1 = vld [vmem:[%s54_s0 + $0x8] sm:$0xff] }
   0x2   :  { %v10_v2 = vadd.f32 %v9_v1, %v8_v0  ;;  %v18_v3 = vmul.f32 %v8_v0, %v8_v0  ;;  %v19_v4 = vmul.f32 %v9_v1, %v9_v1 }
   0x4   :  { %v11_v5 = vrot.slane %v10_v2, 4  ;;  %v20_v6 = vadd.f32 %v19_v4, %v18_v3 }
   0x6   :  { %v12_v7 = vadd.f32 %v11_v5, %v10_v2  ;;  %v21_v8 = vrot.slane %v20_v6, 4 }
   0x8   :  { %v13_v9 = vrot.slane %v12_v7, 2  ;;  %v22_v10 = vadd.f32 %v21_v8, %v20_v6 }
   0xa   :  { %v14_v11 = vadd.f32 %v13_v9, %v12_v7  ;;  %v23_v12 = vrot.slane %v22_v10, 2 }
   0xc   :  { %v15_v13 = vrot.slane %v14_v11, 1  ;;  %v24_v14 = vadd.f32 %v23_v12, %v22_v10 }
   0xe   :  { %v16_v15 = vadd.f32 %v15_v13, %v14_v11  ;;  %v25_v16 = vrot.slane %v24_v14, 1 }
  0x10   :  { %17 = vst [vmem:[%s55_s1] sm:$0x1] %v16_v15  ;;  %v26_v17 = vadd.f32 %v25_v16, %v24_v14 }
  0x12   :  { %27 = vst [vmem:[%s55_s1 + $0x1] sm:$0x1] %v26_v17 }

// kernel: attention_block.4
= control target key start
LH: loop header
LB: loop body
LE: loop exit
PB: predicated region body
PF: predicated region fallthrough
CT: control target
= control target key end

     0   :  { %s68_s0 = inlined_call_operand.vmem [shape: f32[32,128], index: 0, kind: input, shape index: {}]   ;;  %s69_s1 = inlined_call_operand.vmem [shape: f32[1,2,128], index: 1, kind: output, shape index: {}]  }
   0x1   :  { %v8_v0 = vld [vmem:[%s68_s0] sm:$0xff]  ;;  %v9_v1 = vld [vmem:[%s68_s0 + $0x8] sm:$0xff]  ;;  %v10_v2 = vld [vmem:[%s68_s0 + $0x10] sm:$0xff] }
   0x2   :  { %v11_v3 = vld [vmem:[%s68_s0 + $0x18] sm:$0xff]  ;;  %v12_v4 = vadd.f32 %v9_v1, %v8_v0  ;;  %v22_v5 = vmul.f32 %v8_v0, %v8_v0  ;;  %v23_v6 = vmul.f32 %v9_v1, %v9_v1  ;;  %v24_v7 = vmul.f32 %v10_v2, %v10_v2 }
   0x3   :  { %v25_v9 = vmul.f32 %v11_v3, %v11_v3 }
   0x4   :  { %v13_v8 = vadd.f32 %v12_v4, %v10_v2  ;;  %v26_v10 = vadd.f32 %v23_v6, %v22_v5 }
   0x6   :  { %v14_v11 = vadd.f32 %v13_v8, %v11_v3  ;;  %v27_v12 = vadd.f32 %v26_v10, %v24_v7 }
   0x8   :  { %v15_v13 = vrot.slane %v14_v11, 4  ;;  %v28_v14 = vadd.f32 %v27_v12, %v25_v9 }
   0xa   :  { %v16_v15 = vadd.f32 %v15_v13, %v14_v11  ;;  %v29_v16 = vrot.slane %v28_v14, 4 }
   0xc   :  { %v17_v17 = vrot.slane %v16_v15, 2  ;;  %v30_v18 = vadd.f32 %v29_v16, %v28_v14 }
   0xe   :  { %v18_v19 = vadd.f32 %v17_v17, %v16_v15  ;;  %v31_v20 = vrot.slane %v30_v18, 2 }
  0x10   :  { %v19_v21 = vrot.slane %v18_v19, 1  ;;  %v32_v22 = vadd.f32 %v31_v20, %v30_v18 }
  0x12   :  { %v20_v23 = vadd.f32 %v19_v21, %v18_v19  ;;  %v33_v24 = vrot.slane %v32_v22, 1 }
  0x14   :  { %21 = vst [vmem:[%s69_s1] sm:$0x1] %v20_v23  ;;  %v34_v25 = vadd.f32 %v33_v24, %v32_v22 }
  0x16   :  { %35 = vst [vmem:[%s69_s1 + $0x1] sm:$0x1] %v34_v25 }

// kernel: mul.37
= control target key start
LH: loop header
LB: loop body
LE: loop exit
PB: predicated region body
PF: predicated region fallthrough
CT: control target
= control target key end

     0   :  { %s916_s0 = inlined_call_operand.vmem [shape: f32[8,32,8], index: 0, kind: input, shape index: {}]   ;;  %s917_s1 = inlined_call_operand.vmem [shape: f32[8,32,8,16], index: 1, kind: output, shape index: {}]  }
   0x1   :  { %v4_v0 = vld [vmem:[%s916_s0] sm:$0xff]  ;;  %v274_v1 = vld [vmem:[%s916_s0 + $0x8] sm:$0xff]  ;;  %v276_v2 = vld [vmem:[%s916_s0 + $0x10] sm:$0xff] }
   0x2   :  { %5 = vst [vmem:[%s917_s1] sm:$0xff] %v4_v0  ;;  %275 = vst [vmem:[%s917_s1 + $0x80] sm:$0xff] %v274_v1  ;;  %v439_v3 = vld [vmem:[%s916_s0 + $0x18] sm:$0xff]  ;;  %v444_v4 = vld [vmem:[%s916_s0 + $0x20] sm:$0xff] }
   0x3   :  { %277 = vst [vmem:[%s917_s1 + $0x100] sm:$0xff] %v276_v2  ;;  %v449_v5 = vld [vmem:[%s916_s0 + $0x28] sm:$0xff]  ;;  %288 = vst [vmem:[%s917_s1 + $0x8] sm:$0xff] %v4_v0  ;;  %v601_v6 = vld [vmem:[%s916_s0 + $0x30] sm:$0xff] }
   0x4   :  { %289 = vst [vmem:[%s917_s1 + $0x88] sm:$0xff] %v274_v1  ;;  %290 = vst [vmem:[%s917_s1 + $0x108] sm:$0xff] %v276_v2  ;;  %v606_v7 = vld [vmem:[%s916_s0 + $0x38] sm:$0xff] }
   0x5   :  { %296 = vst [vmem:[%s917_s1 + $0x10] sm:$0xff] %v4_v0  ;;  %297 = vst [vmem:[%s917_s1 + $0x90] sm:$0xff] %v274_v1 }
   0x6   :  { %298 = vst [vmem:[%s917_s1 + $0x110] sm:$0xff] %v276_v2  ;;  %304 = vst [vmem:[%s917_s1 + $0x18] sm:$0xff] %v4_v0 }
   0x7   :  { %305 = vst [vmem:[%s917_s1 + $0x98] sm:$0xff] %v274_v1  ;;  %306 = vst [vmem:[%s917_s1 + $0x118] sm:$0xff] %v276_v2 }
   0x8   :  { %312 = vst [vmem:[%s917_s1 + $0x20] sm:$0xff] %v4_v0  ;;  %313 = vst [vmem:[%s917_s1 + $0xa0] sm:$0xff] %v274_v1 }
   0x9   :  { %314 = vst [vmem:[%s917_s1 + $0x120] sm:$0xff] %v276_v2  ;;  %320 = vst [vmem:[%s917_s1 + $0x28] sm:$0xff] %v4_v0 }
   0xa   :  { %321 = vst [vmem:[%s917_s1 + $0xa8] sm:$0xff] %v274_v1  ;;  %322 = vst [vmem:[%s917_s1 + $0x128] sm:$0xff] %v276_v2 }
   0xb   :  { %328 = vst [vmem:[%s917_s1 + $0x30] sm:$0xff] %v4_v0  ;;  %329 = vst [vmem:[%s917_s1 + $0xb0] sm:$0xff] %v274_v1 }
   0xc   :  { %330 = vst [vmem:[%s917_s1 + $0x130] sm:$0xff] %v276_v2  ;;  %336 = vst [vmem:[%s917_s1 + $0x38] sm:$0xff] %v4_v0 }
   0xd   :  { %337 = vst [vmem:[%s917_s1 + $0xb8] sm:$0xff] %v274_v1  ;;  %338 = vst [vmem:[%s917_s1 + $0x138] sm:$0xff] %v276_v2 }
   0xe   :  { %344 = vst [vmem:[%s917_s1 + $0x40] sm:$0xff] %v4_v0  ;;  %345 = vst [vmem:[%s917_s1 + $0xc0] sm:$0xff] %v274_v1 }
   0xf   :  { %346 = vst [vmem:[%s917_s1 + $0x140] sm:$0xff] %v276_v2  ;;  %352 = vst [vmem:[%s917_s1 + $0x48] sm:$0xff] %v4_v0 }
  0x10   :  { %353 = vst [vmem:[%s917_s1 + $0xc8] sm:$0xff] %v274_v1  ;;  %354 = vst [vmem:[%s917_s1 + $0x148] sm:$0xff] %v276_v2 }
  0x11   :  { %360 = vst [vmem:[%s917_s1 + $0x50] sm:$0xff] %v4_v0  ;;  %361 = vst [vmem:[%s917_s1 + $0xd0] sm:$0xff] %v274_v1 }
  0x12   :  { %362 = vst [vmem:[%s917_s1 + $0x150] sm:$0xff] %v276_v2  ;;  %368 = vst [vmem:[%s917_s1 + $0x58] sm:$0xff] %v4_v0 }
  0x13   :  { %369 = vst [vmem:[%s917_s1 + $0xd8] sm:$0xff] %v274_v1  ;;  %370 = vst [vmem:[%s917_s1 + $0x158] sm:$0xff] %v276_v2 }
  0x14   :  { %376 = vst [vmem:[%s917_s1 + $0x60] sm:$0xff] %v4_v0  ;;  %377 = vst [vmem:[%s917_s1 + $0xe0] sm:$0xff] %v274_v1 }
  0x15   :  { %378 = vst [vmem:[%s917_s1 + $0x160] sm:$0xff] %v276_v2  ;;  %384 = vst [vmem:[%s917_s1 + $0x68] sm:$0xff] %v4_v0 }
  0x16   :  { %385 = vst [vmem:[%s917_s1 + $0xe8] sm:$0xff] %v274_v1  ;;  %386 = vst [vmem:[%s917_s1 + $0x168] sm:$0xff] %v276_v2 }
  0x17   :  { %392 = vst [vmem:[%s917_s1 + $0x70] sm:$0xff] %v4_v0  ;;  %393 = vst [vmem:[%s917_s1 + $0xf0] sm:$0xff] %v274_v1 }
  0x18   :  { %394 = vst [vmem:[%s917_s1 + $0x170] sm:$0xff] %v276_v2  ;;  %400 = vst [vmem:[%s917_s1 + $0x78] sm:$0xff] %v4_v0 }
  0x19   :  { %401 = vst [vmem:[%s917_s1 + $0xf8] sm:$0xff] %v274_v1  ;;  %402 = vst [vmem:[%s917_s1 + $0x178] sm:$0xff] %v276_v2 }
  0x1a   :  { %279 = vst [vmem:[%s917_s1 + $0x180] sm:$0xff] %v439_v3  ;;  %281 = vst [vmem:[%s917_s1 + $0x200] sm:$0xff] %v444_v4 }
  0x1b   :  { %283 = vst [vmem:[%s917_s1 + $0x280] sm:$0xff] %v449_v5  ;;  %291 = vst [vmem:[%s917_s1 + $0x188] sm:$0xff] %v439_v3 }
  0x1c   :  { %292 = vst [vmem:[%s917_s1 + $0x208] sm:$0xff] %v444_v4  ;;  %293 = vst [vmem:[%s917_s1 + $0x288] sm:$0xff] %v449_v5 }
  0x1d   :  { %299 = vst [vmem:[%s917_s1 + $0x190] sm:$0xff] %v439_v3  ;;  %300 = vst [vmem:[%s917_s1 + $0x210] sm:$0xff] %v444_v4 }
  0x1e   :  { %301 = vst [vmem:[%s917_s1 + $0x290] sm:$0xff] %v449_v5  ;;  %307 = vst [vmem:[%s917_s1 + $0x198] sm:$0xff] %v439_v3 }
  0x1f   :  { %308 = vst [vmem:[%s917_s1 + $0x218] sm:$0xff] %v444_v4  ;;  %309 = vst [vmem:[%s917_s1 + $0x298] sm:$0xff] %v449_v5 }
  0x20   :  { %315 = vst [vmem:[%s917_s1 + $0x1a0] sm:$0xff] %v439_v3  ;;  %316 = vst [vmem:[%s917_s1 + $0x220] sm:$0xff] %v444_v4 }
  0x21   :  { %317 = vst [vmem:[%s917_s1 + $0x2a0] sm:$0xff] %v449_v5  ;;  %323 = vst [vmem:[%s917_s1 + $0x1a8] sm:$0xff] %v439_v3 }
  0x22   :  { %324 = vst [vmem:[%s917_s1 + $0x228] sm:$0xff] %v444_v4  ;;  %325 = vst [vmem:[%s917_s1 + $0x2a8] sm:$0xff] %v449_v5 }
  0x23   :  { %331 = vst [vmem:[%s917_s1 + $0x1b0] sm:$0xff] %v439_v3  ;;  %332 = vst [vmem:[%s917_s1 + $0x230] sm:$0xff] %v444_v4 }
  0x24   :  { %333 = vst [vmem:[%s917_s1 + $0x2b0] sm:$0xff] %v449_v5  ;;  %339 = vst [vmem:[%s917_s1 + $0x1b8] sm:$0xff] %v439_v3 }
  0x25   :  { %340 = vst [vmem:[%s917_s1 + $0x238] sm:$0xff] %v444_v4  ;;  %341 = vst [vmem:[%s917_s1 + $0x2b8] sm:$0xff] %v449_v5 }
  0x26   :  { %347 = vst [vmem:[%s917_s1 + $0x1c0] sm:$0xff] %v439_v3  ;;  %348 = vst [vmem:[%s917_s1 + $0x240] sm:$0xff] %v444_v4 }
  0x27   :  { %349 = vst [vmem:[%s917_s1 + $0x2c0] sm:$0xff] %v449_v5  ;;  %355 = vst [vmem:[%s917_s1 + $0x1c8] sm:$0xff] %v439_v3 }
  0x28   :  { %356 = vst [vmem:[%s917_s1 + $0x248] sm:$0xff] %v444_v4  ;;  %357 = vst [vmem:[%s917_s1 + $0x2c8] sm:$0xff] %v449_v5 }
  0x29   :  { %363 = vst [vmem:[%s917_s1 + $0x1d0] sm:$0xff] %v439_v3  ;;  %364 = vst [vmem:[%s917_s1 + $0x250] sm:$0xff] %v444_v4 }
  0x2a   :  { %365 = vst [vmem:[%s917_s1 + $0x2d0] sm:$0xff] %v449_v5  ;;  %371 = vst [vmem:[%s917_s1 + $0x1d8] sm:$0xff] %v439_v3 }
  0x2b   :  { %372 = vst [vmem:[%s917_s1 + $0x258] sm:$0xff] %v444_v4  ;;  %373 = vst [vmem:[%s917_s1 + $0x2d8] sm:$0xff] %v449_v5 }
  0x2c   :  { %379 = vst [vmem:[%s917_s1 + $0x1e0] sm:$0xff] %v439_v3  ;;  %380 = vst [vmem:[%s917_s1 + $0x260] sm:$0xff] %v444_v4 }
  0x2d   :  { %381 = vst [vmem:[%s917_s1 + $0x2e0] sm:$0xff] %v449_v5  ;;  %387 = vst [vmem:[%s917_s1 + $0x1e8] sm:$0xff] %v439_v3 }
  0x2e   :  { %388 = vst [vmem:[%s917_s1 + $0x268] sm:$0xff] %v444_v4  ;;  %389 = vst [vmem:[%s917_s1 + $0x2e8] sm:$0xff] %v449_v5 }
  0x2f   :  { %395 = vst [vmem:[%s917_s1 + $0x1f0] sm:$0xff] %v439_v3  ;;  %396 = vst [vmem:[%s917_s1 + $0x270] sm:$0xff] %v444_v4 }
  0x30   :  { %397 = vst [vmem:[%s917_s1 + $0x2f0] sm:$0xff] %v449_v5  ;;  %403 = vst [vmem:[%s917_s1 + $0x1f8] sm:$0xff] %v439_v3 }
  0x31   :  { %404 = vst [vmem:[%s917_s1 + $0x278] sm:$0xff] %v444_v4  ;;  %405 = vst [vmem:[%s917_s1 + $0x2f8] sm:$0xff] %v449_v5 }
  0x32   :  { %285 = vst [vmem:[%s917_s1 + $0x300] sm:$0xff] %v601_v6  ;;  %287 = vst [vmem:[%s917_s1 + $0x380] sm:$0xff] %v606_v7 }
  0x33   :  { %294 = vst [vmem:[%s917_s1 + $0x308] sm:$0xff] %v601_v6  ;;  %295 = vst [vmem:[%s917_s1 + $0x388] sm:$0xff] %v606_v7 }
  0x34   :  { %302 = vst [vmem:[%s917_s1 + $0x310] sm:$0xff] %v601_v6  ;;  %303 = vst [vmem:[%s917_s1 + $0x390] sm:$0xff] %v606_v7 }
  0x35   :  { %310 = vst [vmem:[%s917_s1 + $0x318] sm:$0xff] %v601_v6  ;;  %311 = vst [vmem:[%s917_s1 + $0x398] sm:$0xff] %v606_v7 }
  0x36   :  { %318 = vst [vmem:[%s917_s1 + $0x320] sm:$0xff] %v601_v6  ;;  %319 = vst [vmem:[%s917_s1 + $0x3a0] sm:$0xff] %v606_v7 }
  0x37   :  { %326 = vst [vmem:[%s917_s1 + $0x328] sm:$0xff] %v601_v6  ;;  %327 = vst [vmem:[%s917_s1 + $0x3a8] sm:$0xff] %v606_v7 }
  0x38   :  { %334 = vst [vmem:[%s917_s1 + $0x330] sm:$0xff] %v601_v6  ;;  %335 = vst [vmem:[%s917_s1 + $0x3b0] sm:$0xff] %v606_v7 }
  0x39   :  { %342 = vst [vmem:[%s917_s1 + $0x338] sm:$0xff] %v601_v6  ;;  %343 = vst [vmem:[%s917_s1 + $0x3b8] sm:$0xff] %v606_v7 }
  0x3a   :  { %350 = vst [vmem:[%s917_s1 + $0x340] sm:$0xff] %v601_v6  ;;  %351 = vst [vmem:[%s917_s1 + $0x3c0] sm:$0xff] %v606_v7 }
  0x3b   :  { %358 = vst [vmem:[%s917_s1 + $0x348] sm:$0xff] %v601_v6  ;;  %359 = vst [vmem:[%s917_s1 + $0x3c8] sm:$0xff] %v606_v7 }
  0x3c   :  { %366 = vst [vmem:[%s917_s1 + $0x350] sm:$0xff] %v601_v6  ;;  %367 = vst [vmem:[%s917_s1 + $0x3d0] sm:$0xff] %v606_v7 }
  0x3d   :  { %374 = vst [vmem:[%s917_s1 + $0x358] sm:$0xff] %v601_v6  ;;  %375 = vst [vmem:[%s917_s1 + $0x3d8] sm:$0xff] %v606_v7 }
  0x3e   :  { %382 = vst [vmem:[%s917_s1 + $0x360] sm:$0xff] %v601_v6  ;;  %383 = vst [vmem:[%s917_s1 + $0x3e0] sm:$0xff] %v606_v7 }
  0x3f   :  { %390 = vst [vmem:[%s917_s1 + $0x368] sm:$0xff] %v601_v6  ;;  %391 = vst [vmem:[%s917_s1 + $0x3e8] sm:$0xff] %v606_v7 }
  0x40   :  { %398 = vst [vmem:[%s917_s1 + $0x370] sm:$0xff] %v601_v6  ;;  %399 = vst [vmem:[%s917_s1 + $0x3f0] sm:$0xff] %v606_v7 }
  0x41   :  { %406 = vst [vmem:[%s917_s1 + $0x378] sm:$0xff] %v601_v6  ;;  %407 = vst [vmem:[%s917_s1 + $0x3f8] sm:$0xff] %v606_v7 }

// kernel: attention_block.7
= control target key start
LH: loop header
LB: loop body
LE: loop exit
PB: predicated region body
PF: predicated region fallthrough
CT: control target
= control target key end

     0   :  { %v29_v3 = vlaneseq  ;;  %s442_s4 = inlined_call_operand.vmem [shape: f32[256,128], index: 4, kind: input, shape index: {}]   ;;  %s443_s0 = inlined_call_operand.vmem [shape: f32[16,256], index: 0, kind: input, shape index: {}]   ;;  %s444_s2 = inlined_call_operand.vmem [shape: f32[1,256], index: 2, kind: input, shape index: {}]   ;;  %s445_s3 = inlined_call_operand.vmem [shape: f32[1,256], index: 3, kind: input, shape index: {}]   ;;  %s446_s5 = inlined_call_operand.vmem [shape: f32[1,128], index: 5, kind: input, shape index: {}]   ;;  %s447_s1 = inlined_call_operand.vmem [shape: f32[16,128], index: 1, kind: input, shape index: {}]   ;;  %s448_s6 = inlined_call_operand.vmem [shape: f32[16,128], index: 6, kind: output, shape index: {}]  }
   0x1   :  { %v79_v0 = vld [vmem:[%s442_s4 + $0x80] sm:$0xff]  ;;  %v80_v1 = vld [vmem:[%s442_s4 + $0x88] sm:$0xff]  ;;  %v81_v6 = vld [vmem:[%s442_s4 + $0x90] sm:$0xff] }
   0x2   :  { %v63_v2 = vld [vmem:[%s442_s4] sm:$0xff]  ;;  %v226_v4 = vpack.c.bf16 %v80_v1, %v79_v0  ;;  %v64_v5 = vld [vmem:[%s442_s4 + $0x8] sm:$0xff]  ;;  %v82_v7 = vld [vmem:[%s442_s4 + $0x98] sm:$0xff]  ;;  %v339_v15 = vshrl.u32 %v29_v3, 7 }
   0x3   :  { %v228_v8 = vpack.c.bf16 %v64_v5, %v63_v2  ;;  %v230_v9 = vpack.c.bf16 %v82_v7, %v81_v6  ;;  %v65_v10 = vld [vmem:[%s442_s4 + $0x10] sm:$0xff]  ;;  %v66_v11 = vld [vmem:[%s442_s4 + $0x18] sm:$0xff]  ;;  %v83_v12 = vld [vmem:[%s442_s4 + $0xa0] sm:$0xff] }
   0x4   :  { %227 = vmatprep.subr.bf16.mxu0 %v226_v4  ;;  %258 = vmatprep.subr.bf16.mxu1 %v226_v4  ;;  %v84_v13 = vld [vmem:[%s442_s4 + $0xa8] sm:$0xff]  ;;  %v232_v14 = vpack.c.bf16 %v66_v11, %v65_v10  ;;  %v67_v17 = vld [vmem:[%s442_s4 + $0x20] sm:$0xff]  ;;  %v85_v19 = vld [vmem:[%s442_s4 + $0xb0] sm:$0xff]  ;;  %v35_v22 = vsub.s32 1, %v339_v15  ;;  %v31_v42 = vsub.s32 0, %v339_v15 }
   0x5   :  { %229 = vmatpush3.bf16.msra.mxu0 %v228_v8  ;;  %266 = vmatpush3.bf16.msra.mxu1 %v228_v8  ;;  %v234_v16 = vpack.c.bf16 %v84_v13, %v83_v12  ;;  %v68_v18 = vld [vmem:[%s442_s4 + $0x28] sm:$0xff]  ;;  %v86_v20 = vld [vmem:[%s442_s4 + $0xb8] sm:$0xff]  ;;  %v69_v24 = vld [vmem:[%s442_s4 + $0x30] sm:$0xff] }
   0x6   :  { %231 = vmatprep.subr.bf16.mxu0 %v230_v9  ;;  %259 = vmatprep.subr.bf16.mxu1 %v230_v9  ;;  %v236_v21 = vpack.c.bf16 %v68_v18, %v67_v17  ;;  %v238_v23 = vpack.c.bf16 %v86_v20, %v85_v19  ;;  %v70_v25 = vld [vmem:[%s442_s4 + $0x38] sm:$0xff]  ;;  %v87_v26 = vld [vmem:[%s442_s4 + $0xc0] sm:$0xff]  ;;  %v88_v27 = vld [vmem:[%s442_s4 + $0xc8] sm:$0xff] }
   0x7   :  { %v24_v28 = vld [vmem:[%s443_s0 + $0x8] sm:$0xff]  ;;  %v27_v29 = vld [vmem:[%s444_s2] sm:$0x3]  ;;  %v26_v31 = vld [vmem:[%s443_s0 + $0x18] sm:$0xff]  ;;  %v240_v32 = vpack.c.bf16 %v70_v25, %v69_v24  ;;  %v242_v34 = vpack.c.bf16 %v88_v27, %v87_v26 }
   0x8   :  { %v43_v30 = vld [vmem:[%s445_s3] sm:$0x3]  ;;  %v36_v33 = vrot.slane %v27_v29, %v35_v22  ;;  %v72_v36 = vld [vmem:[%s442_s4 + $0x48] sm:$0xff]  ;;  %v89_v38 = vld [vmem:[%s442_s4 + $0xd0] sm:$0xff]  ;;  %v32_v53 = vrot.slane %v27_v29, %v31_v42 }
   0x9   :  { %233 = vmatpush3.bf16.msra.mxu0 %v232_v14  ;;  %267 = vmatpush3.bf16.msra.mxu1 %v232_v14  ;;  %v71_v35 = vld [vmem:[%s442_s4 + $0x40] sm:$0xff]  ;;  %v52_v37 = vrot.slane %v43_v30, %v35_v22  ;;  %v90_v39 = vld [vmem:[%s442_s4 + $0xd8] sm:$0xff]  ;;  %v73_v47 = vld [vmem:[%s442_s4 + $0x50] sm:$0xff]  ;;  %v48_v62 = vrot.slane %v43_v30, %v31_v42 }
   0xa   :  { %235 = vmatprep.subr.bf16.mxu0 %v234_v16  ;;  %260 = vmatprep.subr.bf16.mxu1 %v234_v16  ;;  %v40_v40 = vmul.f32 %v36_v33, %v24_v28  ;;  %v42_v41 = vmul.f32 %v36_v33, %v26_v31  ;;  %v244_v43 = vpack.c.bf16 %v72_v36, %v71_v35  ;;  %v74_v48 = vld [vmem:[%s442_s4 + $0x58] sm:$0xff]  ;;  %v91_v49 = vld [vmem:[%s442_s4 + $0xe0] sm:$0xff]  ;;  %v92_v50 = vld [vmem:[%s442_s4 + $0xe8] sm:$0xff] }
   0xb   :  { %v246_v46 = vpack.c.bf16 %v90_v39, %v89_v38  ;;  %v248_v54 = vpack.c.bf16 %v74_v48, %v73_v47  ;;  %v23_v55 = vld [vmem:[%s443_s0] sm:$0xff]  ;;  %v25_v56 = vld [vmem:[%s443_s0 + $0x10] sm:$0xff]  ;;  %v250_v57 = vpack.c.bf16 %v92_v50, %v91_v49  ;;  %v76_v59 = vld [vmem:[%s442_s4 + $0x68] sm:$0xff] }
   0xc   :  { %v56_v44 = vadd.f32 %v52_v37, %v40_v40  ;;  %v58_v45 = vadd.f32 %v52_v37, %v42_v41  ;;  %v75_v58 = vld [vmem:[%s442_s4 + $0x60] sm:$0xff]  ;;  %v93_v60 = vld [vmem:[%s442_s4 + $0xf0] sm:$0xff]  ;;  %v94_v61 = vld [vmem:[%s442_s4 + $0xf8] sm:$0xff]  ;;  %v39_v63 = vmul.f32 %v32_v53, %v23_v55  ;;  %v41_v0 = vmul.f32 %v32_v53, %v25_v56 }
   0xd   :  { %237 = vmatpush3.bf16.msra.mxu0 %v236_v21  ;;  %268 = vmatpush3.bf16.msra.mxu1 %v236_v21  ;;  %v252_v1 = vpack.c.bf16 %v76_v59, %v75_v58  ;;  %v254_v2 = vpack.c.bf16 %v94_v61, %v93_v60  ;;  %v77_v3 = vld [vmem:[%s442_s4 + $0x70] sm:$0xff]  ;;  %v78_v4 = vld [vmem:[%s442_s4 + $0x78] sm:$0xff]  ;;  %v187_v12 = vld [vmem:[%s446_s5] ss:$0 sm:$0xff] }
   0xe   :  { %239 = vmatprep.subr.bf16.mxu0 %v238_v23  ;;  %261 = vmatprep.subr.bf16.mxu1 %v238_v23  ;;  %v60_v51 = vmax.f32 %v56_v44, 0.0  ;;  %v62_v52 = vmax.f32 %v58_v45, 0.0  ;;  %v55_v5 = vadd.f32 %v48_v62, %v39_v63  ;;  %v57_v6 = vadd.f32 %v48_v62, %v41_v0  ;;  %v177_v17 = vld [vmem:[%s447_s1] sm:$0xff]  ;;  %v178_v18 = vld [vmem:[%s447_s1 + $0x8] sm:$0xff] }
   0xf   :  { %v256_v7 = vpack.c.bf16 %v78_v4, %v77_v3 }
  0x10   :  { %166 = vmatprep.mubr.f32.mxu0 %v60_v51  ;;  %171 = vmatprep.mubr.f32.mxu1 %v62_v52  ;;  %v59_v8 = vmax.f32 %v55_v5, 0.0  ;;  %v61_v9 = vmax.f32 %v57_v6, 0.0 }
  0x11   :  { %241 = vmatpush3.bf16.msra.mxu0 %v240_v32  ;;  %269 = vmatpush3.bf16.msra.mxu1 %v240_v32 }
  0x12   :  { %243 = vmatprep.subr.bf16.mxu0 %v242_v34  ;;  %262 = vmatprep.subr.bf16.mxu1 %v242_v34 }
  0x15   :  { %245 = vmatpush3.bf16.msra.mxu0 %v244_v43  ;;  %270 = vmatpush3.bf16.msra.mxu1 %v244_v43 }
  0x16   :  { %247 = vmatprep.subr.bf16.mxu0 %v246_v46  ;;  %263 = vmatprep.subr.bf16.mxu1 %v246_v46 }
  0x19   :  { %249 = vmatpush3.bf16.msra.mxu0 %v248_v54  ;;  %271 = vmatpush3.bf16.msra.mxu1 %v248_v54 }
  0x1a   :  { %251 = vmatprep.subr.bf16.mxu0 %v250_v57  ;;  %264 = vmatprep.subr.bf16.mxu1 %v250_v57 }
  0x1d   :  { %253 = vmatpush3.bf16.msra.mxu0 %v252_v1  ;;  %272 = vmatpush3.bf16.msra.mxu1 %v252_v1 }
  0x1e   :  { %255 = vmatprep.subr.bf16.mxu0 %v254_v2  ;;  %265 = vmatprep.subr.bf16.mxu1 %v254_v2 }
  0x21   :  { %257 = vmatpush3.bf16.msra.mxu0 %v256_v7  ;;  %273 = vmatpush3.bf16.msra.mxu1 %v256_v7 }
  0x24   :  { %167 = vmatmul.mubr.f32.vlgmr.msra.gmra.mrb[0].mxu0 %v59_v8  ;;  %172 = vmatmul.mubr.f32.vlgmr.msra.gmra.mrb[0].mxu1 %v61_v9 }
  0xf7   :  { %v220_v10 = vpop.f32.mrb[0].mxu0  ;;  %v223_v11 = vpop.f32.mrb[0].mxu1 }
  0xf8   :  { %v221_v13 = vpop.f32.mrb[1].mxu0  ;;  %v224_v14 = vpop.f32.mrb[1].mxu1 }
  0xf9   :  { %v222_v15 = vadd.f32 %v221_v13, %v220_v10  ;;  %v225_v16 = vadd.f32 %v224_v14, %v223_v11 }
  0xfb   :  { %v169_v19 = vadd.f32 %v222_v15, %v187_v12  ;;  %v174_v20 = vadd.f32 %v225_v16, %v187_v12 }
  0xfd   :  { %v179_v21 = vmul.f32 %v177_v17, %v169_v19  ;;  %v180_v22 = vmul.f32 %v178_v18, %v174_v20 }
  0xff   :  { %181 = vst [vmem:[%s448_s6] sm:$0xff] %v179_v21  ;;  %182 = vst [vmem:[%s448_s6 + $0x8] sm:$0xff] %v180_v22 }

// kernel: attention_block.6
= control target key start
LH: loop header
LB: loop body
LE: loop exit
PB: predicated region body
PF: predicated region fallthrough
CT: control target
= control target key end

     0   :  { %s4056_s13 = smov 0   ;;  %s6248_s0 = inlined_call_operand.vmem [shape: f32[2,16,16,8], index: 0, kind: input, shape index: {}]   ;;  %s6249_s1 = inlined_call_operand.vmem [shape: f32[2,8,8,16], index: 1, kind: input, shape index: {}]   ;;  %s6250_s2 = inlined_call_operand.vmem [shape: f32[72,32], index: 2, kind: input, shape index: {}]   ;;  %s6251_s3 = inlined_call_operand.vmem [shape: f32[144,32], index: 3, kind: input, shape index: {}]   ;;  %s6252_s4 = inlined_call_operand.vmem [shape: f32[1,32], index: 4, kind: input, shape index: {}]   ;;  %s6253_s5 = inlined_call_operand.vmem [shape: f32[1,8], index: 5, kind: input, shape index: {}]   ;;  %s6254_s6 = inlined_call_operand.vmem [shape: f32[1,8], index: 6, kind: input, shape index: {}]   ;;  %s6255_s7 = inlined_call_operand.vmem [shape: f32[1,16], index: 7, kind: input, shape index: {}]   ;;  %s6256_s8 = inlined_call_operand.vmem [shape: f32[1,16], index: 8, kind: input, shape index: {}]   ;;  %s6257_s9 = inlined_call_operand.vmem [shape: f32[2,64,32], index: 9, kind: output, shape index: {0}]   ;;  %s6258_s10 = inlined_call_operand.vmem [shape: f32[2,2,32], index: 10, kind: output, shape index: {1}]  }
   0x1 LB: > { %s3431_s14 = sadd.s32 4294967295, %s3986_s13   ;;  %p3435_p0 = scmp.ge.s32.totalorder %s3986_s13, 1  ;;  %s3986_s13 = sphi %s4056_s13, %s21_s13  }
   0x2   : > { %p325_p1 = scmp.lt.s32.totalorder %s3986_s13, 3 }
   0x4   : > { %p326_p2 = pnand %p3435_p0, %p325_p1 }
   0x6   : > { %329 = sbr.rel (%p326_p2) target bundleno = 973 (0x3cd), region = 56 }
   0xd   : > { %vm391_vm0 = vcmask 64512   ;;  %vm394_vm1 = vcmask 58368   ;;  %v6259_v0 = vmov 0.0   ;;  %p372_p3 = scmp.lt.s32.totalorder %s3431_s14, 1  ;;  %vm622_vm2 = vcmask 130048   ;;  %s3989_s23 = smov 8  }
   0xe   : > { %392 = vst.msk [vmem:[#allocation2] sm:$0xff] %vm391_vm0, %v6259_v0  ;;  %393 = vst.msk [vmem:[#allocation2 + $0x8] sm:$0xff] %vm391_vm0, %v6259_v0  ;;  %v4202_v1 = vld [vmem:[%s6253_s5] ss:$0 sm:$0xff]  ;;  %s3990_s24 = smov 16   ;;  %s3991_s25 = smov 24  }
   0xf   : > { %396 = vst.msk [vmem:[#allocation2 + $0x18] sm:$0xff] %vm391_vm0, %v6259_v0  ;;  %397 = vst.msk [vmem:[#allocation2 + $0x20] sm:$0xff] %vm391_vm0, %v6259_v0  ;;  %s6435_s14 = smov (!%p372_p3, %s3431_s14), 1  ;;  %v4212_v2 = vld [vmem:[%s6254_s6] ss:$0 sm:$0xff]  ;;  %s3992_s26 = smov 32  }
  0x10   : > { %399 = vst.msk [vmem:[#allocation2 + $0x30] sm:$0xff] %vm391_vm0, %v6259_v0  ;;  %400 = vst.msk [vmem:[#allocation2 + $0x38] sm:$0xff] %vm391_vm0, %v6259_v0  ;;  %s3490_s15 = sshll.u32 %s6435_s14, 8  ;;  %s3993_s27 = smov 40   ;;  %vm1113_vm3 = vcmask 195584   ;;  %vm1122_vm4 = vcmask 261120  }
  0x11   : > { %402 = vst.msk [vmem:[#allocation2 + $0x48] sm:$0xff] %vm391_vm0, %v6259_v0  ;;  %403 = vst.msk [vmem:[#allocation2 + $0x50] sm:$0xff] %vm391_vm0, %v6259_v0  ;;  %s4207_s20 = scalar_lea.vmem %s6248_s0, %s3490_s15  ;;  %s3994_s28 = smov 48   ;;  %vm1131_vm5 = vcmask 326656   ;;  %vm1140_vm6 = vcmask 392192   ;;  %vm1149_vm7 = vcmask 457728  }
  0x12   : > { %405 = vst.msk [vmem:[#allocation2 + $0x60] sm:$0xff] %vm391_vm0, %v6259_v0  ;;  %406 = vst.msk [vmem:[#allocation2 + $0x68] sm:$0xff] %vm391_vm0, %v6259_v0  ;;  %v453_v3 = vld [vmem:[%s4207_s20 + $0x30] sm:$0xff]  ;;  %v454_v4 = vld [vmem:[%s4207_s20 + $0x38] sm:$0xff]  ;;  %s3995_s29 = smov 56   ;;  %s3996_s18 = smov 64  }
  0x13   : > { %408 = vst.msk [vmem:[#allocation2 + $0x78] sm:$0xff] %vm391_vm0, %v6259_v0  ;;  %409 = vst.msk [vmem:[#allocation2 + $0x80] sm:$0xff] %vm391_vm0, %v6259_v0  ;;  %v449_v5 = vld [vmem:[%s4207_s20 + $0x10] sm:$0xff]  ;;  %v492_v7 = vmul.f32 %v4202_v1, %v453_v3  ;;  %v493_v8 = vmul.f32 %v4202_v1, %v454_v4  ;;  %v450_v9 = vld [vmem:[%s4207_s20 + $0x18] sm:$0xff]  ;;  %vm1158_vm8 = vcmask 523264   ;;  %vm1176_vm9 = vcmask 588800  }
  0x14   : > { %411 = vst.msk [vmem:[#allocation2 + $0x90] sm:$0xff] %vm391_vm0, %v6259_v0  ;;  %412 = vst.msk [vmem:[#allocation2 + $0x98] sm:$0xff] %vm391_vm0, %v6259_v0  ;;  %v488_v10 = vmul.f32 %v4202_v1, %v449_v5  ;;  %v489_v11 = vmul.f32 %v4202_v1, %v450_v9  ;;  %v457_v12 = vld [vmem:[%s4207_s20 + $0x50] sm:$0xff]  ;;  %v458_v13 = vld [vmem:[%s4207_s20 + $0x58] sm:$0xff]  ;;  %s3491_s19 = sshll.u32 %s6435_s14, 6  ;;  %vm624_vm10 = vcmask 123904  }
  0x15   : > { %414 = vst.msk [vmem:[#allocation2 + $0xa8] sm:$0xff] %vm391_vm0, %v6259_v0  ;;  %415 = vst.msk [vmem:[#allocation2 + $0xb0] sm:$0xff] %vm391_vm0, %v6259_v0  ;;  %v715_v6 = vld [vmem:[#allocation2 + $0x1] ss:$2 sm:$0xff]  ;;  %v461_v14 = vld [vmem:[%s4207_s20 + $0x70] sm:$0xff]  ;;  %v531_v16 = vadd.f32 %v4212_v2, %v492_v7  ;;  %v532_v17 = vadd.f32 %v4212_v2, %v493_v8  ;;  %v496_v19 = vmul.f32 %v4202_v1, %v457_v12  ;;  %s4906_s22 = scalar_lea.vmem %s6249_s1, %s3491_s19  ;;  %s3999_s21 = smov 112  }
  0x16   : > { %417 = vst.msk [vmem:[#allocation2 + $0xc0] sm:$0xff] %vm391_vm0, %v6259_v0  ;;  %418 = vst.msk [vmem:[#allocation2 + $0xc8] sm:$0xff] %vm391_vm0, %v6259_v0  ;;  %849 = vrot.lane.b32.xlu0 %v715_v6, %s3989_s23  ;;  %v527_v18 = vadd.f32 %v4212_v2, %v488_v10  ;;  %v462_v20 = vld [vmem:[%s4207_s20 + $0x78] sm:$0xff]  ;;  %v528_v21 = vadd.f32 %v4212_v2, %v489_v11  ;;  %v497_v22 = vmul.f32 %v4202_v1, %v458_v13  ;;  %v465_v25 = vld [vmem:[%s4207_s20 + $0x90] sm:$0xff]  ;;  %s4000_s30 = smov 96   ;;  %vm2982_vm11 = vcmask 654336  }
  0x17   : > { %420 = vst.msk [vmem:[#allocation2 + $0xd8] sm:$0xff] %vm391_vm0, %v6259_v0  ;;  %421 = vst.msk [vmem:[#allocation2 + $0xe0] sm:$0xff] %vm391_vm0, %v6259_v0  ;;  %v500_v23 = vmul.f32 %v4202_v1, %v461_v14  ;;  %v501_v24 = vmul.f32 %v4202_v1, %v462_v20  ;;  %v466_v26 = vld [vmem:[%s4207_s20 + $0x98] sm:$0xff]  ;;  %v469_v27 = vld [vmem:[%s4207_s20 + $0xb0] sm:$0xff]  ;;  %v563_v28 = vmax.f32 %v531_v16, 0.0  ;;  %v564_v29 = vmax.f32 %v532_v17, 0.0 }
  0x18   : > { %423 = vst.msk [vmem:[#allocation2 + $0xf0] sm:$0xff] %vm391_vm0, %v6259_v0  ;;  %424 = vst.msk [vmem:[#allocation2 + $0xf8] sm:$0xff] %vm391_vm0, %v6259_v0  ;;  %v559_v30 = vmax.f32 %v527_v18, 0.0  ;;  %v535_v31 = vadd.f32 %v4212_v2, %v496_v19  ;;  %v470_v32 = vld [vmem:[%s4207_s20 + $0xb8] sm:$0xff]  ;;  %v560_v33 = vmax.f32 %v528_v21, 0.0  ;;  %v536_v34 = vadd.f32 %v4212_v2, %v497_v22  ;;  %v473_v37 = vld [vmem:[%s4207_s20 + $0xd0] sm:$0xff] }
  0x19   : > { %426 = vst.msk [vmem:[#allocation2 + $0x108] sm:$0xff] %vm391_vm0, %v6259_v0  ;;  %427 = vst.msk [vmem:[#allocation2 + $0x110] sm:$0xff] %vm391_vm0, %v6259_v0  ;;  %v539_v35 = vadd.f32 %v4212_v2, %v500_v23  ;;  %v540_v36 = vadd.f32 %v4212_v2, %v501_v24  ;;  %v504_v39 = vmul.f32 %v4202_v1, %v465_v25  ;;  %v474_v42 = vld [vmem:[%s4207_s20 + $0xd8] sm:$0xff]  ;;  %v447_v43 = vld [vmem:[%s4207_s20] sm:$0xff]  ;;  %vm2991_vm12 = vcmask 785408  }
  0x1a   : > { %429 = vst.msk [vmem:[#allocation2 + $0x120] sm:$0xff] %vm391_vm0, %v6259_v0  ;;  %430 = vst.msk [vmem:[#allocation2 + $0x128] sm:$0xff] %vm391_vm0, %v6259_v0  ;;  %v567_v38 = vmax.f32 %v535_v31, 0.0  ;;  %v505_v40 = vmul.f32 %v4202_v1, %v466_v26  ;;  %v508_v41 = vmul.f32 %v4202_v1, %v469_v27  ;;  %v448_v44 = vld [vmem:[%s4207_s20 + $0x8] sm:$0xff]  ;;  %v568_v45 = vmax.f32 %v536_v34, 0.0  ;;  %v455_v57 = vld [vmem:[%s4207_s20 + $0x40] sm:$0xff] }
  0x1b   : > { %432 = vst.msk [vmem:[#allocation2 + $0x138] sm:$0xff] %vm391_vm0, %v6259_v0  ;;  %433 = vst.msk [vmem:[#allocation2 + $0x140] sm:$0xff] %vm391_vm0, %v6259_v0  ;;  %v571_v46 = vmax.f32 %v539_v35, 0.0  ;;  %v572_v47 = vmax.f32 %v540_v36, 0.0  ;;  %v509_v48 = vmul.f32 %v4202_v1, %v470_v32  ;;  %v543_v49 = vadd.f32 %v4212_v2, %v504_v39  ;;  %v456_v58 = vld [vmem:[%s4207_s20 + $0x48] sm:$0xff]  ;;  %v451_v59 = vld [vmem:[%s4207_s20 + $0x20] sm:$0xff] }
  0x1c   : > { %435 = vst.msk [vmem:[#allocation2 + $0x150] sm:$0xff] %vm391_vm0, %v6259_v0  ;;  %436 = vst.msk [vmem:[#allocation2 + $0x158] sm:$0xff] %vm391_vm0, %v6259_v0  ;;  %v544_v50 = vadd.f32 %v4212_v2, %v505_v40  ;;  %v547_v51 = vadd.f32 %v4212_v2, %v508_v41  ;;  %v512_v52 = vmul.f32 %v4202_v1, %v473_v37  ;;  %v452_v3 = vld [vmem:[%s4207_s20 + $0x28] sm:$0xff]  ;;  %v463_v4 = vld [vmem:[%s4207_s20 + $0x80] sm:$0xff]  ;;  %vm3000_vm13 = vcmask 916480  }
  0x1d   : > { %438 = vst.msk [vmem:[#allocation2 + $0x168] sm:$0xff] %vm391_vm0, %v6259_v0  ;;  %439 = vst.msk [vmem:[#allocation2 + $0x170] sm:$0xff] %vm391_vm0, %v6259_v0  ;;  %v548_v53 = vadd.f32 %v4212_v2, %v509_v48  ;;  %v513_v54 = vmul.f32 %v4202_v1, %v474_v42  ;;  %v486_v55 = vmul.f32 %v4202_v1, %v447_v43  ;;  %v575_v60 = vmax.f32 %v543_v49, 0.0  ;;  %v464_v9 = vld [vmem:[%s4207_s20 + $0x88] sm:$0xff]  ;;  %v459_v14 = vld [vmem:[%s4207_s20 + $0x60] sm:$0xff] }
  0x1e   : > { %441 = vst.msk [vmem:[#allocation2 + $0x180] sm:$0xff] %vm391_vm0, %v6259_v0  ;;  %442 = vst.msk [vmem:[#allocation2 + $0x188] sm:$0xff] %vm391_vm0, %v6259_v0  ;;  %v487_v56 = vmul.f32 %v4202_v1, %v448_v44  ;;  %v576_v61 = vmax.f32 %v544_v50, 0.0  ;;  %v579_v62 = vmax.f32 %v547_v51, 0.0  ;;  %v551_v63 = vadd.f32 %v4212_v2, %v512_v52  ;;  %v460_v16 = vld [vmem:[%s4207_s20 + $0x68] sm:$0xff]  ;;  %v471_v17 = vld [vmem:[%s4207_s20 + $0xc0] sm:$0xff] }
  0x1f   : > { %444 = vst.msk [vmem:[#allocation2 + $0x198] sm:$0xff] %vm391_vm0, %v6259_v0  ;;  %445 = vst.msk [vmem:[#allocation2 + $0x1a0] sm:$0xff] %vm391_vm0, %v6259_v0  ;;  %v580_v5 = vmax.f32 %v548_v53, 0.0  ;;  %v552_v6 = vadd.f32 %v4212_v2, %v513_v54  ;;  %v525_v7 = vadd.f32 %v4212_v2, %v486_v55  ;;  %v494_v11 = vmul.f32 %v4202_v1, %v455_v57  ;;  %v472_v23 = vld [vmem:[%s4207_s20 + $0xc8] sm:$0xff]  ;;  %v467_v24 = vld [vmem:[%s4207_s20 + $0xa0] sm:$0xff] }
  0x20   : > { %395 = vst.msk [vmem:[#allocation2 + $0x10] sm:$0x3] %vm394_vm1, %v6259_v0  ;;  %398 = vst.msk [vmem:[#allocation2 + $0x28] sm:$0x3] %vm394_vm1, %v6259_v0  ;;  %v526_v8 = vadd.f32 %v4212_v2, %v487_v56  ;;  %v583_v10 = vmax.f32 %v551_v63, 0.0  ;;  %v495_v12 = vmul.f32 %v4202_v1, %v456_v58  ;;  %v490_v13 = vmul.f32 %v4202_v1, %v451_v59  ;;  %v468_v39 = vld [vmem:[%s4207_s20 + $0xa8] sm:$0xff] }
  0x21   : > { %401 = vst.msk [vmem:[#allocation2 + $0x40] sm:$0x3] %vm394_vm1, %v6259_v0  ;;  %404 = vst.msk [vmem:[#allocation2 + $0x58] sm:$0x3] %vm394_vm1, %v6259_v0  ;;  %v584_v19 = vmax.f32 %v552_v6, 0.0  ;;  %v557_v20 = vmax.f32 %v525_v7, 0.0  ;;  %v491_v21 = vmul.f32 %v4202_v1, %v452_v3  ;;  %v502_v22 = vmul.f32 %v4202_v1, %v463_v4 }
  0x22   : > { %407 = vst.msk [vmem:[#allocation2 + $0x70] sm:$0x3] %vm394_vm1, %v6259_v0  ;;  %410 = vst.msk [vmem:[#allocation2 + $0x88] sm:$0x3] %vm394_vm1, %v6259_v0  ;;  %v558_v26 = vmax.f32 %v526_v8, 0.0  ;;  %v533_v27 = vadd.f32 %v4212_v2, %v494_v11  ;;  %v503_v31 = vmul.f32 %v4202_v1, %v464_v9  ;;  %v499_v36 = vmul.f32 %v4202_v1, %v460_v16  ;;  %v477_v56 = vld [vmem:[%s4207_s20 + $0xf0] sm:$0xff] }
  0x23   : > { %413 = vst.msk [vmem:[#allocation2 + $0xa0] sm:$0x3] %vm394_vm1, %v6259_v0  ;;  %416 = vst.msk [vmem:[#allocation2 + $0xb8] sm:$0x3] %vm394_vm1, %v6259_v0  ;;  %v541_v32 = vadd.f32 %v4212_v2, %v502_v22  ;;  %v510_v37 = vmul.f32 %v4202_v1, %v471_v17  ;;  %v506_v40 = vmul.f32 %v4202_v1, %v467_v24  ;;  %vm3208_vm14 = vcmask 253952  }
  0x24   : > { %419 = vst.msk [vmem:[#allocation2 + $0xd0] sm:$0x3] %vm394_vm1, %v6259_v0  ;;  %422 = vst.msk [vmem:[#allocation2 + $0xe8] sm:$0x3] %vm394_vm1, %v6259_v0  ;;  %v565_v41 = vmax.f32 %v533_v27, 0.0  ;;  %v538_v50 = vadd.f32 %v4212_v2, %v499_v36  ;;  %v507_v54 = vmul.f32 %v4202_v1, %v468_v39  ;;  %v516_v9 = vmul.f32 %v4202_v1, %v477_v56 }
  0x25   : > { %425 = vst.msk [vmem:[#allocation2 + $0x100] sm:$0x3] %vm394_vm1, %v6259_v0  ;;  %428 = vst.msk [vmem:[#allocation2 + $0x118] sm:$0x3] %vm394_vm1, %v6259_v0  ;;  %v573_v48 = vmax.f32 %v541_v32, 0.0  ;;  %v549_v52 = vadd.f32 %v4212_v2, %v510_v37  ;;  %v545_v55 = vadd.f32 %v4212_v2, %v506_v40 }
  0x26   : > { %431 = vst.msk [vmem:[#allocation2 + $0x130] sm:$0x3] %vm394_vm1, %v6259_v0  ;;  %434 = vst.msk [vmem:[#allocation2 + $0x148] sm:$0x3] %vm394_vm1, %v6259_v0  ;;  %v570_v63 = vmax.f32 %v538_v50, 0.0  ;;  %v555_v17 = vadd.f32 %v4212_v2, %v516_v9 }
  0x27   : > { %437 = vst.msk [vmem:[#allocation2 + $0x160] sm:$0x3] %vm394_vm1, %v6259_v0  ;;  %440 = vst.msk [vmem:[#allocation2 + $0x178] sm:$0x3] %vm394_vm1, %v6259_v0  ;;  %v4226_v15 = vld [vmem:[#allocation2 + $0x2] ss:$2 sm:$0xff] }
  0x28   : > { %443 = vst.msk [vmem:[#allocation2 + $0x190] sm:$0x3] %vm394_vm1, %v6259_v0  ;;  %446 = vst.msk [vmem:[#allocation2 + $0x1a8] sm:$0x3] %vm394_vm1, %v6259_v0  ;;  %881 = vrot.lane.b32.xlu0 %v4226_v15, %s3990_s24  ;;  %v581_v3 = vmax.f32 %v549_v52, 0.0  ;;  %v577_v6 = vmax.f32 %v545_v55, 0.0 }
  0x29   : > { %623 = vst.msk [vmem:[#allocation3] sm:$0xff] %vm622_vm2, %v6259_v0  ;;  %626 = vst.msk [vmem:[#allocation3 + $0x10] sm:$0xff] %vm622_vm2, %v6259_v0 }
  0x2a   : > { %628 = vst.msk [vmem:[#allocation3 + $0x20] sm:$0xff] %vm622_vm2, %v6259_v0  ;;  %630 = vst.msk [vmem:[#allocation3 + $0x30] sm:$0xff] %vm622_vm2, %v6259_v0 }
  0x2b   : > { %632 = vst.msk [vmem:[#allocation3 + $0x40] sm:$0xff] %vm622_vm2, %v6259_v0  ;;  %634 = vst.msk [vmem:[#allocation3 + $0x50] sm:$0xff] %vm622_vm2, %v6259_v0 }
  0x2c   : > { %636 = vst.msk [vmem:[#allocation3 + $0x60] sm:$0xff] %vm622_vm2, %v6259_v0  ;;  %638 = vst.msk [vmem:[#allocation3 + $0x70] sm:$0xff] %vm622_vm2, %v6259_v0 }
  0x2d   : > { %640 = vst.msk [vmem:[#allocation3 + $0x80] sm:$0xff] %vm622_vm2, %v6259_v0  ;;  %642 = vst.msk [vmem:[#allocation3 + $0x90] sm:$0xff] %vm622_vm2, %v6259_v0 }
  0x2e   : > { %596 = vst.msk [vmem:[#allocation2 + $0x61] sm:$0xff] %vm391_vm0, %v563_v28  ;;  %597 = vst.msk [vmem:[#allocation2 + $0x69] sm:$0xff] %vm391_vm0, %v564_v29  ;;  %v534_v28 = vadd.f32 %v4212_v2, %v495_v12  ;;  %v529_v29 = vadd.f32 %v4212_v2, %v490_v13 }
  0x2f   : > { %592 = vst.msk [vmem:[#allocation2 + $0x31] sm:$0xff] %vm391_vm0, %v559_v30  ;;  %593 = vst.msk [vmem:[#allocation2 + $0x39] sm:$0xff] %vm391_vm0, %v560_v33  ;;  %v530_v30 = vadd.f32 %v4212_v2, %v491_v21  ;;  %v498_v33 = vmul.f32 %v4202_v1, %v459_v14 }
  0x30   : > { %600 = vst.msk [vmem:[#allocation2 + $0x91] sm:$0xff] %vm391_vm0, %v567_v38  ;;  %601 = vst.msk [vmem:[#allocation2 + $0x99] sm:$0xff] %vm391_vm0, %v568_v45  ;;  %v511_v38 = vmul.f32 %v4202_v1, %v472_v23  ;;  %v566_v42 = vmax.f32 %v534_v28, 0.0  ;;  %v561_v43 = vmax.f32 %v529_v29, 0.0  ;;  %v475_v45 = vld [vmem:[%s4207_s20 + $0xe0] sm:$0xff] }
  0x31   : > { %604 = vst.msk [vmem:[#allocation2 + $0xc1] sm:$0xff] %vm391_vm0, %v571_v46  ;;  %605 = vst.msk [vmem:[#allocation2 + $0xc9] sm:$0xff] %vm391_vm0, %v572_v47  ;;  %v562_v44 = vmax.f32 %v530_v30, 0.0  ;;  %v476_v46 = vld [vmem:[%s4207_s20 + $0xe8] sm:$0xff]  ;;  %v542_v47 = vadd.f32 %v4212_v2, %v503_v31  ;;  %v537_v49 = vadd.f32 %v4212_v2, %v498_v33 }
  0x32   : > { %608 = vst.msk [vmem:[#allocation2 + $0xf1] sm:$0xff] %vm391_vm0, %v575_v60  ;;  %609 = vst.msk [vmem:[#allocation2 + $0xf9] sm:$0xff] %vm391_vm0, %v576_v61  ;;  %v550_v53 = vadd.f32 %v4212_v2, %v511_v38  ;;  %v514_v60 = vmul.f32 %v4202_v1, %v475_v45  ;;  %v515_v61 = vmul.f32 %v4202_v1, %v476_v46 }
  0x33   : > { %612 = vst.msk [vmem:[#allocation2 + $0x121] sm:$0xff] %vm391_vm0, %v579_v62  ;;  %613 = vst.msk [vmem:[#allocation2 + $0x129] sm:$0xff] %vm391_vm0, %v580_v5  ;;  %v574_v58 = vmax.f32 %v542_v47, 0.0  ;;  %v569_v59 = vmax.f32 %v537_v49, 0.0  ;;  %v478_v62 = vld [vmem:[%s4207_s20 + $0xf8] sm:$0xff]  ;;  %v546_v5 = vadd.f32 %v4212_v2, %v507_v54  ;;  %v1168_v54 = vld [vmem:[%s6250_s2 + $0x8] sm:$0xff] }
  0x34   : > { %616 = vst.msk [vmem:[#allocation2 + $0x151] sm:$0xff] %vm391_vm0, %v583_v10  ;;  %617 = vst.msk [vmem:[#allocation2 + $0x159] sm:$0xff] %vm391_vm0, %v584_v19  ;;  %v582_v4 = vmax.f32 %v550_v53, 0.0  ;;  %v553_v7 = vadd.f32 %v4212_v2, %v514_v60  ;;  %v554_v8 = vadd.f32 %v4212_v2, %v515_v61  ;;  %v517_v12 = vmul.f32 %v4202_v1, %v478_v62  ;;  %v1167_v53 = vld [vmem:[%s6250_s2] sm:$0xff]  ;;  %s3998_s20 = smov 80  }
  0x35   : > { %v719_v18 = vld [vmem:[#allocation2 + $0x61] ss:$2 sm:$0xff]  ;;  %590 = vst.msk [vmem:[#allocation2 + $0x19] sm:$0xff] %vm391_vm0, %v557_v20  ;;  %591 = vst.msk [vmem:[#allocation2 + $0x21] sm:$0xff] %vm391_vm0, %v558_v26  ;;  %v578_v11 = vmax.f32 %v546_v5, 0.0  ;;  %v587_v20 = vmax.f32 %v555_v17, 0.0  ;;  %v4478_v56 = vpack.c.bf16 %v1168_v54, %v1167_v53 }
  0x36   : > { %853 = vrot.lane.b32.xlu1 %v719_v18, %s3989_s23  ;;  %v717_v25 = vld [vmem:[#allocation2 + $0x31] ss:$2 sm:$0xff]  ;;  %598 = vst.msk [vmem:[#allocation2 + $0x79] sm:$0xff] %vm391_vm0, %v565_v41  ;;  %599 = vst.msk [vmem:[#allocation2 + $0x81] sm:$0xff] %vm391_vm0, %v566_v42  ;;  %v4345_v13 = vld [vmem:[#allocation2 + $0x62] ss:$2 sm:$0xff]  ;;  %v556_v18 = vadd.f32 %v4212_v2, %v517_v12 }
  0x37   : > { %851 = vrot.lane.b32.xlu0 %v717_v25, %s3989_s23  ;;  %v721_v34 = vld [vmem:[#allocation2 + $0x91] ss:$2 sm:$0xff]  ;;  %594 = vst.msk [vmem:[#allocation2 + $0x49] sm:$0xff] %vm391_vm0, %v561_v43  ;;  %595 = vst.msk [vmem:[#allocation2 + $0x51] sm:$0xff] %vm391_vm0, %v562_v44  ;;  %v585_v14 = vmax.f32 %v553_v7, 0.0  ;;  %v586_v16 = vmax.f32 %v554_v8, 0.0  ;;  %3682 = vmatprep.subr.bf16.mxu1 %v4478_v56 }
  0x38   : > { %v723_v35 = vld [vmem:[#allocation2 + $0xc1] ss:$2 sm:$0xff]  ;;  %606 = vst.msk [vmem:[#allocation2 + $0xd9] sm:$0xff] %vm391_vm0, %v573_v48  ;;  %607 = vst.msk [vmem:[#allocation2 + $0xe1] sm:$0xff] %vm391_vm0, %v574_v58  ;;  %v4356_v1 = vld [vmem:[#allocation2 + $0x32] ss:$2 sm:$0xff]  ;;  %3714 = vmatprep.subr.bf16.mxu0 %v4478_v56  ;;  %3684 = vmatpush3.bf16.msra.mxu1 %v4478_v56 }
  0x39   : > { %v725_v51 = vld [vmem:[#allocation2 + $0xf1] ss:$2 sm:$0xff]  ;;  %602 = vst.msk [vmem:[#allocation2 + $0xa9] sm:$0xff] %vm391_vm0, %v569_v59  ;;  %603 = vst.msk [vmem:[#allocation2 + $0xb1] sm:$0xff] %vm391_vm0, %v570_v63  ;;  %v4358_v19 = vld [vmem:[#allocation2 + $0xc2] ss:$2 sm:$0xff]  ;;  %3716 = vmatpush3.bf16.msra.mxu0 %v4478_v56 }
  0x3a   : > { %855 = vrot.lane.b32.xlu1 %v721_v34, %s3989_s23  ;;  %v727_v57 = vld [vmem:[#allocation2 + $0x121] ss:$2 sm:$0xff]  ;;  %614 = vst.msk [vmem:[#allocation2 + $0x139] sm:$0xff] %vm391_vm0, %v581_v3  ;;  %615 = vst.msk [vmem:[#allocation2 + $0x141] sm:$0xff] %vm391_vm0, %v582_v4  ;;  %v588_v21 = vmax.f32 %v556_v18, 0.0  ;;  %v1169_v58 = vld [vmem:[%s6250_s2 + $0x10] sm:$0xff] }
  0x3b   : > { %857 = vrot.lane.b32.xlu0 %v723_v35, %s3989_s23  ;;  %v729_v10 = vld [vmem:[#allocation2 + $0x151] ss:$2 sm:$0xff]  ;;  %610 = vst.msk [vmem:[#allocation2 + $0x109] sm:$0xff] %vm391_vm0, %v577_v6  ;;  %611 = vst.msk [vmem:[#allocation2 + $0x111] sm:$0xff] %vm391_vm0, %v578_v11  ;;  %v4366_v2 = vld [vmem:[#allocation2 + $0x92] ss:$2 sm:$0xff] }
  0x3c   : > { %618 = vst.msk [vmem:[#allocation2 + $0x169] sm:$0xff] %vm391_vm0, %v585_v14  ;;  %619 = vst.msk [vmem:[#allocation2 + $0x171] sm:$0xff] %vm391_vm0, %v586_v16  ;;  %v4368_v22 = vld [vmem:[#allocation2 + $0x122] ss:$2 sm:$0xff]  ;;  %v4374_v23 = vld [vmem:[#allocation2 + $0xf2] ss:$2 sm:$0xff] }
  0x3d   : > { %620 = vst.msk [vmem:[#allocation2 + $0x181] sm:$0xff] %vm391_vm0, %v587_v20  ;;  %621 = vst.msk [vmem:[#allocation2 + $0x189] sm:$0xff] %vm391_vm0, %v588_v21  ;;  %v746_v24 = vld [vmem:[#allocation2 + $0x18] ss:$2 sm:$0xff]  ;;  %v4388_v32 = vld [vmem:[#allocation2 + $0x19] ss:$2 sm:$0xff] }
  0x3e   : > { %859 = vrot.lane.b32.xlu1 %v725_v51, %s3989_s23  ;;  %v4379_v25 = vld [vmem:[#allocation2 + $0x152] ss:$2 sm:$0xff]  ;;  %6317 = vst [vmem:[#allocation4_spill] sm:$0xff] %v4388_v32  ;;  %v4393_v34 = vld [vmem:[#allocation2 + $0x79] ss:$2 sm:$0xff]  ;;  %v1172_v3 = vld [vmem:[%s6250_s2 + $0x28] sm:$0xff] }
  0x3f   : > { %861 = vrot.lane.b32.xlu0 %v727_v57, %s3989_s23  ;;  %v750_v26 = vld [vmem:[#allocation2 + $0x78] ss:$2 sm:$0xff]  ;;  %v748_v27 = vld [vmem:[#allocation2 + $0x48] ss:$2 sm:$0xff]  ;;  %6318 = vst [vmem:[#allocation5_spill] sm:$0xff] %v4393_v34 }
  0x40   : > { %v754_v28 = vld [vmem:[#allocation2 + $0xd8] ss:$2 sm:$0xff]  ;;  %v752_v29 = vld [vmem:[#allocation2 + $0xa8] ss:$2 sm:$0xff]  ;;  %v4398_v35 = vld [vmem:[#allocation2 + $0x49] ss:$2 sm:$0xff] }
  0x41   : > { %v758_v30 = vld [vmem:[#allocation2 + $0x138] ss:$2 sm:$0xff]  ;;  %6319 = vst [vmem:[#allocation6_spill] sm:$0xff] %v4398_v35  ;;  %v4400_v36 = vld [vmem:[#allocation2 + $0xd9] ss:$2 sm:$0xff]  ;;  %v1173_v7 = vld [vmem:[%s6250_s2 + $0x30] sm:$0xff] }
  0x42   : > { %863 = vrot.lane.b32.xlu1 %v729_v10, %s3989_s23  ;;  %v756_v31 = vld [vmem:[#allocation2 + $0x108] ss:$2 sm:$0xff]  ;;  %6320 = vst [vmem:[#allocation7_spill] sm:$0xff] %v4400_v36  ;;  %v4406_v37 = vld [vmem:[#allocation2 + $0xa9] ss:$2 sm:$0xff]  ;;  %v1170_v59 = vld [vmem:[%s6250_s2 + $0x18] sm:$0xff] }
  0x43   : > { %885 = vrot.lane.b32.xlu0 %v4345_v13, %s3990_s24  ;;  %v760_v33 = vld [vmem:[#allocation2 + $0x168] ss:$2 sm:$0xff]  ;;  %6321 = vst [vmem:[#allocation8_spill] sm:$0xff] %v4406_v37  ;;  %v4408_v38 = vld [vmem:[#allocation2 + $0x139] ss:$2 sm:$0xff]  ;;  %v4497_v61 = vpack.c.bf16 %v1170_v59, %v1169_v58 }
  0x44   : > { %6322 = vst [vmem:[#allocation9_spill] sm:$0xff] %v4408_v38  ;;  %v4414_v39 = vld [vmem:[#allocation2 + $0x109] ss:$2 sm:$0xff]  ;;  %v4416_v40 = vld [vmem:[#allocation2 + $0x1a] ss:$2 sm:$0xff] }
  0x45   : > { %6323 = vst [vmem:[#allocation10_spill] sm:$0xff] %v4414_v39  ;;  %6324 = vst [vmem:[#allocation11_spill] sm:$0xff] %v4416_v40  ;;  %v4422_v41 = vld [vmem:[#allocation2 + $0x169] ss:$2 sm:$0xff]  ;;  %v4424_v42 = vld [vmem:[#allocation2 + $0x7a] ss:$2 sm:$0xff]  ;;  %3686 = vmatprep.subr.bf16.mxu1 %v4497_v61  ;;  %3718 = vmatprep.subr.bf16.mxu0 %v4497_v61 }
  0x46   : > { %883 = vrot.lane.b32.xlu1 %v4356_v1, %s3990_s24  ;;  %6325 = vst [vmem:[#allocation12_spill] sm:$0xff] %v4422_v41  ;;  %6326 = vst [vmem:[#allocation13_spill] sm:$0xff] %v4424_v42  ;;  %v4430_v43 = vld [vmem:[#allocation2 + $0x4a] ss:$2 sm:$0xff]  ;;  %v4432_v44 = vld [vmem:[#allocation2 + $0xda] ss:$2 sm:$0xff]  ;;  %3688 = vmatpush3.bf16.msra.mxu1 %v4497_v61 }
  0x47   : > { %889 = vrot.lane.b32.xlu0 %v4358_v19, %s3990_s24  ;;  %6327 = vst [vmem:[#allocation14_spill] sm:$0xff] %v4430_v43  ;;  %6328 = vst [vmem:[#allocation15_spill] sm:$0xff] %v4432_v44  ;;  %v4438_v45 = vld [vmem:[#allocation2 + $0xaa] ss:$2 sm:$0xff]  ;;  %v4440_v46 = vld [vmem:[#allocation2 + $0x13a] ss:$2 sm:$0xff]  ;;  %3720 = vmatpush3.bf16.msra.mxu0 %v4497_v61 }
  0x48   : > { %6329 = vst [vmem:[#allocation16_spill] sm:$0xff] %v4438_v45  ;;  %6330 = vst [vmem:[#allocation17_spill] sm:$0xff] %v4440_v46  ;;  %v4446_v47 = vld [vmem:[#allocation2 + $0x10a] ss:$2 sm:$0xff]  ;;  %v4500_v62 = vld [vmem:[#allocation2 + $0x31] ss:$2 sm:$0xff] }
  0x49   : > { %6331 = vst [vmem:[#allocation18_spill] sm:$0xff] %v4446_v47  ;;  %v4448_v48 = vld [vmem:[#allocation2 + $0x30] ss:$2 sm:$0xff]  ;;  %v4462_v51 = vld [vmem:[#allocation2 + $0x60] ss:$2 sm:$0xff]  ;;  %6340 = vst [vmem:[#allocation27_spill] sm:$0xff] %v4500_v62 }
  0x4a   : > { %887 = vrot.lane.b32.xlu1 %v4366_v2, %s3990_s24  ;;  %6332 = vst [vmem:[#allocation19_spill] sm:$0xff] %v4448_v48  ;;  %v4454_v49 = vld [vmem:[#allocation2 + $0x16a] ss:$2 sm:$0xff]  ;;  %6335 = vst [vmem:[#allocation22_spill] sm:$0xff] %v4462_v51  ;;  %v1171_v63 = vld [vmem:[%s6250_s2 + $0x20] sm:$0xff] }
  0x4b   : > { %893 = vrot.lane.b32.xlu0 %v4368_v22, %s3990_s24  ;;  %6333 = vst [vmem:[#allocation20_spill] sm:$0xff] %v4454_v49  ;;  %v4456_v50 = vld [vmem:[#allocation2 + $0x90] ss:$2 sm:$0xff]  ;;  %v4476_v55 = vld [vmem:[#allocation2 + $0xc0] ss:$2 sm:$0xff]  ;;  %v4517_v5 = vpack.c.bf16 %v1172_v3, %v1171_v63 }
  0x4c   : > { %6334 = vst [vmem:[#allocation21_spill] sm:$0xff] %v4456_v50  ;;  %v4464_v52 = vld [vmem:[#allocation2 + $0xf0] ss:$2 sm:$0xff]  ;;  %6337 = vst [vmem:[#allocation24_spill] sm:$0xff] %v4476_v55  ;;  %v4495_v60 = vld [vmem:[#allocation2 + $0x120] ss:$2 sm:$0xff] }
  0x4d   : > { %6336 = vst [vmem:[#allocation23_spill] sm:$0xff] %v4464_v52  ;;  %v4480_v57 = vld [vmem:[#allocation2 + $0x150] ss:$2 sm:$0xff]  ;;  %6339 = vst [vmem:[#allocation26_spill] sm:$0xff] %v4495_v60  ;;  %v4515_v4 = vld [vmem:[#allocation2 + $0x180] ss:$2 sm:$0xff]  ;;  %3690 = vmatprep.subr.bf16.mxu1 %v4517_v5  ;;  %3722 = vmatprep.subr.bf16.mxu0 %v4517_v5 }
  0x4e   : > { %891 = vrot.lane.b32.xlu1 %v4374_v23, %s3990_s24  ;;  %6338 = vst [vmem:[#allocation25_spill] sm:$0xff] %v4480_v57  ;;  %6341 = vst [vmem:[#allocation28_spill] sm:$0xff] %v4515_v4  ;;  %v4520_v6 = vld [vmem:[#allocation2 + $0x91] ss:$2 sm:$0xff]  ;;  %3692 = vmatpush3.bf16.msra.mxu1 %v4517_v5  ;;  %v4535_v9 = vld [vmem:[#allocation2 + $0x61] ss:$2 sm:$0xff] }
  0x4f   : > { %913 = vrot.lane.b32.xlu0 %v746_v24, %s3991_s25  ;;  %6342 = vst [vmem:[#allocation29_spill] sm:$0xff] %v4517_v5  ;;  %6343 = vst [vmem:[#allocation30_spill] sm:$0xff] %v4520_v6  ;;  %v1174_v8 = vld [vmem:[%s6250_s2 + $0x38] sm:$0xff]  ;;  %3724 = vmatpush3.bf16.msra.mxu0 %v4517_v5  ;;  %v4549_v12 = vld [vmem:[#allocation2 + $0xc1] ss:$2 sm:$0xff] }
  0x50   : > { %6344 = vst [vmem:[#allocation31_spill] sm:$0xff] %v4535_v9  ;;  %v4537_v10 = vpack.c.bf16 %v1174_v8, %v1173_v7  ;;  %v4540_v11 = vld [vmem:[#allocation2 + $0xf1] ss:$2 sm:$0xff]  ;;  %6347 = vst [vmem:[#allocation34_spill] sm:$0xff] %v4549_v12  ;;  %v4554_v14 = vld [vmem:[%s6250_s2 + $0x40] sm:$0xff] }
  0x51   : > { %6346 = vst [vmem:[#allocation33_spill] sm:$0xff] %v4540_v11  ;;  %6348 = vst [vmem:[#allocation35_spill] sm:$0xff] %v4554_v14  ;;  %v4557_v16 = vld [vmem:[#allocation2 + $0x151] ss:$2 sm:$0xff]  ;;  %v4566_v17 = vld [vmem:[#allocation2 + $0x121] ss:$2 sm:$0xff] }
  0x52   : > { %895 = vrot.lane.b32.xlu1 %v4379_v25, %s3990_s24  ;;  %6345 = vst [vmem:[#allocation32_spill] sm:$0xff] %v4537_v10  ;;  %3694 = vmatprep.subr.bf16.mxu1 %v4537_v10  ;;  %6349 = vst [vmem:[#allocation36_spill] sm:$0xff] %v4557_v16  ;;  %v4569_v18 = vld [vmem:[#allocation2 + $0x32] ss:$2 sm:$0xff]  ;;  %v4578_v21 = vld [vmem:[#allocation2 + $0x181] ss:$2 sm:$0xff] }
  0x53   : > { %917 = vrot.lane.b32.xlu0 %v750_v26, %s3991_s25  ;;  %3726 = vmatprep.subr.bf16.mxu0 %v4537_v10  ;;  %6350 = vst [vmem:[#allocation37_spill] sm:$0xff] %v4566_v17  ;;  %6351 = vst [vmem:[#allocation38_spill] sm:$0xff] %v4569_v18  ;;  %v4580_v24 = vld [vmem:[#allocation2 + $0x92] ss:$2 sm:$0xff]  ;;  %v4608_v53 = vld [vmem:[#allocation2 + $0x122] ss:$2 sm:$0xff] }
  0x54   : > { %3696 = vmatpush3.bf16.msra.mxu1 %v4537_v10  ;;  %3728 = vmatpush3.bf16.msra.mxu0 %v4537_v10  ;;  %6352 = vst [vmem:[#allocation39_spill] sm:$0xff] %v4608_v53  ;;  %v4618_v59 = vld [vmem:[#allocation2 + $0x182] ss:$2 sm:$0xff]  ;;  %v1331_v5 = vld [vmem:[#allocation2 + $0xdb] ss:$2 sm:$0xff] }
  0x55   : > { %3577 = vmatprep.subr.mxu1 %v4554_v14  ;;  %3637 = vmatprep.subr.mxu0 %v4554_v14  ;;  %6353 = vst [vmem:[#allocation40_spill] sm:$0xff] %v4618_v59 }
  0x56   : > { %915 = vrot.lane.b32.xlu1 %v748_v27, %s3991_s25  ;;  %v4588_v27 = vld [vmem:[#allocation2 + $0x62] ss:$2 sm:$0xff] }
  0x57   : > { %921 = vrot.lane.b32.xlu0 %v754_v28, %s3991_s25  ;;  %v4590_v28 = vld [vmem:[#allocation2 + $0xf2] ss:$2 sm:$0xff] }
  0x58   : > { %3578 = vmatpush3.msra.mxu1 %v4554_v14  ;;  %3638 = vmatpush3.msra.mxu0 %v4554_v14 }
  0x59   : > { %3698 = vmatprep.subr.bf16.mxu1 %v4478_v56 }
  0x5a   : > { %919 = vrot.lane.b32.xlu1 %v752_v29, %s3991_s25  ;;  %v4596_v29 = vld [vmem:[#allocation2 + $0xc2] ss:$2 sm:$0xff] }
  0x5b   : > { %925 = vrot.lane.b32.xlu0 %v758_v30, %s3991_s25 }
  0x5e   : > { %923 = vrot.lane.b32.xlu1 %v756_v31, %s3991_s25  ;;  %v4600_v31 = vld [vmem:[#allocation2 + $0x152] ss:$2 sm:$0xff] }
  0x5f   : > { %945 = vrot.lane.b32.xlu0 %v4388_v32, %s3992_s26 }
  0x62   : > { %927 = vrot.lane.b32.xlu1 %v760_v33, %s3991_s25 }
  0x63   : > { %949 = vrot.lane.b32.xlu0 %v4393_v34, %s3992_s26 }
  0x66   : > { %947 = vrot.lane.b32.xlu1 %v4398_v35, %s3992_s26 }
  0x67   : > { %953 = vrot.lane.b32.xlu0 %v4400_v36, %s3992_s26 }
  0x6a   : > { %951 = vrot.lane.b32.xlu1 %v4406_v37, %s3992_s26 }
  0x6b   : > { %957 = vrot.lane.b32.xlu0 %v4408_v38, %s3992_s26 }
  0x6e   : > { %955 = vrot.lane.b32.xlu1 %v4414_v39, %s3992_s26 }
  0x6f   : > { %977 = vrot.lane.b32.xlu0 %v4416_v40, %s3993_s27 }
  0x72   : > { %959 = vrot.lane.b32.xlu1 %v4422_v41, %s3992_s26 }
  0x73   : > { %981 = vrot.lane.b32.xlu0 %v4424_v42, %s3993_s27 }
  0x76   : > { %979 = vrot.lane.b32.xlu1 %v4430_v43, %s3993_s27 }
  0x77   : > { %985 = vrot.lane.b32.xlu0 %v4432_v44, %s3993_s27 }
  0x7a   : > { %983 = vrot.lane.b32.xlu1 %v4438_v45, %s3993_s27 }
  0x7b   : > { %989 = vrot.lane.b32.xlu0 %v4440_v46, %s3993_s27 }
  0x7e   : > { %987 = vrot.lane.b32.xlu1 %v4446_v47, %s3993_s27 }
  0x7f   : > { %1009 = vrot.lane.b32.xlu0 %v4448_v48, %s3994_s28 }
  0x82   : > { %991 = vrot.lane.b32.xlu1 %v4454_v49, %s3993_s27 }
  0x83   : > { %1013 = vrot.lane.b32.xlu0 %v4456_v50, %s3994_s28  ;;  %v1319_v50 = vld [vmem:[#allocation2 + $0x123] ss:$2 sm:$0xff] }
  0x86   : > { %1011 = vrot.lane.b32.xlu1 %v4462_v51, %s3994_s28 }
  0x87   : > { %1017 = vrot.lane.b32.xlu0 %v4464_v52, %s3994_s28  ;;  %v1315_v52 = vld [vmem:[#allocation2 + $0xc3] ss:$2 sm:$0xff] }
  0x88   : > { %v4572_v20 = vpop.permute.xlu0 %849 }
  0x8a   : > { %1015 = vrot.lane.b32.xlu1 %v4476_v55, %s3994_s28 }
  0x8b   : > { %1021 = vrot.lane.b32.xlu0 %v4480_v57, %s3994_s28 }
  0x8e   : > { %1019 = vrot.lane.b32.xlu1 %v4495_v60, %s3994_s28 }
  0x8f   : > { %1041 = vrot.lane.b32.xlu0 %v4500_v62, %s3995_s29 }
  0x92   : > { %1023 = vrot.lane.b32.xlu1 %v4515_v4, %s3994_s28  ;;  %v1307_v4 = vld [vmem:[#allocation2 + $0x3] ss:$2 sm:$0xff] }
  0x93   : > { %1045 = vrot.lane.b32.xlu0 %v4520_v6, %s3995_s29 }
  0x96   : > { %1043 = vrot.lane.b32.xlu1 %v4535_v9, %s3995_s29 }
  0x97   : > { %1049 = vrot.lane.b32.xlu0 %v4540_v11, %s3995_s29 }
  0x9a   : > { %1047 = vrot.lane.b32.xlu1 %v4549_v12, %s3995_s29  ;;  %v4586_v26 = vpop.permute.xlu0 %881 }
  0x9b   : > { %1053 = vrot.lane.b32.xlu0 %v4557_v16, %s3995_s29 }
  0x9e   : > { %1051 = vrot.lane.b32.xlu1 %v4566_v17, %s3995_s29 }
  0x9f   : > { %1073 = vrot.lane.b32.xlu0 %v4569_v18, %s3996_s18 }
  0xa2   : > { %1055 = vrot.lane.b32.xlu1 %v4578_v21, %s3995_s29 }
  0xa3   : > { %1077 = vrot.lane.b32.xlu0 %v4580_v24, %s3996_s18 }
  0xa6   : > { %1075 = vrot.lane.b32.xlu1 %v4588_v27, %s3996_s18 }
  0xa7   : > { %1081 = vrot.lane.b32.xlu0 %v4590_v28, %s3996_s18 }
  0xa8   : > { %v4598_v30 = vpop.permute.xlu1 %853 }
  0xa9   : > { %v4602_v33 = vpop.permute.xlu0 %851 }
  0xaa   : > { %1079 = vrot.lane.b32.xlu1 %v4596_v29, %s3996_s18 }
  0xab   : > { %1085 = vrot.lane.b32.xlu0 %v4600_v31, %s3996_s18 }
  0xac   : > { %v4610_v54 = vpop.permute.xlu1 %855 }
  0xad   : > { %v4612_v58 = vpop.permute.xlu0 %857 }
  0xae   : > { %1083 = vrot.lane.b32.xlu1 %v4608_v53, %s3996_s18  ;;  %v699_v53 = vld [vmem:[#allocation2] ss:$2 sm:$0xff] }
  0xaf   : > { %1354 = vrot.lane.b32.xlu0 %v4226_v15, %s3989_s23 }
  0xb0   : > { %v4620_v63 = vpop.permute.xlu1 %859 }
  0xb1   : > { %v4622_v3 = vpop.permute.xlu0 %861 }
  0xb2   : > { %1087 = vrot.lane.b32.xlu1 %v4618_v59, %s3996_s18 }
  0xb3   : > { %1358 = vrot.lane.b32.xlu0 %v4345_v13, %s3989_s23 }
  0xb4   : > { %v4628_v7 = vpop.permute.xlu1 %863 }
  0xb5   : > { %v4630_v8 = vpop.permute.xlu0 %885 }
  0xb6   : > { %1356 = vrot.lane.b32.xlu1 %v4356_v1, %s3989_s23 }
  0xb7   : > { %1362 = vrot.lane.b32.xlu0 %v4358_v19, %s3989_s23  ;;  %v1311_v19 = vld [vmem:[#allocation2 + $0x63] ss:$2 sm:$0xff] }
  0xb8   : > { %v4636_v15 = vpop.permute.xlu1 %883 }
  0xb9   : > { %v4638_v0 = vpop.permute.xlu0 %889 }
  0xba   : > { %1360 = vrot.lane.b32.xlu1 %v4366_v2, %s3989_s23  ;;  %v1309_v2 = vld [vmem:[#allocation2 + $0x33] ss:$2 sm:$0xff] }
  0xbb   : > { %1366 = vrot.lane.b32.xlu0 %v4368_v22, %s3989_s23 }
  0xbc   : > { %v4644_v13 = vpop.permute.xlu1 %887 }
  0xbd   : > { %v4646_v57 = vpop.permute.xlu0 %893 }
  0xbe   : > { %1364 = vrot.lane.b32.xlu1 %v4374_v23, %s3989_s23  ;;  %v1313_v23 = vld [vmem:[#allocation2 + $0x93] ss:$2 sm:$0xff] }
  0xbf   : > { %1386 = vrot.lane.b32.xlu0 %v1307_v4, %s3990_s24 }
  0xc0   : > { %v4651_v1 = vpop.permute.xlu1 %891 }
  0xc1   : > { %v4653_v60 = vpop.permute.xlu0 %913 }
  0xc2   : > { %1368 = vrot.lane.b32.xlu1 %v4379_v25, %s3989_s23  ;;  %v1317_v25 = vld [vmem:[#allocation2 + $0xf3] ss:$2 sm:$0xff] }
  0xc3   : > { %1390 = vrot.lane.b32.xlu0 %v1311_v19, %s3990_s24 }
  0xc4   : > { %v4658_v22 = vpop.permute.xlu1 %895 }
  0xc5   : > { %6354 = vst [vmem:[#allocation41_spill] sm:$0xff] %v4658_v22  ;;  %v4660_v55 = vpop.permute.xlu0 %917 }
  0xc6   : > { %1388 = vrot.lane.b32.xlu1 %v1309_v2, %s3990_s24 }
  0xc7   : > { %1394 = vrot.lane.b32.xlu0 %v1315_v52, %s3990_s24  ;;  %v1321_v52 = vld [vmem:[#allocation2 + $0x153] ss:$2 sm:$0xff] }
  0xc8   : > { %v4664_v4 = vpop.permute.xlu1 %915 }
  0xc9   : > { %v4666_v48 = vpop.permute.xlu0 %921 }
  0xca   : > { %1392 = vrot.lane.b32.xlu1 %v1313_v23, %s3990_s24 }
  0xcb   : > { %1398 = vrot.lane.b32.xlu0 %v1319_v50, %s3990_s24 }
  0xcc   : > { %v4670_v19 = vpop.permute.xlu1 %919 }
  0xcd   : > { %v4672_v51 = vpop.permute.xlu0 %925 }
  0xce   : > { %1396 = vrot.lane.b32.xlu1 %v1317_v25, %s3990_s24 }
  0xcf   : > { %1410 = vrot.lane.b32.xlu0 %v4388_v32, %s3991_s25 }
  0xd0   : > { %v4677_v2 = vpop.permute.xlu1 %923 }
  0xd1   : > { %v4679_v14 = vpop.permute.xlu0 %945 }
  0xd2   : > { %1400 = vrot.lane.b32.xlu1 %v1321_v52, %s3990_s24 }
  0xd3   : > { %1414 = vrot.lane.b32.xlu0 %v4393_v34, %s3991_s25 }
  0xd4   : > { %v4684_v50 = vpop.permute.xlu1 %927 }
  0xd5   : > { %6355 = vst [vmem:[#allocation42_spill] sm:$0xff] %v4684_v50  ;;  %v4686_v23 = vpop.permute.xlu0 %949  ;;  %v1335_v50 = vld [vmem:[#allocation2 + $0x13b] ss:$2 sm:$0xff] }
  0xd6   : > { %1412 = vrot.lane.b32.xlu1 %v4398_v35, %s3991_s25 }
  0xd7   : > { %1418 = vrot.lane.b32.xlu0 %v4400_v36, %s3991_s25 }
  0xd8   : > { %v4692_v25 = vpop.permute.xlu1 %947 }
  0xd9   : > { %v4694_v32 = vpop.permute.xlu0 %953 }
  0xda   : > { %1416 = vrot.lane.b32.xlu1 %v4406_v37, %s3991_s25 }
  0xdb   : > { %1422 = vrot.lane.b32.xlu0 %v4408_v38, %s3991_s25 }
  0xdc   : > { %v4700_v52 = vpop.permute.xlu1 %951 }
  0xdd   : > { %v4702_v34 = vpop.permute.xlu0 %957 }
  0xde   : > { %1420 = vrot.lane.b32.xlu1 %v4414_v39, %s3991_s25 }
  0xdf   : > { %1434 = vrot.lane.b32.xlu0 %v4416_v40, %s3992_s26 }
  0xe0   : > { %v4708_v36 = vpop.permute.xlu1 %955 }
  0xe1   : > { %v4710_v35 = vpop.permute.xlu0 %977 }
  0xe2   : > { %1424 = vrot.lane.b32.xlu1 %v4422_v41, %s3991_s25 }
  0xe3   : > { %1438 = vrot.lane.b32.xlu0 %v4424_v42, %s3992_s26  ;;  %v1323_v42 = vld [vmem:[#allocation2 + $0x1b] ss:$2 sm:$0xff] }
  0xe4   : > { %v4716_v38 = vpop.permute.xlu1 %959 }
  0xe5   : > { %6356 = vst [vmem:[#allocation43_spill] sm:$0xff] %v4716_v38  ;;  %v4718_v37 = vpop.permute.xlu0 %981 }
  0xe6   : > { %1436 = vrot.lane.b32.xlu1 %v4430_v43, %s3992_s26  ;;  %v1327_v43 = vld [vmem:[#allocation2 + $0x7b] ss:$2 sm:$0xff] }
  0xe7   : > { %1442 = vrot.lane.b32.xlu0 %v4432_v44, %s3992_s26 }
  0xe8   : > { %v4724_v39 = vpop.permute.xlu1 %979 }
  0xe9   : > { %v4726_v40 = vpop.permute.xlu0 %985 }
  0xea   : > { %1440 = vrot.lane.b32.xlu1 %v4438_v45, %s3992_s26 }
  0xeb   : > { %1446 = vrot.lane.b32.xlu0 %v4440_v46, %s3992_s26  ;;  %v1325_v46 = vld [vmem:[#allocation2 + $0x4b] ss:$2 sm:$0xff] }
  0xec   : > { %v4732_v41 = vpop.permute.xlu1 %983 }
  0xed   : > { %v4734_v10 = vpop.permute.xlu0 %989 }
  0xee   : > { %6357 = vst [vmem:[#allocation44_spill] sm:$0xff] %v4734_v10  ;;  %1444 = vrot.lane.b32.xlu1 %v4446_v47, %s3992_s26 }
  0xef   : > { %1466 = vrot.lane.b32.xlu0 %v1323_v42, %s3993_s27  ;;  %v1329_v42 = vld [vmem:[#allocation2 + $0xab] ss:$2 sm:$0xff] }
  0xf0   : > { %v4739_v44 = vpop.permute.xlu1 %987 }
  0xf1   : > { %v1010_v59 = vpop.permute.xlu0 %1009 }
  0xf2   : > { %1448 = vrot.lane.b32.xlu1 %v4454_v49, %s3992_s26 }
  0xf3   : > { %1470 = vrot.lane.b32.xlu0 %v1327_v43, %s3993_s27  ;;  %v1333_v43 = vld [vmem:[#allocation2 + $0x10b] ss:$2 sm:$0xff] }
  0xf4   : > { %v4744_v45 = vpop.permute.xlu1 %991 }
  0xf5   : > { %6358 = vst [vmem:[#allocation45_spill] sm:$0xff] %v4744_v45  ;;  %v4746_v38 = vpop.permute.xlu0 %1013 }
  0xf6   : > { %1468 = vrot.lane.b32.xlu1 %v1325_v46, %s3993_s27  ;;  %v1337_v46 = vld [vmem:[#allocation2 + $0x16b] ss:$2 sm:$0xff] }
  0xf7   : > { %1474 = vrot.lane.b32.xlu0 %v1331_v5, %s3993_s27 }
  0xf8   : > { %v4750_v47 = vpop.permute.xlu1 %1011 }
  0xf9   : > { %v4752_v10 = vpop.permute.xlu0 %1017 }
  0xfa   : > { %1472 = vrot.lane.b32.xlu1 %v1329_v42, %s3993_s27 }
  0xfb   : > { %1478 = vrot.lane.b32.xlu0 %v1335_v50, %s3993_s27 }
  0xfc   : > { %v4756_v49 = vpop.permute.xlu1 %1015 }
  0xfd   : > { %v4758_v45 = vpop.permute.xlu0 %1021 }
  0xfe   : > { %6359 = vst [vmem:[#allocation46_spill] sm:$0xff] %v4758_v45  ;;  %1476 = vrot.lane.b32.xlu1 %v1333_v43, %s3993_s27 }
  0xff   : > { %1490 = vrot.lane.b32.xlu0 %v4500_v62, %s3994_s28  ;;  %v1097_v62 = vsel %vm391_vm0, %v699_v53, %v4572_v20 }
 0x100   : > { %v4763_v5 = vpop.permute.xlu1 %1019 }
 0x101   : > { %v1042_v22 = vpop.permute.xlu0 %1041 }
 0x102   : > { %1480 = vrot.lane.b32.xlu1 %v1337_v46, %s3993_s27  ;;  %v1105_v46 = vsel %vm622_vm2, %v1097_v62, %v4586_v26  ;;  %v703_v26 = vld [vmem:[#allocation2 + $0x60] ss:$2 sm:$0xff] }
 0x103   : > { %1494 = vrot.lane.b32.xlu0 %v4520_v6, %s3994_s28 }
 0x104   : > { %v4768_v50 = vpop.permute.xlu1 %1023 }
 0x105   : > { %v4770_v42 = vpop.permute.xlu0 %1045 }
 0x106   : > { %1492 = vrot.lane.b32.xlu1 %v4535_v9, %s3994_s28  ;;  %v707_v9 = vld [vmem:[#allocation2 + $0xc0] ss:$2 sm:$0xff] }
 0x107   : > { %1498 = vrot.lane.b32.xlu0 %v4540_v11, %s3994_s28  ;;  %v1114_v11 = vsel %vm1113_vm3, %v1105_v46, %v4653_v60 }
 0x108   : > { %v1044_v43 = vpop.permute.xlu1 %1043  ;;  %v1123_v53 = vsel %vm1122_vm4, %v1114_v11, %v4679_v14 }
 0x109   : > { %v4778_v45 = vpop.permute.xlu0 %1049  ;;  %v1132_v62 = vsel %vm1131_vm5, %v1123_v53, %v4710_v35  ;;  %v1099_v53 = vsel %vm391_vm0, %v703_v26, %v4598_v30 }
 0x10a   : > { %1496 = vrot.lane.b32.xlu1 %v4549_v12, %s3994_s28  ;;  %v1141_v60 = vsel %vm1140_vm6, %v1132_v62, %v1010_v59  ;;  %v705_v12 = vld [vmem:[#allocation2 + $0x90] ss:$2 sm:$0xff]  ;;  %v711_v62 = vld [vmem:[#allocation2 + $0x120] ss:$2 sm:$0xff] }
 0x10b   : > { %1502 = vrot.lane.b32.xlu0 %v4557_v16, %s3994_s28  ;;  %v701_v16 = vld [vmem:[#allocation2 + $0x30] ss:$2 sm:$0xff]  ;;  %v1150_v11 = vsel %vm1149_vm7, %v1141_v60, %v1042_v22  ;;  %v1100_v30 = vsel %vm391_vm0, %v705_v12, %v4610_v54 }
 0x10c   : > { %v4786_v6 = vpop.permute.xlu1 %1047  ;;  %v709_v59 = vld [vmem:[#allocation2 + $0xf0] ss:$2 sm:$0xff] }
 0x10d   : > { %v4790_v20 = vpop.permute.xlu0 %1053 }
 0x10e   : > { %1500 = vrot.lane.b32.xlu1 %v4566_v17, %s3994_s28  ;;  %v1098_v17 = vsel %vm391_vm0, %v701_v16, %v4602_v33  ;;  %v713_v16 = vld [vmem:[#allocation2 + $0x150] ss:$2 sm:$0xff]  ;;  %v1107_v33 = vsel %vm622_vm2, %v1099_v53, %v4630_v8  ;;  %v1102_v8 = vsel %vm391_vm0, %v709_v59, %v4620_v63  ;;  %v644_v53 = vld [vmem:[%s4906_s22] sm:$0xff] }
 0x10f   : > { %1514 = vrot.lane.b32.xlu0 %v4569_v18, %s3995_s29  ;;  %v1106_v18 = vsel %vm622_vm2, %v1098_v17, %v4636_v15  ;;  %v1101_v17 = vsel %vm391_vm0, %v707_v9, %v4612_v58  ;;  %v1116_v15 = vsel %vm1113_vm3, %v1107_v33, %v4660_v55  ;;  %v1104_v55 = vsel %vm391_vm0, %v713_v16, %v4628_v7  ;;  %v6362_v59 = vld [vmem:[#allocation41_spill] sm:$0xff]  ;;  %v6363_v16 = vld [vmem:[#allocation44_spill] sm:$0xff] }
 0x110   : > { %v4801_v46 = vpop.permute.xlu1 %1051  ;;  %v1115_v22 = vsel %vm1113_vm3, %v1106_v18, %v4664_v4  ;;  %v1103_v18 = vsel %vm391_vm0, %v711_v62, %v4622_v3  ;;  %v1125_v4 = vsel %vm1122_vm4, %v1116_v15, %v4686_v23  ;;  %v1108_v9 = vsel %vm622_vm2, %v1100_v30, %v4644_v13 }
 0x111   : > { %v1074_v14 = vpop.permute.xlu0 %1073  ;;  %v1124_v26 = vsel %vm1122_vm4, %v1115_v22, %v4692_v25  ;;  %v1134_v54 = vsel %vm1131_vm5, %v1125_v4, %v4718_v37  ;;  %v1117_v63 = vsel %vm1113_vm3, %v1108_v9, %v4670_v19  ;;  %v1112_v62 = vsel %vm622_vm2, %v1104_v55, %v6362_v59  ;;  %v6364_v22 = vld [vmem:[#allocation42_spill] sm:$0xff]  ;;  %v6367_v4 = vld [vmem:[#allocation43_spill] sm:$0xff] }
 0x112   : > { %1504 = vrot.lane.b32.xlu1 %v4578_v21, %s3994_s28  ;;  %v1159_v35 = vsel %vm1158_vm8, %v1150_v11, %v1074_v14  ;;  %v1133_v12 = vsel %vm1131_vm5, %v1124_v26, %v4724_v39  ;;  %v1109_v39 = vsel %vm622_vm2, %v1101_v17, %v4638_v0  ;;  %v1143_v3 = vsel %vm1140_vm6, %v1134_v54, %v4746_v38  ;;  %v6365_v17 = vld [vmem:[#allocation46_spill] sm:$0xff]  ;;  %v6368_v54 = vld [vmem:[#allocation29_spill] sm:$0xff] }
 0x113   : > { %1518 = vrot.lane.b32.xlu0 %v4580_v24, %s3995_s29  ;;  %3579 = vmatprep.mubr.msk.f32.mxu1 %vm1176_vm9, %v1159_v35  ;;  %v1142_v58 = vsel %vm1140_vm6, %v1133_v12, %v4750_v47  ;;  %v1118_v37 = vsel %vm1113_vm3, %v1109_v39, %v4666_v48  ;;  %v1126_v47 = vsel %vm1122_vm4, %v1117_v63, %v4700_v52 }
 0x114   : > { %v4820_v60 = vpop.permute.xlu1 %1055  ;;  %v1151_v7 = vsel %vm1149_vm7, %v1142_v58, %v1044_v43  ;;  %v1152_v23 = vsel %vm1149_vm7, %v1143_v3, %v4770_v42  ;;  %v1127_v19 = vsel %vm1122_vm4, %v1118_v37, %v4694_v32  ;;  %v1135_v38 = vsel %vm1131_vm5, %v1126_v47, %v4732_v41  ;;  %v6369_v58 = vld [vmem:[#allocation45_spill] sm:$0xff]  ;;  %v6370_v3 = vld [vmem:[#allocation40_spill] sm:$0xff] }
 0x115   : > { %v1078_v11 = vpop.permute.xlu0 %1077  ;;  %v1110_v48 = vsel %vm622_vm2, %v1102_v8, %v4651_v1  ;;  %v1136_v52 = vsel %vm1131_vm5, %v1127_v19, %v4726_v40  ;;  %v1144_v32 = vsel %vm1140_vm6, %v1135_v38, %v4756_v49  ;;  %v1111_v41 = vsel %vm622_vm2, %v1103_v18, %v4646_v57  ;;  %v4889_v49 = vld [vmem:[#allocation2 + $0x33] ss:$2 sm:$0xff]  ;;  %v4942_v18 = vld [vmem:[%s6256_s8] ss:$0 sm:$0xff]  ;;  %v4964_v37 = vld [vmem:[#allocation2 + $0x63] ss:$2 sm:$0xff] }
 0x116   : > { %1516 = vrot.lane.b32.xlu1 %v4588_v27, %s3995_s29  ;;  %v1161_v43 = vsel %vm1158_vm8, %v1152_v23, %v1078_v11  ;;  %v1119_v42 = vsel %vm1113_vm3, %v1110_v48, %v4677_v2  ;;  %v1145_v1 = vsel %vm1140_vm6, %v1136_v52, %v4752_v10  ;;  %v1153_v40 = vsel %vm1149_vm7, %v1144_v32, %v4786_v6  ;;  %v6361_v6 = vld [vmem:[#allocation39_spill] sm:$0xff]  ;;  %v1343_v11 = vld [vmem:[#allocation2 + $0x93] ss:$2 sm:$0xff] }
 0x117   : > { %1522 = vrot.lane.b32.xlu0 %v4590_v28, %s3995_s29  ;;  %6360 = vst [vmem:[#allocation47_spill] sm:$0xff] %v4889_v49  ;;  %v1128_v57 = vsel %vm1122_vm4, %v1119_v42, %v4708_v36  ;;  %v1154_v2 = vsel %vm1149_vm7, %v1145_v1, %v4778_v45  ;;  %v1121_v30 = vsel %vm1113_vm3, %v1112_v62, %v6364_v22  ;;  %6366 = vst [vmem:[#allocation39_spill] sm:$0xff] %v4942_v18  ;;  %v6372_v19 = vmov 0.0   ;;  %v5000_v52 = vld [vmem:[#allocation2 + $0xc3] ss:$2 sm:$0xff]  ;;  %v6377_v62 = vld [vmem:[#allocation5_spill] sm:$0xff] }
 0x118   : > { %v1076_v13 = vpop.permute.xlu1 %1075  ;;  %v1137_v36 = vsel %vm1131_vm5, %v1128_v57, %v4739_v44  ;;  %v4929_v44 = vld [vmem:[%s6255_s7] ss:$0 sm:$0xff]  ;;  %v1130_v12 = vsel %vm1122_vm4, %v1121_v30, %v6367_v4  ;;  %6371 = vst [vmem:[#allocation41_spill] sm:$0xff] %v4964_v37  ;;  %625 = vst.msk [vmem:[#allocation3 + $0x8] sm:$0x3] %vm624_vm10, %v6372_v19  ;;  %v647_v22 = vld [vmem:[%s4906_s22 + $0x18] sm:$0xff] }
 0x119   : > { %v1160_v0 = vsel %vm1158_vm8, %v1151_v7, %v1076_v13  ;;  %v1082_v25 = vpop.permute.xlu0 %1081  ;;  %v659_v8 = vmul.f32 %v4929_v44, %v644_v53  ;;  %v1139_v39 = vsel %vm1131_vm5, %v1130_v12, %v6369_v58  ;;  %v645_v13 = vld [vmem:[%s4906_s22 + $0x8] sm:$0xff]  ;;  %627 = vst.msk [vmem:[#allocation3 + $0x18] sm:$0x3] %vm624_vm10, %v6372_v19  ;;  %629 = vst.msk [vmem:[#allocation3 + $0x28] sm:$0x3] %vm624_vm10, %v6372_v19  ;;  %v6379_v30 = vld [vmem:[#allocation14_spill] sm:$0xff] }
 0x11a   : > { %1520 = vrot.lane.b32.xlu1 %v4596_v29, %s3995_s29  ;;  %3580 = vmatmul.mubr.msk.f32.vlgmr.msra.gmra.mrb[0].mxu1 %vm1176_vm9, %v1160_v0  ;;  %v1163_v45 = vsel %vm1158_vm8, %v1154_v2, %v1082_v25  ;;  %v660_v47 = vmul.f32 %v4929_v44, %v645_v13  ;;  %v1347_v25 = vld [vmem:[#allocation2 + $0xf3] ss:$2 sm:$0xff]  ;;  %631 = vst.msk [vmem:[#allocation3 + $0x38] sm:$0x3] %vm624_vm10, %v6372_v19  ;;  %633 = vst.msk [vmem:[#allocation3 + $0x48] sm:$0x3] %vm624_vm10, %v6372_v19 }
 0x11b   : > { %1526 = vrot.lane.b32.xlu0 %v4600_v31, %s3995_s29  ;;  %3582 = vmatprep.mubr.msk.f32.mxu1 %vm1176_vm9, %v1161_v43  ;;  %v1120_v31 = vsel %vm1113_vm3, %v1111_v41, %v4672_v51  ;;  %v674_v7 = vadd.f32 %v4942_v18, %v659_v8  ;;  %635 = vst.msk [vmem:[#allocation3 + $0x58] sm:$0x3] %vm624_vm10, %v6372_v19  ;;  %637 = vst.msk [vmem:[#allocation3 + $0x68] sm:$0x3] %vm624_vm10, %v6372_v19  ;;  %v6373_v43 = vld [vmem:[#allocation32_spill] sm:$0xff]  ;;  %v6381_v8 = vld [vmem:[#allocation22_spill] sm:$0xff] }
 0x11c   : > { %v1080_v14 = vpop.permute.xlu1 %1079  ;;  %3700 = vmatpush3.bf16.msra.mxu1 %v4478_v56  ;;  %v1129_v51 = vsel %vm1122_vm4, %v1120_v31, %v4702_v34  ;;  %v1146_v34 = vsel %vm1140_vm6, %v1137_v36, %v4763_v5  ;;  %639 = vst.msk [vmem:[#allocation3 + $0x78] sm:$0x3] %vm624_vm10, %v6372_v19  ;;  %641 = vst.msk [vmem:[#allocation3 + $0x88] sm:$0x3] %vm624_vm10, %v6372_v19  ;;  %v675_v48 = vadd.f32 %v4942_v18, %v660_v47  ;;  %v1351_v42 = vld [vmem:[#allocation2 + $0x153] ss:$2 sm:$0xff] }
 0x11d   : > { %v1162_v10 = vsel %vm1158_vm8, %v1153_v40, %v1080_v14  ;;  %v1086_v35 = vpop.permute.xlu0 %1085  ;;  %3702 = vmatprep.subr.bf16.mxu1 %v4497_v61  ;;  %v1138_v33 = vsel %vm1131_vm5, %v1129_v51, %v6363_v16  ;;  %v1155_v26 = vsel %vm1149_vm7, %v1146_v34, %v4801_v46  ;;  %643 = vst.msk [vmem:[#allocation3 + $0x98] sm:$0x3] %vm624_vm10, %v6372_v19  ;;  %6374 = vst [vmem:[#allocation44_spill] sm:$0xff] %v5000_v52  ;;  %v6375_v40 = vld [vmem:[#allocation35_spill] sm:$0xff]  ;;  %v646_v14 = vld [vmem:[%s4906_s22 + $0x10] sm:$0xff] }
 0x11e   : > { %1524 = vrot.lane.b32.xlu1 %v6361_v6, %s3995_s29  ;;  %3583 = vmatmul.mubr.msk.f32.gmra.mrb[2].mxu1 %vm1176_vm9, %v1162_v10  ;;  %v1147_v15 = vsel %vm1140_vm6, %v1138_v33, %v6365_v17  ;;  %v683_v32 = vmax.f32 %v675_v48, 0.0  ;;  %v1349_v31 = vld [vmem:[#allocation2 + $0x123] ss:$2 sm:$0xff]  ;;  %v661_v57 = vmul.f32 %v4929_v44, %v646_v14  ;;  %v662_v17 = vmul.f32 %v4929_v44, %v647_v22  ;;  %v1774_v13 = vld [vmem:[#allocation2 + $0x78] ss:$2 sm:$0xff] }
 0x11f   : > { %1546 = vrot.lane.b32.xlu0 %v4889_v49, %s3996_s18  ;;  %3585 = vmatprep.mubr.msk.f32.mxu1 %vm1176_vm9, %v1163_v45  ;;  %v1156_v55 = vsel %vm1149_vm7, %v1147_v15, %v4790_v20  ;;  %v1148_v20 = vsel %vm1140_vm6, %v1139_v39, %v4768_v50  ;;  %v682_v50 = vmax.f32 %v674_v7, 0.0  ;;  %v6376_v51 = vld [vmem:[#allocation4_spill] sm:$0xff]  ;;  %v6378_v34 = vld [vmem:[#allocation6_spill] sm:$0xff]  ;;  %v6383_v58 = vld [vmem:[#allocation31_spill] sm:$0xff] }
 0x120   : > { %v1084_v5 = vpop.permute.xlu1 %1083  ;;  %3704 = vmatpush3.bf16.msra.mxu1 %v4497_v61  ;;  %v1165_v63 = vsel %vm1158_vm8, %v1156_v55, %v1086_v35  ;;  %v1157_v23 = vsel %vm1149_vm7, %v1148_v20, %v4820_v60  ;;  %692 = vst.msk [vmem:[#allocation3 + $0x21] sm:$0xff] %vm622_vm2, %v683_v32  ;;  %v676_v35 = vadd.f32 %v4942_v18, %v661_v57  ;;  %v1353_v36 = vld [vmem:[#allocation2 + $0x183] ss:$2 sm:$0xff]  ;;  %v5090_v32 = vld [vmem:[#allocation2 + $0x7a] ss:$2 sm:$0xff] }
 0x121   : > { %v1164_v46 = vsel %vm1158_vm8, %v1155_v26, %v1084_v5  ;;  %v4949_v9 = vpop.permute.xlu0 %1354  ;;  %3706 = vmatprep.subr.bf16.mxu1 %v6368_v54  ;;  %691 = vst.msk [vmem:[#allocation3 + $0x11] sm:$0xff] %vm622_vm2, %v682_v50  ;;  %v677_v5 = vadd.f32 %v4942_v18, %v662_v17  ;;  %v6385_v47 = vld [vmem:[#allocation38_spill] sm:$0xff]  ;;  %v5085_v50 = vld [vmem:[#allocation2 + $0x49] ss:$2 sm:$0xff]  ;;  %6388 = vst [vmem:[#allocation43_spill] sm:$0xff] %v5090_v32 }
 0x122   : > { %1528 = vrot.lane.b32.xlu1 %v6370_v3, %s3995_s29  ;;  %3586 = vmatmul.mubr.msk.f32.gmra.mrb[4].mxu1 %vm1176_vm9, %v1164_v46  ;;  %v684_v45 = vmax.f32 %v676_v35, 0.0  ;;  %v6382_v46 = vld [vmem:[#allocation19_spill] sm:$0xff]  ;;  %6387 = vst [vmem:[#allocation46_spill] sm:$0xff] %v5085_v50  ;;  %v6393_v17 = vld [vmem:[#allocation16_spill] sm:$0xff] }
 0x123   : > { %1550 = vrot.lane.b32.xlu0 %v1343_v11, %s3996_s18  ;;  %3588 = vmatprep.mubr.msk.f32.mxu1 %vm1176_vm9, %v1165_v63  ;;  %v6380_v11 = vld [vmem:[#allocation11_spill] sm:$0xff]  ;;  %v685_v4 = vmax.f32 %v677_v5, 0.0  ;;  %v6394_v5 = vld [vmem:[#allocation30_spill] sm:$0xff] }
 0x124   : > { %v1088_v0 = vpop.permute.xlu1 %1087  ;;  %3708 = vmatpush3.bf16.msra.mxu1 %v6368_v54  ;;  %693 = vst.msk [vmem:[#allocation3 + $0x31] sm:$0xff] %vm622_vm2, %v684_v45  ;;  %v6384_v3 = vld [vmem:[#allocation27_spill] sm:$0xff] }
 0x125   : > { %v1166_v60 = vsel %vm1158_vm8, %v1157_v23, %v1088_v0  ;;  %v4991_v38 = vpop.permute.xlu0 %1358  ;;  %3710 = vmatprep.subr.bf16.mxu1 %v6373_v43  ;;  %694 = vst.msk [vmem:[#allocation3 + $0x41] sm:$0xff] %vm622_vm2, %v685_v4  ;;  %v1772_v23 = vld [vmem:[#allocation2 + $0x48] ss:$2 sm:$0xff] }
 0x126   : > { %1548 = vrot.lane.b32.xlu1 %v4964_v37, %s3996_s18  ;;  %3589 = vmatmul.mubr.msk.f32.gmra.mrb[6].mxu1 %vm1176_vm9, %v1166_v60  ;;  %v5099_v14 = vld [vmem:[#allocation2 + $0x4a] ss:$2 sm:$0xff]  ;;  %v5210_v49 = vld [vmem:[#allocation2 + $0xda] ss:$2 sm:$0xff] }
 0x127   : > { %1554 = vrot.lane.b32.xlu0 %v1347_v25, %s3996_s18  ;;  %v5077_v25 = vld [vmem:[#allocation2 + $0x79] ss:$2 sm:$0xff]  ;;  %6389 = vst [vmem:[#allocation45_spill] sm:$0xff] %v5099_v14  ;;  %v6395_v4 = vld [vmem:[#allocation24_spill] sm:$0xff]  ;;  %6411 = vst [vmem:[#allocation6_spill] sm:$0xff] %v5210_v49 }
 0x128   : > { %v5002_v41 = vpop.permute.xlu1 %1356  ;;  %3712 = vmatpush3.bf16.msra.mxu1 %v6373_v43  ;;  %6386 = vst [vmem:[#allocation42_spill] sm:$0xff] %v5077_v25  ;;  %v6414_v43 = vld [vmem:[#allocation20_spill] sm:$0xff] }
 0x129   : > { %v5005_v1 = vpop.permute.xlu0 %1362  ;;  %3607 = vmatprep.subr.mxu1 %v6375_v40 }
 0x12a   : > { %1552 = vrot.lane.b32.xlu1 %v5000_v52, %s3996_s18  ;;  %v6407_v52 = vld [vmem:[#allocation9_spill] sm:$0xff] }
 0x12b   : > { %1558 = vrot.lane.b32.xlu0 %v1351_v42, %s3996_s18 }
 0x12c   : > { %v5014_v2 = vpop.permute.xlu1 %1360  ;;  %3608 = vmatpush3.msra.mxu1 %v6375_v40 }
 0x12d   : > { %v5017_v10 = vpop.permute.xlu0 %1366  ;;  %3730 = vmatprep.subr.bf16.mxu1 %v4478_v56 }
 0x12e   : > { %1556 = vrot.lane.b32.xlu1 %v1349_v31, %s3996_s18 }
 0x12f   : > { %1819 = vrot.lane.b32.xlu0 %v6376_v51, %s3989_s23  ;;  %v6390_v51 = vld [vmem:[#allocation13_spill] sm:$0xff] }
 0x130   : > { %v5024_v53 = vpop.permute.xlu1 %1364 }
 0x131   : > { %v5026_v59 = vpop.permute.xlu0 %1386 }
 0x132   : > { %1560 = vrot.lane.b32.xlu1 %v1353_v36, %s3996_s18 }
 0x133   : > { %1823 = vrot.lane.b32.xlu0 %v6377_v62, %s3989_s23  ;;  %v6391_v62 = vld [vmem:[#allocation8_spill] sm:$0xff] }
 0x134   : > { %v5032_v16 = vpop.permute.xlu1 %1368 }
 0x135   : > { %v5034_v33 = vpop.permute.xlu0 %1390 }
 0x136   : > { %1821 = vrot.lane.b32.xlu1 %v6378_v34, %s3989_s23  ;;  %v6392_v34 = vld [vmem:[#allocation21_spill] sm:$0xff] }
 0x137   : > { %1845 = vrot.lane.b32.xlu0 %v6379_v30, %s3990_s24 }
 0x138   : > { %v5042_v15 = vpop.permute.xlu1 %1388 }
 0x139   : > { %v5044_v26 = vpop.permute.xlu0 %1394 }
 0x13a   : > { %1843 = vrot.lane.b32.xlu1 %v6380_v11, %s3990_s24 }
 0x13b   : > { %1869 = vrot.lane.b32.xlu0 %v6381_v8, %s3991_s25 }
 0x13c   : > { %v5051_v12 = vpop.permute.xlu1 %1392 }
 0x13d   : > { %v5053_v55 = vpop.permute.xlu0 %1398 }
 0x13e   : > { %1867 = vrot.lane.b32.xlu1 %v6382_v46, %s3991_s25  ;;  %v6396_v46 = vld [vmem:[#allocation34_spill] sm:$0xff] }
 0x13f   : > { %1893 = vrot.lane.b32.xlu0 %v6383_v58, %s3992_s26 }
 0x140   : > { %v5060_v39 = vpop.permute.xlu1 %1396 }
 0x141   : > { %v5062_v63 = vpop.permute.xlu0 %1410 }
 0x142   : > { %1891 = vrot.lane.b32.xlu1 %v6384_v3, %s3992_s26 }
 0x143   : > { %1917 = vrot.lane.b32.xlu0 %v4588_v27, %s3993_s27  ;;  %v648_v27 = vld [vmem:[%s4906_s22 + $0x20] sm:$0xff] }
 0x144   : > { %v5068_v7 = vpop.permute.xlu1 %1400  ;;  %v663_v60 = vmul.f32 %v4929_v44, %v648_v27 }
 0x145   : > { %v5070_v20 = vpop.permute.xlu0 %1414 }
 0x146   : > { %1915 = vrot.lane.b32.xlu1 %v6385_v47, %s3993_s27  ;;  %v678_v40 = vadd.f32 %v4942_v18, %v663_v60  ;;  %v6398_v47 = vld [vmem:[#allocation10_spill] sm:$0xff] }
 0x147   : > { %1949 = vrot.lane.b32.xlu0 %v1774_v13, %s3994_s28  ;;  %v6397_v13 = vld [vmem:[#allocation7_spill] sm:$0xff] }
 0x148   : > { %v5075_v0 = vpop.permute.xlu1 %1412  ;;  %v686_v31 = vmax.f32 %v678_v40, 0.0 }
 0x149   : > { %v5079_v19 = vpop.permute.xlu0 %1418 }
 0x14a   : > { %1947 = vrot.lane.b32.xlu1 %v1772_v23, %s3994_s28  ;;  %695 = vst.msk [vmem:[#allocation3 + $0x51] sm:$0xff] %vm622_vm2, %v686_v31  ;;  %v6399_v31 = vld [vmem:[#allocation15_spill] sm:$0xff] }
 0x14b   : > { %1981 = vrot.lane.b32.xlu0 %v5077_v25, %s3995_s29 }
 0x14c   : > { %v5088_v48 = vpop.permute.xlu1 %1416 }
 0x14d   : > { %v5092_v42 = vpop.permute.xlu0 %1422 }
 0x14e   : > { %1979 = vrot.lane.b32.xlu1 %v5085_v50, %s3995_s29  ;;  %v6410_v50 = vld [vmem:[#allocation12_spill] sm:$0xff] }
 0x14f   : > { %2013 = vrot.lane.b32.xlu0 %v5090_v32, %s3996_s18  ;;  %v5191_v32 = vld [vmem:[#allocation2 + $0xaa] ss:$2 sm:$0xff] }
 0x150   : > { %v5101_v57 = vpop.permute.xlu1 %1420  ;;  %6408 = vst [vmem:[#allocation5_spill] sm:$0xff] %v5191_v32 }
 0x151   : > { %v5103_v35 = vpop.permute.xlu0 %1434 }
 0x152   : > { %2011 = vrot.lane.b32.xlu1 %v5099_v14, %s3996_s18 }
 0x153   : > { %1847 = vrot.lane.b32.xlu0 %v6390_v51, %s3990_s24  ;;  %v6400_v51 = vld [vmem:[#allocation18_spill] sm:$0xff] }
 0x154   : > { %v5110_v36 = vpop.permute.xlu1 %1424 }
 0x155   : > { %v5112_v45 = vpop.permute.xlu0 %1438 }
 0x156   : > { %1825 = vrot.lane.b32.xlu1 %v6391_v62, %s3989_s23  ;;  %v1776_v62 = vld [vmem:[#allocation2 + $0xa8] ss:$2 sm:$0xff] }
 0x157   : > { %1871 = vrot.lane.b32.xlu0 %v6392_v34, %s3991_s25 }
 0x158   : > { %v5118_v22 = vpop.permute.xlu1 %1436 }
 0x159   : > { %v5120_v30 = vpop.permute.xlu0 %1442 }
 0x15a   : > { %1849 = vrot.lane.b32.xlu1 %v6393_v17, %s3990_s24  ;;  %v1778_v17 = vld [vmem:[#allocation2 + $0xd8] ss:$2 sm:$0xff] }
 0x15b   : > { %1895 = vrot.lane.b32.xlu0 %v6394_v5, %s3992_s26 }
 0x15c   : > { %v5126_v11 = vpop.permute.xlu1 %1440 }
 0x15d   : > { %v5128_v8 = vpop.permute.xlu0 %1446 }
 0x15e   : > { %1873 = vrot.lane.b32.xlu1 %v6395_v4, %s3991_s25  ;;  %v6401_v4 = vld [vmem:[#allocation23_spill] sm:$0xff] }
 0x15f   : > { %1897 = vrot.lane.b32.xlu0 %v6396_v46, %s3992_s26  ;;  %v6402_v46 = vld [vmem:[#allocation26_spill] sm:$0xff] }
 0x160   : > { %v5134_v58 = vpop.permute.xlu1 %1444 }
 0x161   : > { %v5136_v3 = vpop.permute.xlu0 %1466 }
 0x162   : > { %1827 = vrot.lane.b32.xlu1 %v6397_v13, %s3989_s23  ;;  %v5170_v13 = vld [vmem:[#allocation2 + $0xa9] ss:$2 sm:$0xff] }
 0x163   : > { %1829 = vrot.lane.b32.xlu0 %v6398_v47, %s3989_s23  ;;  %6403 = vst [vmem:[#allocation40_spill] sm:$0xff] %v5170_v13 }
 0x164   : > { %v5142_v23 = vpop.permute.xlu1 %1448 }
 0x165   : > { %v5144_v27 = vpop.permute.xlu0 %1470 }
 0x166   : > { %1919 = vrot.lane.b32.xlu1 %v4580_v24, %s3993_s27 }
 0x167   : > { %1921 = vrot.lane.b32.xlu0 %v4596_v29, %s3993_s27 }
 0x168   : > { %v5150_v60 = vpop.permute.xlu1 %1468 }
 0x169   : > { %v5152_v40 = vpop.permute.xlu0 %1474 }
 0x16a   : > { %1851 = vrot.lane.b32.xlu1 %v6399_v31, %s3990_s24  ;;  %v5174_v31 = vld [vmem:[#allocation2 + $0xd9] ss:$2 sm:$0xff] }
 0x16b   : > { %1853 = vrot.lane.b32.xlu0 %v6400_v51, %s3990_s24  ;;  %6405 = vst [vmem:[#allocation4_spill] sm:$0xff] %v5174_v31 }
 0x16c   : > { %v5158_v34 = vpop.permute.xlu1 %1472 }
 0x16d   : > { %v5160_v5 = vpop.permute.xlu0 %1478 }
 0x16e   : > { %1951 = vrot.lane.b32.xlu1 %v1776_v62, %s3994_s28 }
 0x16f   : > { %1953 = vrot.lane.b32.xlu0 %v1778_v17, %s3994_s28 }
 0x170   : > { %v5164_v24 = vpop.permute.xlu1 %1476 }
 0x171   : > { %v1491_v29 = vpop.permute.xlu0 %1490 }
 0x172   : > { %1875 = vrot.lane.b32.xlu1 %v6401_v4, %s3991_s25  ;;  %v6406_v4 = vld [vmem:[#allocation33_spill] sm:$0xff] }
 0x173   : > { %1877 = vrot.lane.b32.xlu0 %v6402_v46, %s3991_s25  ;;  %v649_v46 = vld [vmem:[%s4906_s22 + $0x28] sm:$0xff] }
 0x174   : > { %v5172_v47 = vpop.permute.xlu1 %1480  ;;  %v664_v14 = vmul.f32 %v4929_v44, %v649_v46  ;;  %v6409_v46 = vld [vmem:[#allocation37_spill] sm:$0xff] }
 0x175   : > { %6404 = vst [vmem:[#allocation35_spill] sm:$0xff] %v5172_v47  ;;  %v5176_v51 = vpop.permute.xlu0 %1494 }
 0x176   : > { %1983 = vrot.lane.b32.xlu1 %v5170_v13, %s3995_s29 }
 0x177   : > { %1985 = vrot.lane.b32.xlu0 %v5174_v31, %s3995_s29  ;;  %v679_v31 = vadd.f32 %v4942_v18, %v664_v14 }
 0x178   : > { %v5182_v62 = vpop.permute.xlu1 %1492 }
 0x179   : > { %v5184_v17 = vpop.permute.xlu0 %1498 }
 0x17a   : > { %1899 = vrot.lane.b32.xlu1 %v6406_v4, %s3992_s26  ;;  %v687_v4 = vmax.f32 %v679_v31, 0.0 }
 0x17b   : > { %1831 = vrot.lane.b32.xlu0 %v6407_v52, %s3989_s23 }
 0x17c   : > { %v5194_v25 = vpop.permute.xlu1 %1496  ;;  %696 = vst.msk [vmem:[#allocation3 + $0x61] sm:$0xff] %vm622_vm2, %v687_v4  ;;  %v6413_v4 = vld [vmem:[#allocation17_spill] sm:$0xff] }
 0x17d   : > { %v5196_v13 = vpop.permute.xlu0 %1502 }
 0x17e   : > { %2015 = vrot.lane.b32.xlu1 %v5191_v32, %s3996_s18 }
 0x17f   : > { %1923 = vrot.lane.b32.xlu0 %v4590_v28, %s3993_s27 }
 0x180   : > { %v5203_v37 = vpop.permute.xlu1 %1500 }
 0x181   : > { %v1515_v52 = vpop.permute.xlu0 %1514 }
 0x182   : > { %1901 = vrot.lane.b32.xlu1 %v6409_v46, %s3992_s26  ;;  %v3918_v46 = vld [vmem:[#allocation2 + $0x1] ss:$2 sm:$0xff] }
 0x183   : > { %1833 = vrot.lane.b32.xlu0 %v6410_v50, %s3989_s23  ;;  %v1570_v50 = vsel %vm391_vm0, %v3918_v46, %v4949_v9 }
 0x184   : > { %v5212_v14 = vpop.permute.xlu1 %1504 }
 0x185   : > { %6412 = vst [vmem:[#allocation14_spill] sm:$0xff] %v5212_v14  ;;  %v5214_v32 = vpop.permute.xlu0 %1518  ;;  %v1780_v14 = vld [vmem:[#allocation2 + $0x108] ss:$2 sm:$0xff] }
 0x186   : > { %2017 = vrot.lane.b32.xlu1 %v5210_v49, %s3996_s18  ;;  %v1578_v49 = vsel %vm622_vm2, %v1570_v50, %v5026_v59 }
 0x187   : > { %1925 = vrot.lane.b32.xlu0 %v6361_v6, %s3993_s27  ;;  %v1782_v6 = vld [vmem:[#allocation2 + $0x138] ss:$2 sm:$0xff]  ;;  %v1586_v54 = vsel %vm1113_vm3, %v1578_v49, %v5062_v63  ;;  %v3919_v49 = vld [vmem:[#allocation2 + $0x31] ss:$2 sm:$0xff] }
 0x188   : > { %v1517_v28 = vpop.permute.xlu1 %1516  ;;  %v1571_v63 = vsel %vm391_vm0, %v3919_v49, %v5002_v41  ;;  %v5259_v41 = vld [vmem:[#allocation2 + $0x109] ss:$2 sm:$0xff] }
 0x189   : > { %v5220_v31 = vpop.permute.xlu0 %1522 }
 0x18a   : > { %1855 = vrot.lane.b32.xlu1 %v6413_v4, %s3990_s24  ;;  %v1594_v4 = vsel %vm1122_vm4, %v1586_v54, %v5103_v35  ;;  %v6415_v35 = vld [vmem:[#allocation25_spill] sm:$0xff] }
 0x18b   : > { %1857 = vrot.lane.b32.xlu0 %v6414_v43, %s3990_s24  ;;  %v1602_v9 = vsel %vm1131_vm5, %v1594_v4, %v5136_v3  ;;  %v3920_v3 = vld [vmem:[#allocation2 + $0x61] ss:$2 sm:$0xff] }
 0x18c   : > { %v5230_v47 = vpop.permute.xlu1 %1520  ;;  %v1610_v43 = vsel %vm1140_vm6, %v1602_v9, %v1491_v29  ;;  %v1572_v29 = vsel %vm391_vm0, %v3920_v3, %v4991_v38  ;;  %v3921_v4 = vld [vmem:[#allocation2 + $0xc1] ss:$2 sm:$0xff] }
 0x18d   : > { %v5234_v18 = vpop.permute.xlu0 %1526  ;;  %v1618_v46 = vsel %vm1149_vm7, %v1610_v43, %v1515_v52  ;;  %v1579_v52 = vsel %vm622_vm2, %v1571_v63, %v5042_v15  ;;  %v1574_v9 = vsel %vm391_vm0, %v3921_v4, %v5005_v1  ;;  %v1580_v43 = vsel %vm622_vm2, %v1572_v29, %v5034_v33  ;;  %v5269_v15 = vld [vmem:[#allocation2 + $0x139] ss:$2 sm:$0xff] }
 0x18e   : > { %1955 = vrot.lane.b32.xlu1 %v1780_v14, %s3994_s28  ;;  %v3997_v14 = vmov 0.0|0.0   ;;  %v1587_v38 = vsel %vm1113_vm3, %v1579_v52, %v5075_v0  ;;  %v3923_v63 = vld [vmem:[#allocation2 + $0x121] ss:$2 sm:$0xff]  ;;  %v1588_v1 = vsel %vm1113_vm3, %v1580_v43, %v5070_v20  ;;  %v3924_v0 = vld [vmem:[#allocation2 + $0xf1] ss:$2 sm:$0xff]  ;;  %v1582_v20 = vsel %vm622_vm2, %v1574_v9, %v5044_v26 }
 0x18f   : > { %1957 = vrot.lane.b32.xlu0 %v1782_v6, %s3994_s28  ;;  %3745 = vmatprep.subr.bf16.mxu0 %v3997_v14  ;;  %v6416_v6 = vld [vmem:[#allocation28_spill] sm:$0xff]  ;;  %v1595_v33 = vsel %vm1122_vm4, %v1587_v38, %v5118_v22  ;;  %v1575_v3 = vsel %vm391_vm0, %v3924_v0, %v5024_v53 }
 0x190   : > { %v5243_v59 = vpop.permute.xlu1 %1524  ;;  %v3925_v29 = vld [vmem:[#allocation2 + $0x151] ss:$2 sm:$0xff] }
 0x191   : > { %v1547_v50 = vpop.permute.xlu0 %1546  ;;  %v1577_v52 = vsel %vm391_vm0, %v3925_v29, %v5032_v16  ;;  %v6417_v43 = vld [vmem:[#allocation36_spill] sm:$0xff] }
 0x192   : > { %v1626_v54 = vsel %vm1158_vm8, %v1618_v46, %v1547_v50  ;;  %1879 = vrot.lane.b32.xlu1 %v6415_v35, %s3991_s25  ;;  %v3922_v50 = vld [vmem:[#allocation2 + $0x91] ss:$2 sm:$0xff] }
 0x193   : > { %1881 = vrot.lane.b32.xlu0 %v6416_v6, %s3991_s25  ;;  %3609 = vmatprep.mubr.msk.f32.mxu1 %vm1176_vm9, %v1626_v54  ;;  %v1573_v49 = vsel %vm391_vm0, %v3922_v50, %v5014_v2  ;;  %v1576_v54 = vsel %vm391_vm0, %v3923_v63, %v5017_v10  ;;  %v1596_v2 = vsel %vm1122_vm4, %v1588_v1, %v5112_v45  ;;  %v5340_v50 = vld [vmem:[#allocation2 + $0x13a] ss:$2 sm:$0xff] }
 0x194   : > { %v5267_v46 = vpop.permute.xlu1 %1528  ;;  %v1603_v10 = vsel %vm1131_vm5, %v1595_v33, %v5150_v60  ;;  %v1581_v22 = vsel %vm622_vm2, %v1573_v49, %v5051_v12  ;;  %v1604_v53 = vsel %vm1131_vm5, %v1596_v2, %v5144_v27  ;;  %v1584_v45 = vsel %vm622_vm2, %v1576_v54, %v5053_v55  ;;  %v1784_v33 = vld [vmem:[#allocation2 + $0x168] ss:$2 sm:$0xff] }
 0x195   : > { %v1551_v35 = vpop.permute.xlu0 %1550  ;;  %v1611_v16 = vsel %vm1140_vm6, %v1603_v10, %v5182_v62  ;;  %v1589_v60 = vsel %vm1113_vm3, %v1581_v22, %v5088_v48  ;;  %v1612_v26 = vsel %vm1140_vm6, %v1604_v53, %v5176_v51  ;;  %v1590_v27 = vsel %vm1113_vm3, %v1582_v20, %v5079_v19  ;;  %v5398_v53 = vld [vmem:[#allocation2 + $0x169] ss:$2 sm:$0xff] }
 0x196   : > { %1987 = vrot.lane.b32.xlu1 %v5259_v41, %s3995_s29  ;;  %v1619_v12 = vsel %vm1149_vm7, %v1611_v16, %v1517_v28  ;;  %v1597_v62 = vsel %vm1122_vm4, %v1589_v60, %v5126_v11  ;;  %v1620_v4 = vsel %vm1149_vm7, %v1612_v26, %v5214_v32  ;;  %v1598_v48 = vsel %vm1122_vm4, %v1590_v27, %v5120_v30  ;;  %v5330_v30 = vld [vmem:[#allocation2 + $0x10a] ss:$2 sm:$0xff] }
 0x197   : > { %1989 = vrot.lane.b32.xlu0 %v5269_v15, %s3995_s29  ;;  %v1605_v51 = vsel %vm1131_vm5, %v1597_v62, %v5158_v34  ;;  %v1628_v28 = vsel %vm1158_vm8, %v1620_v4, %v1551_v35  ;;  %v1583_v19 = vsel %vm622_vm2, %v1575_v3, %v5060_v39  ;;  %v1606_v32 = vsel %vm1131_vm5, %v1598_v48, %v5152_v40  ;;  %v6422_v60 = vld [vmem:[#allocation32_spill] sm:$0xff]  ;;  %v5413_v62 = vld [vmem:[#allocation2 + $0x199] ss:$2 sm:$0xff] }
 0x198   : > { %v1549_v6 = vpop.permute.xlu1 %1548  ;;  %v1613_v11 = vsel %vm1140_vm6, %v1605_v51, %v5194_v25  ;;  %v1585_v34 = vsel %vm622_vm2, %v1577_v52, %v5068_v7  ;;  %v1591_v38 = vsel %vm1113_vm3, %v1583_v19, %v5101_v57  ;;  %v1614_v39 = vsel %vm1140_vm6, %v1606_v32, %v5184_v17  ;;  %v6420_v52 = vld [vmem:[#allocation35_spill] sm:$0xff]  ;;  %v2669_v4 = vld [vmem:[#allocation3 + $0x2] sm:$0xff]  ;;  %v3928_v48 = vld [vmem:[%s6250_s2 + $0x40] sm:$0xff] }
 0x199   : > { %v1627_v55 = vsel %vm1158_vm8, %v1619_v12, %v1549_v6  ;;  %v1555_v9 = vpop.permute.xlu0 %1554  ;;  %v1621_v25 = vsel %vm1149_vm7, %v1613_v11, %v5230_v47  ;;  %v1599_v7 = vsel %vm1122_vm4, %v1591_v38, %v5134_v58  ;;  %v1622_v57 = vsel %vm1149_vm7, %v1614_v39, %v5220_v31  ;;  %v5406_v26 = vld [vmem:[#allocation2 + $0x182] ss:$2 sm:$0xff]  ;;  %v2661_v12 = vld [vmem:[#allocation3 + $0x1] sm:$0xff] }
 0x19a   : > { %1903 = vrot.lane.b32.xlu1 %v6417_v43, %s3992_s26  ;;  %3610 = vmatmul.mubr.msk.f32.vlgmr.msra.gmra.mrb[8].mxu1 %vm1176_vm9, %v1627_v55  ;;  %v1630_v63 = vsel %vm1158_vm8, %v1622_v57, %v1555_v9  ;;  %v2662_v6 = vld [vmem:[#allocation3 + $0x11] sm:$0xff]  ;;  %v5424_v32 = vld [vmem:[#allocation3 + $0x20] sm:$0xff] }
 0x19b   : > { %1905 = vrot.lane.b32.xlu0 %v4578_v21, %s3992_s26  ;;  %3612 = vmatprep.mubr.msk.f32.mxu1 %vm1176_vm9, %v1628_v28  ;;  %v1592_v21 = vsel %vm1113_vm3, %v1584_v45, %v5092_v42  ;;  %v650_v42 = vld [vmem:[%s4906_s22 + $0x30] sm:$0xff]  ;;  %v2670_v55 = vld [vmem:[#allocation3 + $0x12] sm:$0xff]  ;;  %v3793_v51 = vpack.i.bf16 %v2662_v6, %v2661_v12 }
 0x19c   : > { %v1553_v40 = vpop.permute.xlu1 %1552  ;;  %3732 = vmatpush3.bf16.msra.mxu1 %v4478_v56  ;;  %v1600_v47 = vsel %vm1122_vm4, %v1592_v21, %v5128_v8  ;;  %v1607_v56 = vsel %vm1131_vm5, %v1599_v7, %v5164_v24  ;;  %v665_v8 = vmul.f32 %v4929_v44, %v650_v42  ;;  %v1593_v24 = vsel %vm1113_vm3, %v1585_v34, %v5110_v36  ;;  %v6418_v36 = vld [vmem:[#allocation39_spill] sm:$0xff]  ;;  %v5422_v19 = vld [vmem:[#allocation3 + $0x10] sm:$0xff]  ;;  %v2686_v57 = vld [vmem:[#allocation3 + $0x21] sm:$0xff] }
 0x19d   : > { %v1629_v17 = vsel %vm1158_vm8, %v1621_v25, %v1553_v40  ;;  %v1559_v49 = vpop.permute.xlu0 %1558  ;;  %3734 = vmatprep.subr.bf16.mxu1 %v4497_v61  ;;  %v1608_v58 = vsel %vm1131_vm5, %v1600_v47, %v5160_v5  ;;  %v1615_v31 = vsel %vm1140_vm6, %v1607_v56, %v5203_v37  ;;  %v1601_v37 = vsel %vm1122_vm4, %v1593_v24, %v5142_v23  ;;  %v5428_v34 = vld [vmem:[#allocation2 + $0x16a] ss:$2 sm:$0xff]  ;;  %v5437_v21 = vld [vmem:[#allocation2 + $0x19a] ss:$2 sm:$0xff] }
 0x19e   : > { %2019 = vrot.lane.b32.xlu1 %v5330_v30, %s3996_s18  ;;  %3613 = vmatmul.mubr.msk.f32.gmra.mrb[10].mxu1 %vm1176_vm9, %v1629_v17  ;;  %v1616_v54 = vsel %vm1140_vm6, %v1608_v58, %v5196_v13  ;;  %v1623_v1 = vsel %vm1149_vm7, %v1615_v31, %v5243_v59  ;;  %v680_v29 = vadd.f32 %v6418_v36, %v665_v8  ;;  %v6419_v13 = vld [vmem:[#allocation29_spill] sm:$0xff]  ;;  %v5446_v42 = vld [vmem:[#allocation3 + $0x30] sm:$0xff] }
 0x19f   : > { %2021 = vrot.lane.b32.xlu0 %v5340_v50, %s3996_s18  ;;  %3615 = vmatprep.mubr.msk.f32.mxu1 %vm1176_vm9, %v1630_v63  ;;  %v1624_v35 = vsel %vm1149_vm7, %v1616_v54, %v5234_v18  ;;  %v1609_v59 = vsel %vm1131_vm5, %v1601_v37, %v6420_v52  ;;  %v6421_v18 = vld [vmem:[#allocation14_spill] sm:$0xff]  ;;  %v3798_v28 = vpack.i.bf16 %v2670_v55, %v2669_v4  ;;  %v5432_v25 = vld [vmem:[#allocation3 + $0x22] sm:$0xff] }
 0x1a0   : > { %v1557_v5 = vpop.permute.xlu1 %1556  ;;  %3736 = vmatpush3.bf16.msra.mxu1 %v4497_v61  ;;  %v1632_v2 = vsel %vm1158_vm8, %v1624_v35, %v1559_v49  ;;  %v5387_v61 = vld [vmem:[#allocation2 + $0x152] ss:$2 sm:$0xff]  ;;  %v1617_v23 = vsel %vm1140_vm6, %v1609_v59, %v6421_v18  ;;  %v688_v10 = vmax.f32 %v680_v29, 0.0  ;;  %v3803_v38 = vpack.i.bf16 %v5424_v32, %v5422_v19  ;;  %v5440_v49 = vld [vmem:[#allocation3 + $0x31] sm:$0xff] }
 0x1a1   : > { %v1631_v0 = vsel %vm1158_vm8, %v1623_v1, %v1557_v5  ;;  %v5380_v3 = vpop.permute.xlu0 %1819  ;;  %3738 = vmatprep.subr.bf16.mxu1 %v6419_v13  ;;  %v1625_v20 = vsel %vm1149_vm7, %v1617_v23, %v5267_v46  ;;  %v1786_v46 = vld [vmem:[#allocation2 + $0x198] ss:$2 sm:$0xff]  ;;  %v3813_v7 = vpack.i.bf16 %v5432_v25, %v2670_v55  ;;  %v3808_v56 = vpack.i.bf16 %v2686_v57, %v2662_v6  ;;  %v3929_v54 = vld [vmem:[#allocation2 + $0x48] ss:$2 sm:$0xff] }
 0x1a2   : > { %1927 = vrot.lane.b32.xlu1 %v5387_v61, %s3993_s27  ;;  %3616 = vmatmul.mubr.msk.f32.gmra.mrb[12].mxu1 %vm1176_vm9, %v1631_v0  ;;  %697 = vst.msk [vmem:[#allocation3 + $0x71] sm:$0xff] %vm622_vm2, %v688_v10  ;;  %v3823_v63 = vpack.i.bf16 %v5440_v49, %v2686_v57  ;;  %v3818_v8 = vpack.i.bf16 %v5446_v42, %v5424_v32  ;;  %v3931_v0 = vld [vmem:[#allocation2 + $0x1a] ss:$2 sm:$0xff] }
 0x1a3   : > { %1959 = vrot.lane.b32.xlu0 %v1784_v33, %s3994_s28  ;;  %3618 = vmatprep.mubr.msk.f32.mxu1 %vm1176_vm9, %v1632_v2  ;;  %v3930_v33 = vld [vmem:[#allocation2 + $0x18] ss:$2 sm:$0xff]  ;;  %v5462_v2 = vld [vmem:[#allocation3 + $0x40] sm:$0xff] }
 0x1a4   : > { %v1561_v22 = vpop.permute.xlu1 %1560  ;;  %3740 = vmatpush3.bf16.msra.mxu1 %v6419_v13  ;;  %v2035_v37 = vsel %vm391_vm0, %v3930_v33, %v5380_v3  ;;  %v5458_v29 = vld [vmem:[#allocation3 + $0x32] sm:$0xff]  ;;  %v3838_v4 = vpack.i.bf16 %v5462_v2, %v5446_v42  ;;  %v3015_v33 = vld [vmem:[%s6251_s3 + $0x30] sm:$0xff] }
 0x1a5   : > { %v1633_v16 = vsel %vm1158_vm8, %v1625_v20, %v1561_v22  ;;  %v5402_v45 = vpop.permute.xlu0 %1823  ;;  %3742 = vmatprep.subr.bf16.mxu1 %v6422_v60  ;;  %v3009_v10 = vld [vmem:[%s6251_s3] sm:$0xff]  ;;  %v3010_v20 = vld [vmem:[%s6251_s3 + $0x8] sm:$0xff] }
 0x1a6   : > { %1929 = vrot.lane.b32.xlu1 %v5406_v26, %s3993_s27  ;;  %3619 = vmatmul.mubr.msk.f32.gmra.mrb[14].mxu1 %vm1176_vm9, %v1633_v16 }
 0x1a7   : > { %1991 = vrot.lane.b32.xlu0 %v5398_v53, %s3995_s29 }
 0x1a8   : > { %v1822_v27 = vpop.permute.xlu1 %1821  ;;  %3744 = vmatpush3.bf16.msra.mxu1 %v6422_v60  ;;  %v3833_v60 = vpack.i.bf16 %v5458_v29, %v5432_v25 }
 0x1a9   : > { %v1846_v9 = vpop.permute.xlu0 %1845  ;;  %3667 = vmatprep.subr.mxu1 %v3928_v48  ;;  %v2036_v1 = vsel %vm391_vm0, %v3929_v54, %v1822_v27  ;;  %v3932_v27 = vld [vmem:[#allocation2 + $0x4a] ss:$2 sm:$0xff] }
 0x1aa   : > { %1961 = vrot.lane.b32.xlu1 %v1786_v46, %s3994_s28  ;;  %v2044_v13 = vsel %vm622_vm2, %v2036_v1, %v1846_v9  ;;  %v651_v46 = vld [vmem:[%s4906_s22 + $0x38] sm:$0xff] }
 0x1ab   : > { %1993 = vrot.lane.b32.xlu0 %v5413_v62, %s3995_s29  ;;  %v666_v55 = vmul.f32 %v4929_v44, %v651_v46  ;;  %v3012_v44 = vld [vmem:[%s6251_s3 + $0x18] sm:$0xff] }
 0x1ac   : > { %v1844_v43 = vpop.permute.xlu1 %1843  ;;  %3668 = vmatpush3.msra.mxu1 %v3928_v48  ;;  %v5520_v54 = vld [vmem:[#allocation3 + $0x42] sm:$0xff] }
 0x1ad   : > { %v1870_v11 = vpop.permute.xlu0 %1869  ;;  %v2043_v35 = vsel %vm622_vm2, %v2035_v37, %v1844_v43  ;;  %v3016_v37 = vld [vmem:[%s6251_s3 + $0x38] sm:$0xff] }
 0x1ae   : > { %3794 = vrot.lane.b32.xlu1 %v3793_v51, %s3990_s24  ;;  %v2052_v3 = vsel %vm1113_vm3, %v2044_v13, %v1870_v11  ;;  %v3936_v13 = vld [vmem:[#allocation2 + $0x61] ss:$2 sm:$0xff]  ;;  %v3020_v46 = vld [vmem:[%s6251_s3 + $0x58] sm:$0xff] }
 0x1af   : > { %3799 = vrot.lane.b32.xlu0 %v3798_v28, %s3992_s26  ;;  %v3746_v28 = vpack.c.bf16 %v3010_v20, %v3009_v10  ;;  %v5552_v20 = vld [vmem:[#allocation3 + $0x50] sm:$0xff] }
 0x1b0   : > { %v1868_v39 = vpop.permute.xlu1 %1867 }
 0x1b1   : > { %v1894_v40 = vpop.permute.xlu0 %1893  ;;  %v2051_v52 = vsel %vm1113_vm3, %v2043_v35, %v1868_v39  ;;  %v3011_v39 = vld [vmem:[%s6251_s3 + $0x10] sm:$0xff] }
 0x1b2   : > { %2023 = vrot.lane.b32.xlu1 %v5428_v34, %s3996_s18  ;;  %v2060_v22 = vsel %vm1122_vm4, %v2052_v3, %v1894_v40  ;;  %v681_v40 = vadd.f32 %v6418_v36, %v666_v55  ;;  %v3013_v36 = vld [vmem:[%s6251_s3 + $0x20] sm:$0xff]  ;;  %v3935_v35 = vld [vmem:[#allocation2 + $0x4b] ss:$2 sm:$0xff]  ;;  %v3755_v3 = vpack.c.bf16 %v3016_v37, %v3015_v33 }
 0x1b3   : > { %3804 = vrot.lane.b32.xlu0 %v3803_v38, %s3994_s28  ;;  %v6424_v33 = vld [vmem:[#allocation46_spill] sm:$0xff] }
 0x1b4   : > { %v1892_v17 = vpop.permute.xlu1 %1891  ;;  %v689_v57 = vmax.f32 %v681_v40, 0.0  ;;  %v3024_v40 = vld [vmem:[%s6251_s3 + $0x78] sm:$0xff]  ;;  %v5602_v37 = vld [vmem:[#allocation3 + $0x51] sm:$0xff] }
 0x1b5   : > { %v1918_v47 = vpop.permute.xlu0 %1917  ;;  %v2059_v18 = vsel %vm1122_vm4, %v2051_v52, %v1892_v17  ;;  %v3848_v52 = vpack.i.bf16 %v5520_v54, %v5458_v29 }
 0x1b6   : > { %2025 = vrot.lane.b32.xlu1 %v5437_v21, %s3996_s18  ;;  %v2068_v12 = vsel %vm1131_vm5, %v2060_v22, %v1918_v47  ;;  %v3749_v47 = vpack.c.bf16 %v3012_v44, %v3011_v39  ;;  %698 = vst.msk [vmem:[#allocation3 + $0x81] sm:$0xff] %vm622_vm2, %v689_v57  ;;  %v3023_v44 = vld [vmem:[%s6251_s3 + $0x70] sm:$0xff]  ;;  %v3940_v57 = vld [vmem:[#allocation2 + $0x7b] ss:$2 sm:$0xff] }
 0x1b7   : > { %3814 = vrot.lane.b32.xlu0 %v3813_v7, %s3998_s20 }
 0x1b8   : > { %v1916_v58 = vpop.permute.xlu1 %1915 }
 0x1b9   : > { %v1950_v31 = vpop.permute.xlu0 %1949  ;;  %v2067_v16 = vsel %vm1131_vm5, %v2059_v18, %v1916_v58  ;;  %v3933_v58 = vld [vmem:[#allocation2 + $0x1b] ss:$2 sm:$0xff] }
 0x1ba   : > { %3809 = vrot.lane.b32.xlu1 %v3808_v56, %s3996_s18  ;;  %v2076_v9 = vsel %vm1140_vm6, %v2068_v12, %v1950_v31  ;;  %v3934_v31 = vld [vmem:[#allocation2 + $0x31] ss:$2 sm:$0xff]  ;;  %v3937_v12 = vld [vmem:[#allocation2 + $0x32] ss:$2 sm:$0xff] }
 0x1bb   : > { %3824 = vrot.lane.b32.xlu0 %v3823_v63, %s3999_s21 }
 0x1bc   : > { %v1948_v24 = vpop.permute.xlu1 %1947 }
 0x1bd   : > { %v1982_v5 = vpop.permute.xlu0 %1981  ;;  %v2075_v6 = vsel %vm1140_vm6, %v2067_v16, %v1948_v24 }
 0x1be   : > { %3819 = vrot.lane.b32.xlu1 %v3818_v8, %s4000_s30  ;;  %v2084_v43 = vsel %vm1149_vm7, %v2076_v9, %v1982_v5  ;;  %v5516_v8 = vld [vmem:[#allocation3 + $0x41] sm:$0xff] }
 0x1bf   : > { %2252 = vrot.lane.b32.xlu0 %v3931_v0, %s3989_s23  ;;  %v3843_v0 = vpack.i.bf16 %v5516_v8, %v5440_v49  ;;  %v3018_v49 = vld [vmem:[%s6251_s3 + $0x48] sm:$0xff] }
 0x1c0   : > { %v1980_v59 = vpop.permute.xlu1 %1979 }
 0x1c1   : > { %v2014_v23 = vpop.permute.xlu0 %2013  ;;  %v2083_v48 = vsel %vm1149_vm7, %v2075_v6, %v1980_v59  ;;  %v3938_v6 = vld [vmem:[#allocation2 + $0x62] ss:$2 sm:$0xff] }
 0x1c2   : > { %3829 = vrot.lane.b32.xlu1 %v3823_v63, %s3990_s24  ;;  %v2092_v7 = vsel %vm1158_vm8, %v2084_v43, %v2014_v23  ;;  %v3014_v63 = vld [vmem:[%s6251_s3 + $0x28] sm:$0xff]  ;;  %v3017_v23 = vld [vmem:[%s6251_s3 + $0x40] sm:$0xff] }
 0x1c3   : > { %2254 = vrot.lane.b32.xlu0 %v3932_v27, %s3989_s23  ;;  %v3752_v1 = vpack.c.bf16 %v3014_v63, %v3013_v36  ;;  %v3758_v22 = vpack.c.bf16 %v3018_v49, %v3017_v23  ;;  %v3853_v27 = vpack.i.bf16 %v5552_v20, %v5462_v2  ;;  %v3767_v36 = vpack.c.bf16 %v3024_v40, %v3023_v44  ;;  %v3942_v23 = vld [vmem:[#allocation2 + $0xab] ss:$2 sm:$0xff] }
 0x1c4   : > { %v2012_v51 = vpop.permute.xlu1 %2011 }
 0x1c5   : > { %v5487_v11 = vpop.permute.xlu0 %1847  ;;  %v2091_v38 = vsel %vm1158_vm8, %v2083_v48, %v2012_v51  ;;  %v3021_v48 = vld [vmem:[%s6251_s3 + $0x60] sm:$0xff]  ;;  %v3022_v51 = vld [vmem:[%s6251_s3 + $0x68] sm:$0xff] }
 0x1c6   : > { %3834 = vrot.lane.b32.xlu1 %v3833_v60, %s3992_s26  ;;  %3639 = vmatprep.mubr.msk.f32.mxu0 %vm1176_vm9, %v2091_v38  ;;  %v3019_v60 = vld [vmem:[%s6251_s3 + $0x50] sm:$0xff]  ;;  %v3764_v38 = vpack.c.bf16 %v3022_v51, %v3021_v48 }
 0x1c7   : > { %3839 = vrot.lane.b32.xlu0 %v3838_v4, %s3994_s28  ;;  %3640 = vmatmul.mubr.msk.f32.vlgmr.msra.gmra.mrb[0].mxu0 %vm1176_vm9, %v2092_v7  ;;  %v3761_v55 = vpack.c.bf16 %v3020_v46, %v3019_v60  ;;  %v6423_v7 = vld [vmem:[#allocation47_spill] sm:$0xff]  ;;  %v3943_v60 = vld [vmem:[#allocation2 + $0x78] ss:$2 sm:$0xff]  ;;  %v3944_v51 = vld [vmem:[#allocation2 + $0x91] ss:$2 sm:$0xff] }
 0x1c8   : > { %v5502_v17 = vpop.permute.xlu1 %1825  ;;  %3747 = vmatpush1.bf16.msra.mxu0 %v3746_v28  ;;  %v3939_v28 = vld [vmem:[#allocation2 + $0x7a] ss:$2 sm:$0xff]  ;;  %v2037_v46 = vsel %vm391_vm0, %v3943_v60, %v5402_v45  ;;  %v2237_v60 = vld [vmem:[#allocation2 + $0x4b] ss:$2 sm:$0xff] }
 0x1c9   : > { %v5504_v56 = vpop.permute.xlu0 %1871  ;;  %3748 = vmatprep.subr.bf16.mxu0 %v3997_v14 }
 0x1ca   : > { %2276 = vrot.lane.b32.xlu1 %v3933_v58, %s3990_s24  ;;  %v3025_v58 = vld [vmem:[%s6251_s3 + $0x80] sm:$0xff] }
 0x1cb   : > { %2300 = vrot.lane.b32.xlu0 %v3934_v31, %s3991_s25  ;;  %v3026_v31 = vld [vmem:[%s6251_s3 + $0x88] sm:$0xff] }
 0x1cc   : > { %v5518_v24 = vpop.permute.xlu1 %1849  ;;  %3750 = vmatpush1.bf16.msra.mxu0 %v3749_v47 }
 0x1cd   : > { %v5522_v5 = vpop.permute.xlu0 %1895  ;;  %3751 = vmatprep.subr.bf16.mxu0 %v3997_v14 }
 0x1ce   : > { %2278 = vrot.lane.b32.xlu1 %v3935_v35, %s3990_s24 }
 0x1cf   : > { %2302 = vrot.lane.b32.xlu0 %v3936_v13, %s3991_s25 }
 0x1d0   : > { %v5537_v59 = vpop.permute.xlu1 %1873  ;;  %3753 = vmatpush1.bf16.msra.mxu0 %v3752_v1  ;;  %v3941_v1 = vld [vmem:[#allocation2 + $0xaa] ss:$2 sm:$0xff] }
 0x1d1   : > { %v5539_v18 = vpop.permute.xlu0 %1897  ;;  %3754 = vmatprep.subr.bf16.mxu0 %v3997_v14 }
 0x1d2   : > { %3844 = vrot.lane.b32.xlu1 %v3843_v0, %s3996_s18  ;;  %v3770_v0 = vpack.c.bf16 %v3026_v31, %v3025_v58  ;;  %v6427_v58 = vld [vmem:[#allocation45_spill] sm:$0xff] }
 0x1d3   : > { %3849 = vrot.lane.b32.xlu0 %v3848_v52, %s3998_s20  ;;  %v6425_v52 = vld [vmem:[#allocation41_spill] sm:$0xff] }
 0x1d4   : > { %v5550_v10 = vpop.permute.xlu1 %1827  ;;  %3756 = vmatpush1.bf16.msra.mxu0 %v3755_v3  ;;  %v3858_v3 = vpack.i.bf16 %v5602_v37, %v5516_v8 }
 0x1d5   : > { %v5554_v16 = vpop.permute.xlu0 %1829  ;;  %3757 = vmatprep.subr.bf16.mxu0 %v3997_v14 }
 0x1d6   : > { %2324 = vrot.lane.b32.xlu1 %v3937_v12, %s3992_s26  ;;  %v6426_v12 = vld [vmem:[#allocation42_spill] sm:$0xff] }
 0x1d7   : > { %2326 = vrot.lane.b32.xlu0 %v3938_v6, %s3992_s26 }
 0x1d8   : > { %v1920_v4 = vpop.permute.xlu1 %1919  ;;  %3759 = vmatpush1.bf16.msra.mxu0 %v3758_v22 }
 0x1d9   : > { %v5567_v9 = vpop.permute.xlu0 %1921  ;;  %3760 = vmatprep.subr.bf16.mxu0 %v3997_v14 }
 0x1da   : > { %2256 = vrot.lane.b32.xlu1 %v3939_v28, %s3989_s23 }
 0x1db   : > { %3854 = vrot.lane.b32.xlu0 %v3853_v27, %s4000_s30 }
 0x1dc   : > { %v5578_v43 = vpop.permute.xlu1 %1851  ;;  %3762 = vmatpush1.bf16.msra.mxu0 %v3761_v55 }
 0x1dd   : > { %v5580_v39 = vpop.permute.xlu0 %1853  ;;  %3763 = vmatprep.subr.bf16.mxu0 %v3997_v14 }
 0x1de   : > { %2348 = vrot.lane.b32.xlu1 %v6423_v7, %s3993_s27 }
 0x1df   : > { %2280 = vrot.lane.b32.xlu0 %v3940_v57, %s3990_s24 }
 0x1e0   : > { %v1952_v47 = vpop.permute.xlu1 %1951  ;;  %3765 = vmatpush1.bf16.msra.mxu0 %v3764_v38  ;;  %v3945_v38 = vld [vmem:[#allocation2 + $0xc1] ss:$2 sm:$0xff] }
 0x1e1   : > { %v1954_v63 = vpop.permute.xlu0 %1953  ;;  %3766 = vmatprep.subr.bf16.mxu0 %v3997_v14 }
 0x1e2   : > { %2258 = vrot.lane.b32.xlu1 %v3941_v1, %s3989_s23 }
 0x1e3   : > { %2372 = vrot.lane.b32.xlu0 %v6424_v33, %s3994_s28 }
 0x1e4   : > { %v5604_v35 = vpop.permute.xlu1 %1875  ;;  %3768 = vmatpush1.bf16.msra.mxu0 %v3767_v36 }
 0x1e5   : > { %v5606_v13 = vpop.permute.xlu0 %1877  ;;  %3769 = vmatprep.subr.bf16.mxu0 %v3997_v14  ;;  %v2045_v14 = vsel %vm622_vm2, %v2037_v46, %v5487_v11 }
 0x1e6   : > { %2350 = vrot.lane.b32.xlu1 %v6425_v52, %s3993_s27  ;;  %v2053_v8 = vsel %vm1113_vm3, %v2045_v14, %v5504_v56  ;;  %v3946_v56 = vld [vmem:[#allocation2 + $0xa8] ss:$2 sm:$0xff] }
 0x1e7   : > { %2282 = vrot.lane.b32.xlu0 %v3942_v23, %s3990_s24  ;;  %v2061_v27 = vsel %vm1122_vm4, %v2053_v8, %v5522_v5  ;;  %v2038_v5 = vsel %vm391_vm0, %v3946_v56, %v5502_v17  ;;  %v6428_v17 = vld [vmem:[#allocation43_spill] sm:$0xff]  ;;  %v3947_v52 = vld [vmem:[#allocation2 + $0x92] ss:$2 sm:$0xff]  ;;  %v3950_v56 = vld [vmem:[#allocation2 + $0x93] ss:$2 sm:$0xff] }
 0x1e8   : > { %v1984_v49 = vpop.permute.xlu1 %1983  ;;  %3771 = vmatpush1.bf16.msra.mxu0 %v3770_v0  ;;  %v2069_v45 = vsel %vm1131_vm5, %v2061_v27, %v1920_v4  ;;  %v2046_v4 = vsel %vm622_vm2, %v2038_v5, %v5518_v24  ;;  %v3948_v27 = vld [vmem:[#allocation2 + $0xc2] ss:$2 sm:$0xff] }
 0x1e9   : > { %v1986_v22 = vpop.permute.xlu0 %1985  ;;  %v2077_v28 = vsel %vm1140_vm6, %v2069_v45, %v1952_v47  ;;  %v2054_v47 = vsel %vm1113_vm3, %v2046_v4, %v5537_v59  ;;  %v5690_v4 = vld [vmem:[#allocation3 + $0x60] sm:$0xff] }
 0x1ea   : > { %3859 = vrot.lane.b32.xlu1 %v3858_v3, %s3999_s21  ;;  %v2085_v44 = vsel %vm1149_vm7, %v2077_v28, %v1984_v49  ;;  %v2062_v1 = vsel %vm1122_vm4, %v2054_v47, %v5539_v18  ;;  %v6429_v47 = vld [vmem:[#allocation44_spill] sm:$0xff] }
 0x1eb   : > { %2374 = vrot.lane.b32.xlu0 %v6426_v12, %s3994_s28  ;;  %v2070_v59 = vsel %vm1131_vm5, %v2062_v1, %v5567_v9 }
 0x1ec   : > { %v5623_v6 = vpop.permute.xlu1 %1899  ;;  %v2078_v49 = vsel %vm1140_vm6, %v2070_v59, %v1954_v63  ;;  %v3952_v59 = vld [vmem:[#allocation2 + $0xd8] ss:$2 sm:$0xff] }
 0x1ed   : > { %v5627_v55 = vpop.permute.xlu0 %1831  ;;  %v5629_v48 = vpop.f32.mrb[0].mxu1  ;;  %v2086_v46 = vsel %vm1149_vm7, %v2078_v49, %v1986_v22  ;;  %v3949_v22 = vld [vmem:[#allocation2 + $0xda] ss:$2 sm:$0xff]  ;;  %v3953_v49 = vld [vmem:[#allocation2 + $0xdb] ss:$2 sm:$0xff] }
 0x1ee   : > { %2304 = vrot.lane.b32.xlu1 %v3944_v51, %s3991_s25  ;;  %v5633_v11 = vpop.f32.mrb[1].mxu1  ;;  %v5684_v51 = vld [vmem:[#allocation3 + $0x52] sm:$0xff] }
 0x1ef   : > { %2306 = vrot.lane.b32.xlu0 %v3945_v38, %s3991_s25  ;;  %v3868_v5 = vpack.i.bf16 %v5684_v51, %v5520_v54 }
 0x1f0   : > { %v2016_v40 = vpop.permute.xlu1 %2015 }
 0x1f1   : > { %v2093_v7 = vsel %vm1158_vm8, %v2085_v44, %v2016_v40  ;;  %v5643_v57 = vpop.permute.xlu0 %1923  ;;  %v5645_v36 = vpop.f32.mrb[2].mxu1  ;;  %v3951_v44 = vld [vmem:[#allocation2 + $0x10a] ss:$2 sm:$0xff] }
 0x1f2   : > { %2396 = vrot.lane.b32.xlu1 %v6427_v58, %s3995_s29  ;;  %v5651_v31 = vpop.f32.mrb[3].mxu1  ;;  %3642 = vmatprep.mubr.msk.f32.mxu0 %vm1176_vm9, %v2093_v7  ;;  %v3873_v58 = vpack.i.bf16 %v5690_v4, %v5552_v20 }
 0x1f3   : > { %2398 = vrot.lane.b32.xlu0 %v6428_v17, %s3995_s29 }
 0x1f4   : > { %v1902_v24 = vpop.permute.xlu1 %1901 }
 0x1f5   : > { %v5658_v33 = vpop.permute.xlu0 %1833  ;;  %v5660_v0 = vpop.f32.mrb[4].mxu1 }
 0x1f6   : > { %2328 = vrot.lane.b32.xlu1 %v3947_v52, %s3992_s26  ;;  %v5665_v23 = vpop.f32.mrb[5].mxu1  ;;  %v2039_v52 = vsel %vm391_vm0, %v3952_v59, %v5550_v10 }
 0x1f7   : > { %3864 = vrot.lane.b32.xlu0 %v3858_v3, %s3990_s24  ;;  %v2239_v3 = vld [vmem:[#allocation2 + $0x7b] ss:$2 sm:$0xff] }
 0x1f8   : > { %v2018_v18 = vpop.permute.xlu1 %2017 }
 0x1f9   : > { %v2094_v14 = vsel %vm1158_vm8, %v2086_v46, %v2018_v18  ;;  %v1926_v12 = vpop.permute.xlu0 %1925  ;;  %v5671_v8 = vpop.f32.mrb[6].mxu1  ;;  %v2047_v18 = vsel %vm622_vm2, %v2039_v52, %v5578_v43  ;;  %v3956_v52 = vld [vmem:[#allocation2 + $0x10b] ss:$2 sm:$0xff] }
 0x1fa   : > { %2428 = vrot.lane.b32.xlu1 %v2237_v60, %s3996_s18  ;;  %v5674_v9 = vpop.f32.mrb[7].mxu1  ;;  %3643 = vmatmul.mubr.msk.f32.gmra.mrb[2].mxu0 %vm1176_vm9, %v2094_v14  ;;  %v3954_v60 = vld [vmem:[#allocation2 + $0x108] ss:$2 sm:$0xff] }
 0x1fb   : > { %2330 = vrot.lane.b32.xlu0 %v3948_v27, %s3992_s26  ;;  %v2040_v46 = vsel %vm391_vm0, %v3954_v60, %v5554_v16  ;;  %v2055_v27 = vsel %vm1113_vm3, %v2047_v18, %v5604_v35  ;;  %v3957_v60 = vld [vmem:[#allocation2 + $0x121] ss:$2 sm:$0xff]  ;;  %v5740_v18 = vld [vmem:[#allocation3 + $0x62] sm:$0xff] }
 0x1fc   : > { %v5678_v63 = vpop.permute.xlu1 %1855  ;;  %v2048_v14 = vsel %vm622_vm2, %v2040_v46, %v5580_v39 }
 0x1fd   : > { %v5680_v45 = vpop.permute.xlu0 %1857  ;;  %v2056_v10 = vsel %vm1113_vm3, %v2048_v14, %v5606_v13 }
 0x1fe   : > { %2260 = vrot.lane.b32.xlu1 %v3949_v22, %s3989_s23  ;;  %v2063_v22 = vsel %vm1122_vm4, %v2055_v27, %v5623_v6  ;;  %v2064_v43 = vsel %vm1122_vm4, %v2056_v10, %v1902_v24  ;;  %v6433_v27 = vld [vmem:[#allocation6_spill] sm:$0xff]  ;;  %v3883_v10 = vpack.i.bf16 %v5740_v18, %v5684_v51 }
 0x1ff   : > { %2430 = vrot.lane.b32.xlu0 %v2239_v3, %s3996_s18  ;;  %v2071_v16 = vsel %vm1131_vm5, %v2063_v22, %v5643_v57  ;;  %v2072_v39 = vsel %vm1131_vm5, %v2064_v43, %v1926_v12  ;;  %v6431_v12 = vld [vmem:[#allocation5_spill] sm:$0xff] }
 0x200   : > { %v1956_v28 = vpop.permute.xlu1 %1955  ;;  %v3958_v22 = vld [vmem:[#allocation2 + $0x138] ss:$2 sm:$0xff] }
 0x201   : > { %v1958_v38 = vpop.permute.xlu0 %1957  ;;  %v2079_v35 = vsel %vm1140_vm6, %v2071_v16, %v1956_v28  ;;  %v5733_v28 = vld [vmem:[#allocation3 + $0x61] sm:$0xff]  ;;  %v2041_v16 = vsel %vm391_vm0, %v3958_v22, %v5627_v55 }
 0x202   : > { %2352 = vrot.lane.b32.xlu1 %v3950_v56, %s3993_s27  ;;  %v2080_v13 = vsel %vm1140_vm6, %v2072_v39, %v1958_v38  ;;  %v2049_v43 = vsel %vm622_vm2, %v2041_v16, %v5678_v63 }
 0x203   : > { %2262 = vrot.lane.b32.xlu0 %v3951_v44, %s3989_s23  ;;  %v3955_v44 = vld [vmem:[#allocation2 + $0xf1] ss:$2 sm:$0xff] }
 0x204   : > { %v1880_v40 = vpop.permute.xlu1 %1879 }
 0x205   : > { %v5692_v7 = vpop.permute.xlu0 %1881  ;;  %v2057_v39 = vsel %vm1113_vm3, %v2049_v43, %v1880_v40 }
 0x206   : > { %3869 = vrot.lane.b32.xlu1 %v3868_v5, %s3992_s26  ;;  %v6430_v5 = vld [vmem:[#allocation40_spill] sm:$0xff] }
 0x207   : > { %2354 = vrot.lane.b32.xlu0 %v6429_v47, %s3993_s27 }
 0x208   : > { %v1988_v17 = vpop.permute.xlu1 %1987 }
 0x209   : > { %v1990_v1 = vpop.permute.xlu0 %1989  ;;  %v2087_v6 = vsel %vm1149_vm7, %v2079_v35, %v1988_v17  ;;  %v3959_v35 = vld [vmem:[#allocation2 + $0xf2] ss:$2 sm:$0xff] }
 0x20a   : > { %2284 = vrot.lane.b32.xlu1 %v3953_v49, %s3990_s24  ;;  %v3878_v49 = vpack.i.bf16 %v5733_v28, %v5602_v37 }
 0x20b   : > { %3874 = vrot.lane.b32.xlu0 %v3873_v58, %s3994_s28  ;;  %v2088_v58 = vsel %vm1149_vm7, %v2080_v13, %v1990_v1  ;;  %v6432_v1 = vld [vmem:[#allocation4_spill] sm:$0xff] }
 0x20c   : > { %v1904_v3 = vpop.permute.xlu1 %1903  ;;  %v2241_v13 = vld [vmem:[#allocation2 + $0xab] ss:$2 sm:$0xff] }
 0x20d   : > { %v1906_v56 = vpop.permute.xlu0 %1905 }
 0x20e   : > { %2376 = vrot.lane.b32.xlu1 %v6430_v5, %s3994_s28 }
 0x20f   : > { %2308 = vrot.lane.b32.xlu0 %v3955_v44, %s3991_s25  ;;  %v2065_v44 = vsel %vm1122_vm4, %v2057_v39, %v1904_v3  ;;  %v3963_v39 = vld [vmem:[#allocation2 + $0xf3] ss:$2 sm:$0xff] }
 0x210   : > { %v2020_v47 = vpop.permute.xlu1 %2019 }
 0x211   : > { %v2095_v57 = vsel %vm1158_vm8, %v2087_v6, %v2020_v47  ;;  %v2022_v24 = vpop.permute.xlu0 %2021  ;;  %v3960_v6 = vld [vmem:[#allocation2 + $0x168] ss:$2 sm:$0xff] }
 0x212   : > { %v2096_v59 = vsel %vm1158_vm8, %v2088_v58, %v2022_v24  ;;  %2286 = vrot.lane.b32.xlu1 %v3956_v52, %s3990_s24  ;;  %3645 = vmatprep.mubr.msk.f32.mxu0 %vm1176_vm9, %v2095_v57  ;;  %v2042_v47 = vsel %vm391_vm0, %v3960_v6, %v5658_v33 }
 0x213   : > { %2400 = vrot.lane.b32.xlu0 %v6431_v12, %s3995_s29  ;;  %3646 = vmatmul.mubr.msk.f32.gmra.mrb[4].mxu0 %vm1176_vm9, %v2096_v59  ;;  %v2050_v63 = vsel %vm622_vm2, %v2042_v47, %v5680_v45  ;;  %v3961_v59 = vld [vmem:[#allocation2 + $0x122] ss:$2 sm:$0xff] }
 0x214   : > { %v1928_v38 = vpop.permute.xlu1 %1927  ;;  %v2058_v40 = vsel %vm1113_vm3, %v2050_v63, %v5692_v7 }
 0x215   : > { %v1960_v17 = vpop.permute.xlu0 %1959  ;;  %v2073_v55 = vsel %vm1131_vm5, %v2065_v44, %v1928_v38  ;;  %v2066_v3 = vsel %vm1122_vm4, %v2058_v40, %v1906_v56  ;;  %v2243_v38 = vld [vmem:[#allocation2 + $0xdb] ss:$2 sm:$0xff]  ;;  %v2653_v56 = vld [vmem:[#allocation3] sm:$0xff] }
 0x216   : > { %2378 = vrot.lane.b32.xlu1 %v6432_v1, %s3994_s28  ;;  %v2081_v24 = vsel %vm1140_vm6, %v2073_v55, %v1960_v17  ;;  %v5773_v17 = vld [vmem:[#allocation3 + $0x70] sm:$0xff] }
 0x217   : > { %2310 = vrot.lane.b32.xlu0 %v3957_v60, %s3991_s25  ;;  %v3962_v60 = vld [vmem:[#allocation2 + $0x13a] ss:$2 sm:$0xff] }
 0x218   : > { %v1930_v46 = vpop.permute.xlu1 %1929  ;;  %v5787_v55 = vld [vmem:[#allocation3 + $0x71] sm:$0xff] }
 0x219   : > { %v1992_v14 = vpop.permute.xlu0 %1991  ;;  %v2074_v33 = vsel %vm1131_vm5, %v2066_v3, %v1930_v46 }
 0x21a   : > { %3879 = vrot.lane.b32.xlu1 %v3878_v49, %s3996_s18  ;;  %v2089_v52 = vsel %vm1149_vm7, %v2081_v24, %v1992_v14 }
 0x21b   : > { %2402 = vrot.lane.b32.xlu0 %v6433_v27, %s3995_s29 }
 0x21c   : > { %v1962_v37 = vpop.permute.xlu1 %1961 }
 0x21d   : > { %v1994_v5 = vpop.permute.xlu0 %1993  ;;  %v2082_v45 = vsel %vm1140_vm6, %v2074_v33, %v1962_v37  ;;  %v3965_v33 = vld [vmem:[#allocation2 + $0x123] ss:$2 sm:$0xff] }
 0x21e   : > { %2332 = vrot.lane.b32.xlu1 %v3959_v35, %s3992_s26  ;;  %v2090_v46 = vsel %vm1149_vm7, %v2082_v45, %v1994_v5  ;;  %v3888_v35 = vpack.i.bf16 %v5773_v17, %v5690_v4 }
 0x21f   : > { %3884 = vrot.lane.b32.xlu0 %v3883_v10, %s3998_s20 }
 0x220   : > { %v3795_v58 = vpop.permute.xlu1 %3794 }
 0x221   : > { %v3800_v57 = vpop.permute.xlu0 %3799  ;;  %v3796_v49 = vunpack.i.l.bf16 %v3795_v58  ;;  %v3797_v14 = vunpack.i.h.bf16 %v3795_v58 }
 0x222   : > { %2432 = vrot.lane.b32.xlu1 %v2241_v13, %s3996_s18  ;;  %v3801_v10 = vunpack.i.l.bf16 %v3800_v57  ;;  %v3802_v44 = vunpack.i.h.bf16 %v3800_v57  ;;  %v3964_v13 = vld [vmem:[#allocation2 + $0x16a] ss:$2 sm:$0xff] }
 0x223   : > { %2334 = vrot.lane.b32.xlu0 %v3961_v59, %s3992_s26  ;;  %v2950_v37 = vsel %vm622_vm2, %v2653_v56, %v3796_v49  ;;  %v2951_v5 = vsel %vm622_vm2, %v5422_v19, %v3797_v14  ;;  %v3893_v19 = vpack.i.bf16 %v5787_v55, %v5733_v28 }
 0x224   : > { %v2024_v12 = vpop.permute.xlu1 %2023  ;;  %v2958_v58 = vsel %vm1122_vm4, %v2950_v37, %v3801_v10  ;;  %v2959_v59 = vsel %vm1122_vm4, %v2951_v5, %v3802_v44 }
 0x225   : > { %v2097_v1 = vsel %vm1158_vm8, %v2089_v52, %v2024_v12  ;;  %v3805_v7 = vpop.permute.xlu0 %3804 }
 0x226   : > { %2264 = vrot.lane.b32.xlu1 %v3962_v60, %s3989_s23  ;;  %3648 = vmatprep.mubr.msk.f32.mxu0 %vm1176_vm9, %v2097_v1  ;;  %v3806_v43 = vunpack.i.l.bf16 %v3805_v7  ;;  %v3807_v6 = vunpack.i.h.bf16 %v3805_v7 }
 0x227   : > { %2434 = vrot.lane.b32.xlu0 %v2243_v38, %s3996_s18 }
 0x228   : > { %v2026_v27 = vpop.permute.xlu1 %2025  ;;  %v2966_v57 = vsel %vm1140_vm6, %v2958_v58, %v3806_v43  ;;  %v2967_v52 = vsel %vm1140_vm6, %v2959_v59, %v3807_v6  ;;  %v3967_v43 = vld [vmem:[#allocation2 + $0x151] ss:$2 sm:$0xff]  ;;  %v3969_v58 = vld [vmem:[#allocation2 + $0x181] ss:$2 sm:$0xff] }
 0x229   : > { %v2098_v22 = vsel %vm1158_vm8, %v2090_v46, %v2026_v27  ;;  %v3815_v16 = vpop.permute.xlu0 %3814  ;;  %v3966_v46 = vld [vmem:[#allocation2 + $0x13b] ss:$2 sm:$0xff]  ;;  %v2245_v6 = vld [vmem:[#allocation2 + $0x10b] ss:$2 sm:$0xff] }
 0x22a   : > { %2356 = vrot.lane.b32.xlu1 %v3963_v39, %s3993_s27  ;;  %3649 = vmatmul.mubr.msk.f32.gmra.mrb[6].mxu0 %vm1176_vm9, %v2098_v22  ;;  %v3816_v24 = vunpack.i.l.bf16 %v3815_v16  ;;  %v3817_v12 = vunpack.i.h.bf16 %v3815_v16  ;;  %v3970_v59 = vld [vmem:[#allocation2 + $0x153] ss:$2 sm:$0xff] }
 0x22b   : > { %2266 = vrot.lane.b32.xlu0 %v3964_v13, %s3989_s23  ;;  %3479 = vmatprep.mubr.msk.f32.mxu0 %vm622_vm2, %v5432_v25  ;;  %v3968_v13 = vld [vmem:[#allocation2 + $0x16b] ss:$2 sm:$0xff] }
 0x22c   : > { %v3810_v47 = vpop.permute.xlu1 %3809 }
 0x22d   : > { %v3812_v63 = vunpack.i.h.bf16 %v3810_v47  ;;  %v3811_v40 = vunpack.i.l.bf16 %v3810_v47  ;;  %v3825_v3 = vpop.permute.xlu0 %3824 }
 0x22e   : > { %3889 = vrot.lane.b32.xlu1 %v3888_v35, %s4000_s30  ;;  %v3826_v38 = vunpack.i.l.bf16 %v3825_v3  ;;  %v3827_v14 = vunpack.i.h.bf16 %v3825_v3 }
 0x22f   : > { %v2974_v25 = vsel %vm1158_vm8, %v2966_v57, %v3811_v40  ;;  %2358 = vrot.lane.b32.xlu0 %v3965_v33, %s3993_s27  ;;  %v2975_v1 = vsel %vm1158_vm8, %v2967_v52, %v3812_v63  ;;  %v5853_v40 = vld [vmem:[#allocation3 + $0x72] sm:$0xff]  ;;  %v2684_v57 = vld [vmem:[#allocation3 + $0x80] sm:$0xff] }
 0x230   : > { %v3820_v45 = vpop.permute.xlu1 %3819  ;;  %v2983_v56 = vsel %vm2982_vm11, %v2974_v25, %v3816_v24  ;;  %v2984_v22 = vsel %vm2982_vm11, %v2975_v1, %v3817_v12  ;;  %v3908_v25 = vpack.i.bf16 %v2684_v57, %v5773_v17 }
 0x231   : > { %v3822_v7 = vunpack.i.h.bf16 %v3820_v45  ;;  %v3821_v49 = vunpack.i.l.bf16 %v3820_v45  ;;  %v5799_v60 = vpop.permute.xlu0 %2252 }
 0x232   : > { %2288 = vrot.lane.b32.xlu1 %v3966_v46, %s3990_s24 }
 0x233   : > { %v2992_v28 = vsel %vm2991_vm12, %v2983_v56, %v3821_v49  ;;  %3894 = vrot.lane.b32.xlu0 %v3893_v19, %s3999_s21  ;;  %v2993_v37 = vsel %vm2991_vm12, %v2984_v22, %v3822_v7  ;;  %v5878_v56 = vld [vmem:[#allocation3 + $0x81] sm:$0xff] }
 0x234   : > { %v5805_v27 = vpop.permute.xlu1 %3829  ;;  %v3001_v10 = vsel %vm3000_vm13, %v2992_v28, %v3826_v38  ;;  %v3002_v35 = vsel %vm3000_vm13, %v2993_v37, %v3827_v14 }
 0x235   : > { %v5809_v16 = vpop.permute.xlu0 %2254  ;;  %3116 = vmatmul.mubr.f32.vlgmr.msra.gmra.mrb[8].mxu0 %v3001_v10  ;;  %v3832_v45 = vunpack.i.h.bf16 %v5805_v27 }
 0x236   : > { %2380 = vrot.lane.b32.xlu1 %v5259_v41, %s3994_s28  ;;  %3480 = vmatprep.mubr.msk.f32.mxu0 %vm622_vm2, %v5458_v29 }
 0x237   : > { %2312 = vrot.lane.b32.xlu0 %v3967_v43, %s3991_s25  ;;  %v2953_v10 = vsel %vm622_vm2, %v5446_v42, %v3832_v45  ;;  %v2251_v45 = vld [vmem:[#allocation2 + $0x19b] ss:$2 sm:$0xff] }
 0x238   : > { %v5817_v39 = vpop.permute.xlu1 %3834 }
 0x239   : > { %v5820_v44 = vpop.permute.xlu0 %3839  ;;  %3121 = vmatmul.mubr.f32.gmra.mrb[10].mxu0 %v3002_v35  ;;  %v3836_v12 = vunpack.i.l.bf16 %v5817_v39  ;;  %v3837_v46 = vunpack.i.h.bf16 %v5817_v39 }
 0x23a   : > { %2290 = vrot.lane.b32.xlu1 %v3968_v13, %s3990_s24  ;;  %3481 = vmatprep.mubr.msk.f32.mxu0 %vm622_vm2, %v5520_v54  ;;  %v3841_v7 = vunpack.i.l.bf16 %v5820_v44  ;;  %v3842_v22 = vunpack.i.h.bf16 %v5820_v44 }
 0x23b   : > { %2404 = vrot.lane.b32.xlu0 %v5330_v30, %s3995_s29 }
 0x23c   : > { %v5827_v41 = vpop.permute.xlu1 %2276 }
 0x23d   : > { %v5829_v29 = vpop.permute.xlu0 %2300 }
 0x23e   : > { %2382 = vrot.lane.b32.xlu1 %v5269_v15, %s3994_s28 }
 0x23f   : > { %2336 = vrot.lane.b32.xlu0 %v5387_v61, %s3992_s26  ;;  %v2247_v61 = vld [vmem:[#allocation2 + $0x13b] ss:$2 sm:$0xff] }
 0x240   : > { %v5835_v5 = vpop.permute.xlu1 %2278 }
 0x241   : > { %v5837_v47 = vpop.permute.xlu0 %2302 }
 0x242   : > { %2314 = vrot.lane.b32.xlu1 %v3969_v58, %s3991_s25 }
 0x243   : > { %2436 = vrot.lane.b32.xlu0 %v2245_v6, %s3996_s18 }
 0x244   : > { %v3845_v30 = vpop.permute.xlu1 %3844 }
 0x245   : > { %v5841_v54 = vpop.permute.xlu0 %3849  ;;  %v3846_v14 = vunpack.i.l.bf16 %v3845_v30  ;;  %v3847_v35 = vunpack.i.h.bf16 %v3845_v30 }
 0x246   : > { %2406 = vrot.lane.b32.xlu1 %v5340_v50, %s3995_s29  ;;  %v3903_v50 = vpack.i.bf16 %v5853_v40, %v5740_v18  ;;  %v3851_v43 = vunpack.i.l.bf16 %v5841_v54  ;;  %v3852_v44 = vunpack.i.h.bf16 %v5841_v54 }
 0x247   : > { %2338 = vrot.lane.b32.xlu0 %v5406_v26, %s3992_s26  ;;  %v3971_v26 = vld [vmem:[#allocation2 + $0x183] ss:$2 sm:$0xff] }
 0x248   : > { %v5847_v15 = vpop.permute.xlu1 %2324 }
 0x249   : > { %v5849_v63 = vpop.permute.xlu0 %2326 }
 0x24a   : > { %3899 = vrot.lane.b32.xlu1 %v3893_v19, %s3990_s24  ;;  %v3831_v19 = vunpack.i.l.bf16 %v5805_v27 }
 0x24b   : > { %2438 = vrot.lane.b32.xlu0 %v2247_v61, %s3996_s18 }
 0x24c   : > { %v5855_v3 = vpop.permute.xlu1 %2256  ;;  %v2952_v1 = vsel %vm622_vm2, %v5424_v32, %v3831_v19  ;;  %v3913_v32 = vpack.i.bf16 %v5878_v56, %v5787_v55 }
 0x24d   : > { %v3855_v24 = vpop.permute.xlu0 %3854  ;;  %v2960_v28 = vsel %vm1122_vm4, %v2952_v1, %v3836_v12  ;;  %v3972_v1 = vld [vmem:[#allocation2 + $0x19] ss:$2 sm:$0xff] }
 0x24e   : > { %2360 = vrot.lane.b32.xlu1 %v3970_v59, %s3993_s27  ;;  %v2968_v37 = vsel %vm1140_vm6, %v2960_v28, %v3841_v7  ;;  %v3856_v13 = vunpack.i.l.bf16 %v3855_v24  ;;  %v3857_v59 = vunpack.i.h.bf16 %v3855_v24  ;;  %v2452_v7 = vsel %vm391_vm0, %v3972_v1, %v5799_v60  ;;  %v5925_v28 = vld [vmem:[#allocation3 + $0x82] sm:$0xff] }
 0x24f   : > { %2362 = vrot.lane.b32.xlu0 %v3971_v26, %s3993_s27  ;;  %v2249_v26 = vld [vmem:[#allocation2 + $0x16b] ss:$2 sm:$0xff]  ;;  %s6193_s27 = scalar_lea.vmem %s6257_s9, %s3491_s19 }
 0x250   : > { %v5862_v33 = vpop.permute.xlu1 %2348 }
 0x251   : > { %v5865_v52 = vpop.permute.xlu0 %2280 }
 0x252   : > { %3904 = vrot.lane.b32.xlu1 %v3903_v50, %s3992_s26 }
 0x253   : > { %3909 = vrot.lane.b32.xlu0 %v3908_v25, %s3994_s28 }
 0x254   : > { %v5870_v38 = vpop.permute.xlu1 %2258 }
 0x255   : > { %v5876_v49 = vpop.permute.xlu0 %2372 }
 0x256   : > { %2384 = vrot.lane.b32.xlu1 %v5398_v53, %s3994_s28  ;;  %v2961_v53 = vsel %vm1122_vm4, %v2953_v10, %v3837_v46  ;;  %v3973_v10 = vld [vmem:[#allocation2 + $0x49] ss:$2 sm:$0xff] }
 0x257   : > { %2408 = vrot.lane.b32.xlu0 %v5428_v34, %s3995_s29  ;;  %v2976_v34 = vsel %vm1158_vm8, %v2968_v37, %v3846_v14  ;;  %v2969_v55 = vsel %vm1140_vm6, %v2961_v53, %v3842_v22  ;;  %v2453_v22 = vsel %vm391_vm0, %v3973_v10, %v5809_v16  ;;  %v2709_v53 = vld [vmem:[#allocation3 + $0x90] sm:$0xff] }
 0x258   : > { %v5886_v27 = vpop.permute.xlu1 %2350  ;;  %v2985_v61 = vsel %vm2982_vm11, %v2976_v34, %v3851_v43  ;;  %v2977_v30 = vsel %vm1158_vm8, %v2969_v55, %v3847_v35 }
 0x259   : > { %v5895_v39 = vpop.permute.xlu0 %2282  ;;  %v2994_v50 = vsel %vm2991_vm12, %v2985_v61, %v3856_v13  ;;  %v2986_v24 = vsel %vm2982_vm11, %v2977_v30, %v3852_v44 }
 0x25a   : > { %2386 = vrot.lane.b32.xlu1 %v5413_v62, %s3994_s28  ;;  %v2995_v19 = vsel %vm2991_vm12, %v2986_v24, %v3857_v59  ;;  %s3442_s28 = sshll.u32 %s6435_s14, 1 }
 0x25b   : > { %2410 = vrot.lane.b32.xlu0 %v5437_v21, %s3995_s29  ;;  %s390_s19 = scalar_lea.vmem %s6258_s10, %s3442_s28 }
 0x25c   : > { %v3860_v42 = vpop.permute.xlu1 %3859 }
 0x25d   : > { %v3861_v6 = vunpack.i.l.bf16 %v3860_v42  ;;  %v2375_v58 = vpop.permute.xlu0 %2374  ;;  %v3862_v62 = vunpack.i.h.bf16 %v3860_v42 }
 0x25e   : > { %3914 = vrot.lane.b32.xlu1 %v3913_v32, %s3996_s18  ;;  %v2717_v32 = vld [vmem:[#allocation3 + $0x91] sm:$0xff] }
 0x25f   : > { %2874 = vrot.lane.b32.xlu0 %v5853_v40, %s3998_s20  ;;  %v3003_v21 = vsel %vm3000_vm13, %v2994_v50, %v3861_v6  ;;  %v3004_v12 = vsel %vm3000_vm13, %v2995_v19, %v3862_v62 }
 0x260   : > { %v5912_v25 = vpop.permute.xlu1 %2304  ;;  %3126 = vmatmul.mubr.f32.gmra.mrb[12].mxu0 %v3003_v21 }
 0x261   : > { %v5914_v54 = vpop.permute.xlu0 %2306  ;;  %3482 = vmatprep.mubr.msk.f32.mxu0 %vm622_vm2, %v5684_v51  ;;  %v2460_v51 = vsel %vm622_vm2, %v2452_v7, %v5827_v41 }
 0x262   : > { %2440 = vrot.lane.b32.xlu1 %v2249_v26, %s3996_s18 }
 0x263   : > { %2906 = vrot.lane.b32.xlu0 %v2684_v57, %s4000_s30  ;;  %v2468_v57 = vsel %vm1113_vm3, %v2460_v51, %v5829_v29 }
 0x264   : > { %v2397_v46 = vpop.permute.xlu1 %2396  ;;  %3131 = vmatmul.mubr.f32.gmra.mrb[14].mxu0 %v3004_v12  ;;  %v2476_v41 = vsel %vm1122_vm4, %v2468_v57, %v5847_v15 }
 0x265   : > { %v2399_v14 = vpop.permute.xlu0 %2398  ;;  %3483 = vmatprep.mubr.msk.f32.mxu0 %vm622_vm2, %v5740_v18  ;;  %v2461_v18 = vsel %vm622_vm2, %v2453_v22, %v5835_v5  ;;  %v2484_v43 = vsel %vm1131_vm5, %v2476_v41, %v5862_v33 }
 0x266   : > { %2442 = vrot.lane.b32.xlu1 %v2251_v45, %s3996_s18  ;;  %v2492_v29 = vsel %vm1140_vm6, %v2484_v43, %v5876_v49  ;;  %v2469_v35 = vsel %vm1113_vm3, %v2461_v18, %v5837_v47 }
 0x267   : > { %2876 = vrot.lane.b32.xlu0 %v5925_v28, %s3998_s20  ;;  %v2500_v16 = vsel %vm1149_vm7, %v2492_v29, %v2397_v46  ;;  %v2477_v33 = vsel %vm1122_vm4, %v2469_v35, %v5849_v63 }
 0x268   : > { %v5936_v60 = vpop.permute.xlu1 %2328  ;;  %v2485_v47 = vsel %vm1131_vm5, %v2477_v33, %v5886_v27 }
 0x269   : > { %v5942_v37 = vpop.permute.xlu0 %3864  ;;  %v2493_v55 = vsel %vm1140_vm6, %v2485_v47, %v2375_v58 }
 0x26a   : > { %2938 = vrot.lane.b32.xlu1 %v5878_v56, %s3999_s21  ;;  %v2501_v63 = vsel %vm1149_vm7, %v2493_v55, %v2399_v14  ;;  %v3975_v55 = vld [vmem:[#allocation2 + $0xa9] ss:$2 sm:$0xff] }
 0x26b   : > { %2940 = vrot.lane.b32.xlu0 %v2717_v32, %s3999_s21 }
 0x26c   : > { %v2429_v15 = vpop.permute.xlu1 %2428 }
 0x26d   : > { %v2508_v5 = vsel %vm1158_vm8, %v2500_v16, %v2429_v15  ;;  %v2331_v34 = vpop.permute.xlu0 %2330  ;;  %v5957_v13 = vpop.f32.mrb[8].mxu1 }
 0x26e   : > { %v1764_v49 = vmax.f32 %v5629_v48, %v5957_v13  ;;  %2908 = vrot.lane.b32.xlu1 %v2709_v53, %s4000_s30  ;;  %v5964_v56 = vpop.f32.mrb[9].mxu1  ;;  %3669 = vmatprep.mubr.msk.f32.mxu1 %vm1176_vm9, %v2508_v5  ;;  %v3974_v53 = vld [vmem:[#allocation2 + $0x79] ss:$2 sm:$0xff]  ;;  %v3867_v13 = vunpack.i.h.bf16 %v5942_v37 }
 0x26f   : > { %v1763_v42 = vmax.f32 %v5633_v11, %v5964_v56  ;;  %v2454_v16 = vsel %vm391_vm0, %v3974_v53, %v5855_v3 }
 0x270   : > { %v5972_v44 = vpop.permute.xlu1 %2260  ;;  %v2462_v15 = vsel %vm622_vm2, %v2454_v16, %v5865_v52 }
 0x271   : > { %v2431_v6 = vpop.permute.xlu0 %2430  ;;  %v5975_v61 = vpop.f32.mrb[10].mxu1  ;;  %v2470_v35 = vsel %vm1113_vm3, %v2462_v15, %v5912_v25 }
 0x272   : > { %v2509_v30 = vsel %vm1158_vm8, %v2501_v63, %v2431_v6  ;;  %v1766_v59 = vmax.f32 %v5645_v36, %v5975_v61  ;;  %v5980_v50 = vpop.f32.mrb[11].mxu1  ;;  %v2478_v33 = vsel %vm1122_vm4, %v2470_v35, %v5936_v60  ;;  %v2455_v63 = vsel %vm391_vm0, %v3975_v55, %v5870_v38 }
 0x273   : > { %v1765_v27 = vmax.f32 %v5651_v31, %v5980_v50  ;;  %3670 = vmatmul.mubr.msk.f32.vlgmr.msra.gmra.mrb[16].mxu1 %vm1176_vm9, %v2509_v30  ;;  %v2463_v52 = vsel %vm622_vm2, %v2455_v63, %v5895_v39 }
 0x274   : > { %v2353_v11 = vpop.permute.xlu1 %2352  ;;  %v2471_v30 = vsel %vm1113_vm3, %v2463_v52, %v5914_v54 }
 0x275   : > { %v5985_v58 = vpop.permute.xlu0 %2262  ;;  %v5987_v62 = vpop.f32.mrb[12].mxu1  ;;  %v2486_v47 = vsel %vm1131_vm5, %v2478_v33, %v2353_v11  ;;  %v2479_v11 = vsel %vm1122_vm4, %v2471_v30, %v2331_v34 }
 0x276   : > { %v1768_v21 = vmax.f32 %v5660_v0, %v5987_v62  ;;  %v5991_v26 = vpop.f32.mrb[13].mxu1 }
 0x277   : > { %v1767_v24 = vmax.f32 %v5665_v23, %v5991_v26 }
 0x278   : > { %v5995_v19 = vpop.permute.xlu1 %3869 }
 0x279   : > { %v2355_v12 = vpop.permute.xlu0 %2354  ;;  %v5997_v45 = vpop.f32.mrb[14].mxu1  ;;  %v3872_v52 = vunpack.i.h.bf16 %v5995_v19 }
 0x27a   : > { %v1770_v1 = vmax.f32 %v5671_v8, %v5997_v45  ;;  %v6001_v7 = vpop.f32.mrb[15].mxu1  ;;  %v2487_v38 = vsel %vm1131_vm5, %v2479_v11, %v2355_v12 }
 0x27b   : > { %v1769_v46 = vmax.f32 %v5674_v9, %v6001_v7 }
 0x27c   : > { %v6005_v51 = vpop.permute.xlu1 %2284 }
 0x27d   : > { %v6007_v14 = vpop.permute.xlu0 %3874 }
 0x27e   : > { %v3876_v55 = vunpack.i.l.bf16 %v6007_v14  ;;  %v3877_v30 = vunpack.i.h.bf16 %v6007_v14 }
 0x280   : > { %v2377_v57 = vpop.permute.xlu1 %2376 }
 0x281   : > { %v6009_v32 = vpop.permute.xlu0 %2308  ;;  %v2494_v3 = vsel %vm1140_vm6, %v2486_v47, %v2377_v57  ;;  %v3866_v47 = vunpack.i.l.bf16 %v5942_v37 }
 0x284   : > { %v6011_v10 = vpop.permute.xlu1 %2286 }
 0x285   : > { %v2401_v22 = vpop.permute.xlu0 %2400 }
 0x286   : > { %v2502_v6 = vsel %vm1149_vm7, %v2494_v3, %v2401_v22 }
 0x288   : > { %v2379_v41 = vpop.permute.xlu1 %2378 }
 0x289   : > { %v6013_v18 = vpop.permute.xlu0 %2310  ;;  %v2495_v57 = vsel %vm1140_vm6, %v2487_v38, %v2379_v41 }
 0x28c   : > { %v6015_v43 = vpop.permute.xlu1 %3879 }
 0x28d   : > { %v2403_v29 = vpop.permute.xlu0 %2402  ;;  %v3881_v3 = vunpack.i.l.bf16 %v6015_v43  ;;  %v3882_v38 = vunpack.i.h.bf16 %v6015_v43 }
 0x28e   : > { %v2503_v39 = vsel %vm1149_vm7, %v2495_v57, %v2403_v29  ;;  %v3871_v29 = vunpack.i.l.bf16 %v5995_v19 }
 0x290   : > { %v6023_v5 = vpop.permute.xlu1 %2332 }
 0x291   : > { %v3885_v56 = vpop.permute.xlu0 %3884 }
 0x294   : > { %v2433_v25 = vpop.permute.xlu1 %2432 }
 0x295   : > { %v2510_v60 = vsel %vm1158_vm8, %v2502_v6, %v2433_v25  ;;  %v6037_v53 = vpop.permute.xlu0 %2334 }
 0x296   : > { %3672 = vmatprep.mubr.msk.f32.mxu1 %vm1176_vm9, %v2510_v60 }
 0x298   : > { %v6043_v16 = vpop.permute.xlu1 %2264 }
 0x299   : > { %v2435_v22 = vpop.permute.xlu0 %2434 }
 0x29a   : > { %v2511_v15 = vsel %vm1158_vm8, %v2503_v39, %v2435_v22  ;;  %v3641_v54 = vpop.f32.mrb[0].mxu0  ;;  %v3887_v39 = vunpack.i.h.bf16 %v3885_v56 }
 0x29b   : > { %v6050_v35 = vmax.f32 %v1764_v49, %v3641_v54  ;;  %3673 = vmatmul.mubr.msk.f32.gmra.mrb[18].mxu1 %vm1176_vm9, %v2511_v15  ;;  %v2189_v34 = vpop.f32.mrb[1].mxu0  ;;  %v2954_v49 = vsel %vm622_vm2, %v5462_v2, %v3866_v47  ;;  %v2955_v2 = vsel %vm622_vm2, %v5552_v20, %v3867_v13 }
 0x29c   : > { %v6053_v33 = vmax.f32 %v1763_v42, %v2189_v34  ;;  %v2357_v12 = vpop.permute.xlu1 %2356  ;;  %v3886_v42 = vunpack.i.l.bf16 %v3885_v56  ;;  %v2962_v6 = vsel %vm1122_vm4, %v2954_v49, %v3871_v29  ;;  %v2963_v15 = vsel %vm1122_vm4, %v2955_v2, %v3872_v52 }
 0x29d   : > { %v6055_v41 = vpop.permute.xlu0 %2266  ;;  %v2970_v60 = vsel %vm1140_vm6, %v2962_v6, %v3876_v55  ;;  %v2971_v34 = vsel %vm1140_vm6, %v2963_v15, %v3877_v30 }
 0x29e   : > { %v2978_v57 = vsel %vm1158_vm8, %v2970_v60, %v3881_v3  ;;  %v2979_v55 = vsel %vm1158_vm8, %v2971_v34, %v3882_v38 }
 0x29f   : > { %v2987_v19 = vsel %vm2982_vm11, %v2978_v57, %v3886_v42  ;;  %v2988_v20 = vsel %vm2982_vm11, %v2979_v55, %v3887_v39  ;;  %v3976_v42 = vld [vmem:[#allocation2 + $0xd9] ss:$2 sm:$0xff]  ;;  %v3977_v39 = vld [vmem:[#allocation2 + $0x109] ss:$2 sm:$0xff] }
 0x2a0   : > { %v3890_v63 = vpop.permute.xlu1 %3889  ;;  %v2456_v52 = vsel %vm391_vm0, %v3976_v42, %v5972_v44 }
 0x2a1   : > { %v2359_v48 = vpop.permute.xlu0 %2358  ;;  %v3891_v25 = vunpack.i.l.bf16 %v3890_v63  ;;  %v3892_v54 = vunpack.i.h.bf16 %v3890_v63  ;;  %v2464_v6 = vsel %vm622_vm2, %v2456_v52, %v6005_v51  ;;  %v2457_v51 = vsel %vm391_vm0, %v3977_v39, %v5985_v58 }
 0x2a3   : > { %v2996_v14 = vsel %vm2991_vm12, %v2987_v19, %v3891_v25  ;;  %v2997_v56 = vsel %vm2991_vm12, %v2988_v20, %v3892_v54  ;;  %v2472_v25 = vsel %vm1113_vm3, %v2464_v6, %v6009_v32  ;;  %v2465_v32 = vsel %vm622_vm2, %v2457_v51, %v6011_v10 }
 0x2a4   : > { %v6068_v11 = vpop.permute.xlu1 %2288  ;;  %v2480_v60 = vsel %vm1122_vm4, %v2472_v25, %v6023_v5 }
 0x2a5   : > { %v3895_v37 = vpop.permute.xlu0 %3894  ;;  %v2488_v38 = vsel %vm1131_vm5, %v2480_v60, %v2357_v12  ;;  %v2473_v12 = vsel %vm1113_vm3, %v2465_v32, %v6013_v18 }
 0x2a6   : > { %v3896_v22 = vunpack.i.l.bf16 %v3895_v37  ;;  %v3897_v47 = vunpack.i.h.bf16 %v3895_v37  ;;  %v2481_v19 = vsel %vm1122_vm4, %v2473_v12, %v6037_v53 }
 0x2a7   : > { %v2489_v15 = vsel %vm1131_vm5, %v2481_v19, %v2359_v48 }
 0x2a8   : > { %v2381_v29 = vpop.permute.xlu1 %2380  ;;  %v3005_v43 = vsel %vm3000_vm13, %v2996_v14, %v3896_v22  ;;  %v3006_v13 = vsel %vm3000_vm13, %v2997_v56, %v3897_v47  ;;  %v3978_v56 = vld [vmem:[#allocation2 + $0x139] ss:$2 sm:$0xff] }
 0x2a9   : > { %v2313_v3 = vpop.permute.xlu0 %2312  ;;  %3136 = vmatmul.mubr.f32.gmra.mrb[16].mxu0 %v3005_v43  ;;  %v2496_v57 = vsel %vm1140_vm6, %v2488_v38, %v2381_v29  ;;  %v2458_v53 = vsel %vm391_vm0, %v3978_v56, %v6043_v16 }
 0x2aa   : > { %3484 = vmatprep.mubr.msk.f32.mxu0 %vm622_vm2, %v5853_v40 }
 0x2ac   : > { %v2291_v63 = vpop.permute.xlu1 %2290 }
 0x2ad   : > { %v2405_v49 = vpop.permute.xlu0 %2404  ;;  %3141 = vmatmul.mubr.f32.gmra.mrb[18].mxu0 %v3006_v13  ;;  %v2466_v13 = vsel %vm622_vm2, %v2458_v53, %v6068_v11  ;;  %v3979_v11 = vld [vmem:[#allocation2 + $0x169] ss:$2 sm:$0xff] }
 0x2ae   : > { %3485 = vmatprep.mubr.msk.f32.mxu0 %vm622_vm2, %v5925_v28  ;;  %v2504_v37 = vsel %vm1149_vm7, %v2496_v57, %v2405_v49  ;;  %v2474_v6 = vsel %vm1113_vm3, %v2466_v13, %v2313_v3  ;;  %v2459_v57 = vsel %vm391_vm0, %v3979_v11, %v6055_v41 }
 0x2b0   : > { %v2383_v40 = vpop.permute.xlu1 %2382 }
 0x2b1   : > { %v2337_v30 = vpop.permute.xlu0 %2336  ;;  %v2497_v54 = vsel %vm1140_vm6, %v2489_v15, %v2383_v40 }
 0x2b2   : > { %v2482_v38 = vsel %vm1122_vm4, %v2474_v6, %v2337_v30 }
 0x2b4   : > { %v2315_v28 = vpop.permute.xlu1 %2314 }
 0x2b5   : > { %v2437_v2 = vpop.permute.xlu0 %2436 }
 0x2b6   : > { %v2512_v44 = vsel %vm1158_vm8, %v2504_v37, %v2437_v2  ;;  %v2467_v2 = vsel %vm622_vm2, %v2459_v57, %v2291_v63 }
 0x2b7   : > { %3675 = vmatprep.mubr.msk.f32.mxu1 %vm1176_vm9, %v2512_v44  ;;  %v2475_v31 = vsel %vm1113_vm3, %v2467_v2, %v2315_v28 }
 0x2b8   : > { %v2407_v5 = vpop.permute.xlu1 %2406 }
 0x2b9   : > { %v2339_v22 = vpop.permute.xlu0 %2338  ;;  %v2505_v58 = vsel %vm1149_vm7, %v2497_v54, %v2407_v5 }
 0x2ba   : > { %v2483_v44 = vsel %vm1122_vm4, %v2475_v31, %v2339_v22 }
 0x2bc   : > { %v3900_v14 = vpop.permute.xlu1 %3899 }
 0x2bd   : > { %v2439_v34 = vpop.permute.xlu0 %2438  ;;  %v3901_v49 = vunpack.i.l.bf16 %v3900_v14  ;;  %v3902_v12 = vunpack.i.h.bf16 %v3900_v14 }
 0x2be   : > { %v2513_v47 = vsel %vm1158_vm8, %v2505_v58, %v2439_v34 }
 0x2bf   : > { %3676 = vmatmul.mubr.msk.f32.gmra.mrb[20].mxu1 %vm1176_vm9, %v2513_v47  ;;  %v2956_v36 = vsel %vm622_vm2, %v5690_v4, %v3901_v49  ;;  %v2957_v34 = vsel %vm622_vm2, %v5773_v17, %v3902_v12 }
 0x2c0   : > { %v2361_v10 = vpop.permute.xlu1 %2360 }
 0x2c1   : > { %v2363_v29 = vpop.permute.xlu0 %2362  ;;  %v2490_v3 = vsel %vm1131_vm5, %v2482_v38, %v2361_v10 }
 0x2c2   : > { %v2491_v41 = vsel %vm1131_vm5, %v2483_v44, %v2363_v29 }
 0x2c4   : > { %v3905_v43 = vpop.permute.xlu1 %3904 }
 0x2c5   : > { %v3910_v18 = vpop.permute.xlu0 %3909  ;;  %v3906_v40 = vunpack.i.l.bf16 %v3905_v43  ;;  %v3907_v19 = vunpack.i.h.bf16 %v3905_v43 }
 0x2c6   : > { %v3911_v61 = vunpack.i.l.bf16 %v3910_v18  ;;  %v3912_v47 = vunpack.i.h.bf16 %v3910_v18 }
 0x2c7   : > { %v2964_v50 = vsel %vm1122_vm4, %v2956_v36, %v3906_v40  ;;  %v2965_v14 = vsel %vm1122_vm4, %v2957_v34, %v3907_v19 }
 0x2c8   : > { %v2385_v55 = vpop.permute.xlu1 %2384  ;;  %v2972_v4 = vsel %vm1140_vm6, %v2964_v50, %v3911_v61  ;;  %v2973_v53 = vsel %vm1140_vm6, %v2965_v14, %v3912_v47 }
 0x2c9   : > { %v2409_v20 = vpop.permute.xlu0 %2408 }
 0x2cc   : > { %v2387_v48 = vpop.permute.xlu1 %2386 }
 0x2cd   : > { %v2411_v42 = vpop.permute.xlu0 %2410  ;;  %v3644_v52 = vpop.f32.mrb[2].mxu0  ;;  %v2499_v63 = vsel %vm1140_vm6, %v2491_v41, %v2387_v48 }
 0x2ce   : > { %v6121_v25 = vmax.f32 %v1766_v59, %v3644_v52  ;;  %v2199_v60 = vpop.f32.mrb[3].mxu0  ;;  %v2498_v59 = vsel %vm1140_vm6, %v2490_v3, %v2385_v55  ;;  %v2507_v22 = vsel %vm1149_vm7, %v2499_v63, %v2411_v42 }
 0x2cf   : > { %v6127_v16 = vmax.f32 %v1765_v27, %v2199_v60  ;;  %v2506_v39 = vsel %vm1149_vm7, %v2498_v59, %v2409_v20  ;;  %v2725_v20 = vld [vmem:[#allocation3 + $0x92] sm:$0xff] }
 0x2d0   : > { %v3915_v37 = vpop.permute.xlu1 %3914 }
 0x2d1   : > { %v2875_v30 = vpop.permute.xlu0 %2874  ;;  %v3916_v27 = vunpack.i.l.bf16 %v3915_v37  ;;  %v3917_v10 = vunpack.i.h.bf16 %v3915_v37 }
 0x2d3   : > { %v2980_v28 = vsel %vm1158_vm8, %v2972_v4, %v3916_v27  ;;  %v2981_v48 = vsel %vm1158_vm8, %v2973_v53, %v3917_v10 }
 0x2d4   : > { %v2441_v51 = vpop.permute.xlu1 %2440  ;;  %v2989_v54 = vsel %vm2982_vm11, %v2980_v28, %v2875_v30 }
 0x2d5   : > { %v2514_v32 = vsel %vm1158_vm8, %v2506_v39, %v2441_v51  ;;  %v2907_v5 = vpop.permute.xlu0 %2906 }
 0x2d6   : > { %3678 = vmatprep.mubr.msk.f32.mxu1 %vm1176_vm9, %v2514_v32  ;;  %v2998_v55 = vsel %vm2991_vm12, %v2989_v54, %v2907_v5 }
 0x2d8   : > { %v2443_v15 = vpop.permute.xlu1 %2442 }
 0x2d9   : > { %v2515_v58 = vsel %vm1158_vm8, %v2507_v22, %v2443_v15  ;;  %v2877_v29 = vpop.permute.xlu0 %2876 }
 0x2da   : > { %3679 = vmatmul.mubr.msk.f32.gmra.mrb[22].mxu1 %vm1176_vm9, %v2515_v58  ;;  %v2990_v17 = vsel %vm2982_vm11, %v2981_v48, %v2877_v29 }
 0x2dc   : > { %v2939_v43 = vpop.permute.xlu1 %2938 }
 0x2dd   : > { %v3007_v56 = vsel %vm3000_vm13, %v2998_v55, %v2939_v43  ;;  %v2941_v13 = vpop.permute.xlu0 %2940 }
 0x2de   : > { %3146 = vmatmul.mubr.f32.gmra.mrb[20].mxu0 %v3007_v56 }
 0x2df   : > { %3486 = vmatprep.mubr.msk.f32.mxu0 %vm622_vm2, %v2725_v20 }
 0x2e0   : > { %v2909_v18 = vpop.permute.xlu1 %2908 }
 0x2e1   : > { %v2999_v49 = vsel %vm2991_vm12, %v2990_v17, %v2909_v18 }
 0x2e2   : > { %v3008_v42 = vsel %vm3000_vm13, %v2999_v49, %v2941_v13 }
 0x2e3   : > { %3151 = vmatmul.mubr.f32.gmra.mrb[22].mxu0 %v3008_v42 }
 0x2e6   : > { %v3647_v52 = vpop.f32.mrb[4].mxu0 }
 0x2e7   : > { %v6164_v6 = vmax.f32 %v1768_v21, %v3647_v52  ;;  %v2209_v40 = vpop.f32.mrb[5].mxu0 }
 0x2e8   : > { %v6169_v60 = vmax.f32 %v1767_v24, %v2209_v40 }
 0x2fd   : > { %v3650_v38 = vpop.f32.mrb[6].mxu0 }
 0x2fe   : > { %v6174_v11 = vmax.f32 %v1770_v1, %v3650_v38  ;;  %v2219_v57 = vpop.f32.mrb[7].mxu0  ;;  %v6185_v1 = vld [vmem:[%s6252_s4] ss:$0 sm:$0xff] }
 0x2ff   : > { %v6179_v0 = vmax.f32 %v1769_v46, %v2219_v57 }
 0x308   : > { %v3117_v62 = vpop.f32.mrb[8].mxu0 }
 0x309   : > { %v3119_v21 = vpop.f32.mrb[9].mxu0 }
 0x30c   : > { %v3122_v3 = vpop.f32.mrb[10].mxu0 }
 0x30d   : > { %v3124_v37 = vpop.f32.mrb[11].mxu0 }
 0x333   : > { %v3127_v23 = vpop.f32.mrb[12].mxu0 }
 0x334   : > { %v3129_v26 = vpop.f32.mrb[13].mxu0 }
 0x337   : > { %v3132_v24 = vpop.f32.mrb[14].mxu0 }
 0x338   : > { %v3134_v2 = vpop.f32.mrb[15].mxu0 }
 0x346   : > { %v3671_v36 = vpop.f32.mrb[16].mxu1 }
 0x347   : > { %v2646_v8 = vmax.f32 %v6050_v35, %v3671_v36  ;;  %v2606_v45 = vpop.f32.mrb[17].mxu1 }
 0x348   : > { %v2645_v9 = vmax.f32 %v6053_v33, %v2606_v45 }
 0x349   : > { %v3157_v7 = vadd.f32 %v3122_v3, %v2646_v8 }
 0x34a   : > { %v3156_v46 = vadd.f32 %v3117_v62, %v2645_v9 }
 0x34b   : > { %v3172_v35 = vadd.f32 %v6185_v1, %v3157_v7 }
 0x34c   : > { %v3171_v61 = vadd.f32 %v6185_v1, %v3156_v46 }
 0x34d   : > { %3180 = vst.msk [vmem:[%s6193_s27 + $0x8] sm:$0xff] %vm1122_vm4, %v3172_v35  ;;  %v3188_v59 = vsel %vm1122_vm4, %v3172_v35, 0.0  ;;  %v3211_v30 = vmul.f32 %v3172_v35, %v3172_v35 }
 0x34e   : > { %3179 = vst.msk [vmem:[%s6193_s27] sm:$0xff] %vm1122_vm4, %v3171_v61  ;;  %v3187_v33 = vsel %vm1122_vm4, %v3171_v61, 0.0  ;;  %v3210_v31 = vmul.f32 %v3171_v61, %v3171_v61 }
 0x34f   : > { %v3219_v50 = vsel %vm1122_vm4, %v3211_v30, 0.0  ;;  %v3189_v27 = vadd.f32 %v3188_v59, %v3187_v33 }
 0x350   : > { %v3218_v44 = vsel %vm1122_vm4, %v3210_v31, 0.0 }
 0x351   : > { %v3220_v41 = vadd.f32 %v3219_v50, %v3218_v44 }
 0x36e   : > { %v3674_v39 = vpop.f32.mrb[18].mxu1 }
 0x36f   : > { %v2648_v51 = vmax.f32 %v6121_v25, %v3674_v39  ;;  %v2616_v63 = vpop.f32.mrb[19].mxu1 }
 0x370   : > { %v2647_v4 = vmax.f32 %v6127_v16, %v2616_v63 }
 0x371   : > { %v3159_v32 = vadd.f32 %v3132_v24, %v2648_v51 }
 0x372   : > { %v3158_v5 = vadd.f32 %v3127_v23, %v2647_v4 }
 0x373   : > { %v3174_v12 = vadd.f32 %v6185_v1, %v3159_v32 }
 0x374   : > { %v3173_v28 = vadd.f32 %v6185_v1, %v3158_v5 }
 0x375   : > { %3182 = vst.msk [vmem:[%s6193_s27 + $0x18] sm:$0xff] %vm1122_vm4, %v3174_v12  ;;  %v3213_v19 = vmul.f32 %v3174_v12, %v3174_v12  ;;  %v3192_v25 = vsel %vm1122_vm4, %v3174_v12, 0.0 }
 0x376   : > { %3181 = vst.msk [vmem:[%s6193_s27 + $0x10] sm:$0xff] %vm1122_vm4, %v3173_v28  ;;  %v3190_v22 = vsel %vm1122_vm4, %v3173_v28, 0.0  ;;  %v3212_v15 = vmul.f32 %v3173_v28, %v3173_v28 }
 0x377   : > { %v3191_v54 = vadd.f32 %v3190_v22, %v3189_v27  ;;  %v3223_v47 = vsel %vm1122_vm4, %v3213_v19, 0.0 }
 0x378   : > { %v3221_v58 = vsel %vm1122_vm4, %v3212_v15, 0.0 }
 0x379   : > { %v3222_v16 = vadd.f32 %v3221_v58, %v3220_v41  ;;  %v3193_v34 = vadd.f32 %v3192_v25, %v3191_v54 }
 0x37b   : > { %v3224_v14 = vadd.f32 %v3223_v47, %v3222_v16 }
 0x37c   : > { %v3137_v10 = vpop.f32.mrb[16].mxu0 }
 0x37d   : > { %v3139_v29 = vpop.f32.mrb[17].mxu0 }
 0x380   : > { %v3142_v55 = vpop.f32.mrb[18].mxu0 }
 0x381   : > { %v3144_v43 = vpop.f32.mrb[19].mxu0 }
 0x392   : > { %v3677_v20 = vpop.f32.mrb[20].mxu1 }
 0x393   : > { %v2650_v56 = vmax.f32 %v6164_v6, %v3677_v20  ;;  %v2626_v53 = vpop.f32.mrb[21].mxu1 }
 0x394   : > { %v2649_v48 = vmax.f32 %v6169_v60, %v2626_v53 }
 0x395   : > { %v3161_v13 = vadd.f32 %v3142_v55, %v2650_v56 }
 0x396   : > { %v3160_v17 = vadd.f32 %v3137_v10, %v2649_v48 }
 0x397   : > { %v3176_v18 = vadd.f32 %v6185_v1, %v3161_v13 }
 0x398   : > { %v3175_v49 = vadd.f32 %v6185_v1, %v3160_v17 }
 0x399   : > { %3184 = vst.msk [vmem:[%s6193_s27 + $0x28] sm:$0xff] %vm1122_vm4, %v3176_v18  ;;  %v3215_v42 = vmul.f32 %v3176_v18, %v3176_v18  ;;  %v3196_v6 = vsel %vm1122_vm4, %v3176_v18, 0.0 }
 0x39a   : > { %3183 = vst.msk [vmem:[%s6193_s27 + $0x20] sm:$0xff] %vm1122_vm4, %v3175_v49  ;;  %v3194_v52 = vsel %vm1122_vm4, %v3175_v49, 0.0  ;;  %v3214_v40 = vmul.f32 %v3175_v49, %v3175_v49 }
 0x39b   : > { %v3195_v38 = vadd.f32 %v3194_v52, %v3193_v34  ;;  %v3227_v21 = vsel %vm1122_vm4, %v3215_v42, 0.0 }
 0x39c   : > { %v3225_v60 = vsel %vm1122_vm4, %v3214_v40, 0.0 }
 0x39d   : > { %v3226_v57 = vadd.f32 %v3225_v60, %v3224_v14  ;;  %v3197_v62 = vadd.f32 %v3196_v6, %v3195_v38 }
 0x39f   : > { %v3228_v3 = vadd.f32 %v3227_v21, %v3226_v57 }
 0x3ad   : > { %v3680_v37 = vpop.f32.mrb[22].mxu1 }
 0x3ae   : > { %v2652_v23 = vmax.f32 %v6174_v11, %v3680_v37  ;;  %v2636_v26 = vpop.f32.mrb[23].mxu1 }
 0x3af   : > { %v2651_v24 = vmax.f32 %v6179_v0, %v2636_v26 }
 0x3b1   : > { %v3147_v2 = vpop.f32.mrb[20].mxu0 }
 0x3b2   : > { %v3162_v36 = vadd.f32 %v3147_v2, %v2651_v24  ;;  %v3149_v8 = vpop.f32.mrb[21].mxu0 }
 0x3b4   : > { %v3177_v45 = vadd.f32 %v6185_v1, %v3162_v36 }
 0x3b6   : > { %3185 = vst.msk [vmem:[%s6193_s27 + $0x30] sm:$0xff] %vm1122_vm4, %v3177_v45  ;;  %v3198_v9 = vsel %vm1122_vm4, %v3177_v45, 0.0  ;;  %v3216_v7 = vmul.f32 %v3177_v45, %v3177_v45  ;;  %v3152_v46 = vpop.f32.mrb[22].mxu0 }
 0x3b7   : > { %v3199_v35 = vadd.f32 %v3198_v9, %v3197_v62  ;;  %v3163_v61 = vadd.f32 %v3152_v46, %v2652_v23  ;;  %v3154_v59 = vpop.f32.mrb[23].mxu0 }
 0x3b8   : > { %v3229_v11 = vsel %vm1122_vm4, %v3216_v7, 0.0 }
 0x3b9   : > { %v3230_v30 = vadd.f32 %v3229_v11, %v3228_v3  ;;  %v3178_v0 = vadd.f32 %v6185_v1, %v3163_v61 }
 0x3bb   : > { %3186 = vst.msk [vmem:[%s6193_s27 + $0x38] sm:$0xff] %vm1122_vm4, %v3178_v0  ;;  %v3200_v33 = vsel %vm1122_vm4, %v3178_v0, 0.0  ;;  %v3217_v31 = vmul.f32 %v3178_v0, %v3178_v0 }
 0x3bc   : > { %v3201_v50 = vadd.f32 %v3200_v33, %v3199_v35 }
 0x3bd   : > { %v3231_v27 = vsel %vm1122_vm4, %v3217_v31, 0.0 }
 0x3be   : > { %v3202_v44 = vrot.slane %v3201_v50, 4  ;;  %v3232_v41 = vadd.f32 %v3231_v27, %v3230_v30 }
 0x3c0   : > { %v3203_v39 = vadd.f32 %v3202_v44, %v3201_v50  ;;  %v3233_v51 = vrot.slane %v3232_v41, 4 }
 0x3c2   : > { %v3204_v63 = vrot.slane %v3203_v39, 2  ;;  %v3234_v4 = vadd.f32 %v3233_v51, %v3232_v41 }
 0x3c4   : > { %v3205_v32 = vadd.f32 %v3204_v63, %v3203_v39  ;;  %v3235_v5 = vrot.slane %v3234_v4, 2 }
 0x3c6   : > { %v3206_v12 = vrot.slane %v3205_v32, 1  ;;  %v3236_v28 = vadd.f32 %v3235_v5, %v3234_v4 }
 0x3c8   : > { %v3207_v1 = vadd.f32 %v3206_v12, %v3205_v32  ;;  %v3237_v19 = vrot.slane %v3236_v28, 1 }
 0x3ca   : > { %3209 = vst.msk [vmem:[%s390_s19] sm:$0x1] %vm3208_vm14, %v3207_v1  ;;  %v3238_v22 = vadd.f32 %v3237_v19, %v3236_v28 }
 0x3cc   : > { %3239 = vst.msk [vmem:[%s390_s19 + $0x1] sm:$0x1] %vm3208_vm14, %v3238_v22 }
 0x3cd PF: > { %s21_s13 = sadd.s32 1, %s3986_s13  }
 0x3ce   : > { %p18_p4 = scmp.ge.s32.totalorder %s21_s13, 4  }
 0x3d0   :  { %20 = sbr.rel (!%p18_p4) target bundleno = 1 (0x1), region = 230 }

</bundles_post_ra>
